<compile_context>
chip_gen: v6e
topology: v6e:2x2x1
jax: 0.10.0
libtpu: 0.0.40
codegen_flags: <defaults>
</compile_context>

<pallas_src>
import jax
import jax.numpy as jnp
from jax.experimental import pallas as pl
from jax.experimental.pallas import tpu as pltpu


def _cdiv(a, b):
    return -(-a // b)


def _round_up(v, m):
    return _cdiv(v, m) * m


def _layer_norm(x, eps=1e-5):
    # F.layer_norm over the last dim, no affine params (weight=None, bias=None).
    mean = jnp.mean(x, axis=-1, keepdims=True)
    c = x - mean
    var = jnp.mean(c * c, axis=-1, keepdims=True)
    return c * jax.lax.rsqrt(var + eps)


# --------------------------------------------------------------------------------------
# Kernel
# --------------------------------------------------------------------------------------
def graphnet_kernel(x_ref,
                    wg1_ref, bg1_ref, wn1_ref, bn1_ref,
                    wg2_ref, bg2_ref, wn2_ref, bn2_ref,
                    wv_ref, bv_ref,
                    out_ref):
    BB, N, S = x_ref.shape
    H = wn1_ref.shape[1]
    cd = wn1_ref.dtype                       # matmul operand dtype (f32 or bf16)

    x = x_ref[...].astype(jnp.float32)       # (BB, N, S)
    xf = x.reshape(BB * N, S)                # nn-branch LHS
    xs = jnp.sum(x, axis=1)                  # (BB, S) agent sums for the gc branch

    # --- layer 1 ----------------------------------------------------------------------
    # gc branch: (sum_agents x) @ W_gc1 + N*b_gc1   (bias pre-scaled in pack_params)
    g1 = jnp.dot(xs.astype(cd), wg1_ref[...],
                 preferred_element_type=jnp.float32) + bg1_ref[...]          # (BB, H)
    n1 = jnp.dot(xf.astype(cd), wn1_ref[...],
                 preferred_element_type=jnp.float32) + bn1_ref[...]          # (BB*N, H)
    feat = _layer_norm(jnp.maximum(g1[:, None, :] + n1.reshape(BB, N, H), 0.0))

    # --- layer 2 ----------------------------------------------------------------------
    fs = jnp.sum(feat, axis=1)                                               # (BB, H)
    g2 = jnp.dot(fs.astype(cd), wg2_ref[...],
                 preferred_element_type=jnp.float32) + bg2_ref[...]          # (BB, H)
    n2 = jnp.dot(feat.reshape(BB * N, H).astype(cd), wn2_ref[...],
                 preferred_element_type=jnp.float32) + bn2_ref[...]          # (BB*N, H)
    out = _layer_norm(jnp.maximum(g2[:, None, :] + n2.reshape(BB, N, H), 0.0))

    # --- avg pool over agents, final V linear (O padded to 128 lanes) ------------------
    pooled = jnp.mean(out, axis=1)                                           # (BB, H)
    val = jnp.dot(pooled.astype(cd), wv_ref[...],
                  preferred_element_type=jnp.float32) + bv_ref[...]          # (BB, O_pad)
    out_ref[...] = val.astype(out_ref.dtype)


# --------------------------------------------------------------------------------------
# Parameter packing
# --------------------------------------------------------------------------------------
def pack_params(params, *, n_agents, compute_dtype=jnp.float32, out_lane_pad=128):
    """Pre-scale gc biases by n_agents (all-ones adjacency algebra), pad V to 128 lanes,
    and store weights in `compute_dtype` (bf16 -> native-bf16 MXU on v6e/v7x)."""
    (w_gc1, b_gc1, w_nn1, b_nn1,
     w_gc2, b_gc2, w_nn2, b_nn2, w_v, b_v) = params
    cd = compute_dtype
    O = w_v.shape[1]
    O_pad = max(out_lane_pad, _round_up(O, out_lane_pad))
    w_v_pad = jnp.zeros((w_v.shape[0], O_pad), jnp.float32).at[:, :O].set(w_v)
    b_v_pad = jnp.zeros((1, O_pad), jnp.float32).at[0, :O].set(b_v)
    return (
        w_gc1.astype(cd), (n_agents * b_gc1)[None, :].astype(jnp.float32),
        w_nn1.astype(cd), b_nn1[None, :].astype(jnp.float32),
        w_gc2.astype(cd), (n_agents * b_gc2)[None, :].astype(jnp.float32),
        w_nn2.astype(cd), b_nn2[None, :].astype(jnp.float32),
        w_v_pad.astype(cd), b_v_pad,
    )


# --------------------------------------------------------------------------------------
# Wrapper
# --------------------------------------------------------------------------------------
def _default_block_batch(B, n_agents, sa_dim, hidden, out_pad,
                         target_rows=4096, vmem_budget_bytes=24 << 20):
    """BB targets ~target_rows MXU rows (and ~MB-scale activation DMAs) per grid step,
    capped by a conservative VMEM estimate and by batch size (>= 2 grid steps)."""
    bb = max(8, target_rows // n_agents)
    # f32 bytes per sample: double-buffered x & out blocks + live f32 intermediates
    # (xf/xs, n1, feat, n2, out, pooled) of both layers.
    per_sample = 4 * (2 * n_agents * sa_dim          # x block (double buffered)
                      + 2 * out_pad                  # out block (double buffered)
                      + n_agents * sa_dim            # xf / xs
                      + 6 * n_agents * hidden)       # n1, feat, n2, out + slack
    bb = min(bb, max(8, vmem_budget_bytes // per_sample))
    # Keep >= 2 grid steps (both v7x TensorCores) and don't pad a tiny batch to a huge
    # block.
    bb = min(bb, max(8, _cdiv(B + 1, 2)))
    bb = _round_up(bb, 8)
    # Prefer an even number of grid steps for the two v7x TensorCores.
    nb = _cdiv(B, bb)
    if nb > 1 and nb % 2 == 1:
        cand = _round_up(_cdiv(B, nb + 1), 8)
        if cand >= 8 and _cdiv(B, cand) % 2 == 0:
            bb = cand
    return bb


def _resident_spec(a):
    nd = a.ndim
    return pl.BlockSpec(a.shape, lambda i, _nd=nd: (0,) * _nd)


def graphnet_forward(x, packed_params, *, n_agents, sa_dim, output_dim, block_batch=None):
    """x: [B, n_agents * sa_dim] float32 -> [B, output_dim]."""
    B = x.shape[0]
    assert x.shape[1] == n_agents * sa_dim
    (wg1, bg1, wn1, bn1, wg2, bg2, wn2, bn2, wv, bv) = packed_params
    H = wg2.shape[0]
    O_pad = wv.shape[1]

    BB = block_batch if block_batch is not None else _default_block_batch(
        B, n_agents, sa_dim, H, O_pad)
    num_blocks = _cdiv(B, BB)
    B_pad = num_blocks * BB

    x3 = x.reshape(B, n_agents, sa_dim)
    if B_pad != B:
        x3 = jnp.pad(x3, ((0, B_pad - B), (0, 0), (0, 0)))

    weights = (wg1, bg1, wn1, bn1, wg2, bg2, wn2, bn2, wv, bv)
    grid_spec = pltpu.PrefetchScalarGridSpec(
        num_scalar_prefetch=0,
        grid=(num_blocks,),
        in_specs=[pl.BlockSpec((BB, n_agents, sa_dim), lambda i: (i, 0, 0))]
                + [_resident_spec(w) for w in weights],
        out_specs=pl.BlockSpec((BB, O_pad), lambda i: (i, 0)),
    )
    out = pl.pallas_call(
        graphnet_kernel,
        out_shape=jax.ShapeDtypeStruct((B_pad, O_pad), jnp.float32),
        grid_spec=grid_spec,
        compiler_params=pltpu.CompilerParams(
            dimension_semantics=("parallel",),
            vmem_limit_bytes=40 * 1024 * 1024,
        ),
    )(x3, *weights)
    return out[:B, :output_dim]


# --------------------------------------------------------------------------------------
# Pure-JAX reference (mirrors the PyTorch forward: unfused params, real adjacency bmm)
# --------------------------------------------------------------------------------------
def graphnet_reference(x, adj, params, *, n_agents, sa_dim):
    (w_gc1, b_gc1, w_nn1, b_nn1,
     w_gc2, b_gc2, w_nn2, b_nn2, w_v, b_v) = params
    B = x.shape[0]
    x3 = x.reshape(B, n_agents, sa_dim)
    adj_b = jnp.broadcast_to(adj, (B,) + adj.shape)

    gc1 = jnp.einsum("bij,bjh->bih", adj_b, x3 @ w_gc1 + b_gc1)
    nn1 = x3 @ w_nn1 + b_nn1
    feat = _layer_norm(jnp.maximum(gc1 + nn1, 0.0))

    gc2 = jnp.einsum("bij,bjh->bih", adj_b, feat @ w_gc2 + b_gc2)
    nn2 = feat @ w_nn2 + b_nn2
    out = _layer_norm(jnp.maximum(gc2 + nn2, 0.0))

    ret = out.mean(axis=1)
    return ret @ w_v + b_v


def init_params(key, sa_dim, hidden_size, output_dim):
    """Deterministic parameter init; weights stored as [in_dim, out_dim]."""
    ks = jax.random.split(key, 10)

    def linear(kw, kb, in_dim, out_dim):
        s = 1.0 / jnp.sqrt(in_dim)
        w = jax.random.uniform(kw, (in_dim, out_dim), jnp.float32, -s, s)
        b = jax.random.uniform(kb, (out_dim,), jnp.float32, -s, s)
        return w, b

    w_gc1, b_gc1 = linear(ks[0], ks[1], sa_dim, hidden_size)
    w_nn1, b_nn1 = linear(ks[2], ks[3], sa_dim, hidden_size)
    w_gc2, b_gc2 = linear(ks[4], ks[5], hidden_size, hidden_size)
    w_nn2, b_nn2 = linear(ks[6], ks[7], hidden_size, hidden_size)
    # V: weight uniform(-0.003, 0.003), bias zero (as in the module __init__)
    w_v = jax.random.uniform(ks[8], (hidden_size, output_dim), jnp.float32, -0.003, 0.003)
    b_v = jnp.zeros((output_dim,), jnp.float32)
    return (w_gc1, b_gc1, w_nn1, b_nn1, w_gc2, b_gc2, w_nn2, b_nn2, w_v, b_v)


if __name__ == "__main__":
    # Shapes consistent with the module: n_agents=8, sa_dim=16, hidden=32, out=8.
    # B=50 exercises the batch-padding path; the default BB picker gives BB=32 ->
    # a 2-step "parallel" grid (both v7x TensorCores) with 256-row matmul LHS per step.
    B, N, S, H, O = 50, 8, 16, 32, 8
    key = jax.random.PRNGKey(0)
    k_x, k_p = jax.random.split(key)

    x = jax.random.normal(k_x, (B, N * S), dtype=jnp.float32)
    adj = jnp.ones((N, N), dtype=jnp.float32)   # registered buffer: all-ones adjacency
    raw_params = init_params(k_p, S, H, O)

    ref = graphnet_reference(x, adj, raw_params, n_agents=N, sa_dim=S)

    # --- f32 matmul-operand path (exact check vs reference) ---------------------------
    packed_f32 = pack_params(raw_params, n_agents=N, compute_dtype=jnp.float32)
    out_f32 = jax.block_until_ready(
        graphnet_forward(x, packed_f32, n_agents=N, sa_dim=S, output_dim=O))
    assert out_f32.shape == (B, O)
    assert jnp.allclose(out_f32, ref, atol=1e-4, rtol=1e-4), (out_f32, ref)

    # --- bf16 matmul-operand path (v6e/v7x fast path; looser tolerance) ---------------
    packed_bf16 = pack_params(raw_params, n_agents=N, compute_dtype=jnp.bfloat16)
    out_bf16 = jax.block_until_ready(
        graphnet_forward(x, packed_bf16, n_agents=N, sa_dim=S, output_dim=O))
    assert out_bf16.shape == (B, O)
    assert jnp.allclose(out_bf16, ref, atol=2e-3, rtol=2e-2), (out_bf16, ref)

    # TODO(synk): use_agent_id=True branch (agent-id embedding concat) and pool_type='max'
    # are not implemented; defaults (use_agent_id=False, pool_type='avg') are covered.
    print("KERNEL_OK")
</pallas_src>

<mosaic_0001>
module attributes {stable_mosaic.version = 11 : i64} {
  func.func @graphnet_kernel(%arg0: i32, %arg1: memref<32x8x16xf32, #tpu.memory_space<vmem>>, %arg2: memref<16x32xf32, #tpu.memory_space<vmem>>, %arg3: memref<1x32xf32, #tpu.memory_space<vmem>>, %arg4: memref<16x32xf32, #tpu.memory_space<vmem>>, %arg5: memref<1x32xf32, #tpu.memory_space<vmem>>, %arg6: memref<32x32xf32, #tpu.memory_space<vmem>>, %arg7: memref<1x32xf32, #tpu.memory_space<vmem>>, %arg8: memref<32x32xf32, #tpu.memory_space<vmem>>, %arg9: memref<1x32xf32, #tpu.memory_space<vmem>>, %arg10: memref<32x128xf32, #tpu.memory_space<vmem>>, %arg11: memref<1x128xf32, #tpu.memory_space<vmem>>, %arg12: memref<32x128xf32, #tpu.memory_space<vmem>>) attributes {dimension_semantics = [#tpu.dimension_semantics<parallel>], iteration_bounds = array<i64: 2>, scalar_prefetch = 0 : i64, scratch_operands = 0 : i64, tpu.core_type = #tpu.core_type<tc>, window_params = [{transform_indices = @transform_0, window_bounds = array<i64: 32, 8, 16>}, {pipeline_mode = #tpu.pipeline_mode<synchronous>, transform_indices = @transform_1, window_bounds = array<i64: 16, 32>}, {pipeline_mode = #tpu.pipeline_mode<synchronous>, transform_indices = @transform_2, window_bounds = array<i64: 1, 32>}, {pipeline_mode = #tpu.pipeline_mode<synchronous>, transform_indices = @transform_3, window_bounds = array<i64: 16, 32>}, {pipeline_mode = #tpu.pipeline_mode<synchronous>, transform_indices = @transform_4, window_bounds = array<i64: 1, 32>}, {pipeline_mode = #tpu.pipeline_mode<synchronous>, transform_indices = @transform_5, window_bounds = array<i64: 32, 32>}, {pipeline_mode = #tpu.pipeline_mode<synchronous>, transform_indices = @transform_6, window_bounds = array<i64: 1, 32>}, {pipeline_mode = #tpu.pipeline_mode<synchronous>, transform_indices = @transform_7, window_bounds = array<i64: 32, 32>}, {pipeline_mode = #tpu.pipeline_mode<synchronous>, transform_indices = @transform_8, window_bounds = array<i64: 1, 32>}, {pipeline_mode = #tpu.pipeline_mode<synchronous>, transform_indices = @transform_9, window_bounds = array<i64: 32, 128>}, {pipeline_mode = #tpu.pipeline_mode<synchronous>, transform_indices = @transform_10, window_bounds = array<i64: 1, 128>}, {transform_indices = @transform_11, window_bounds = array<i64: 32, 128>}]} {
    %c0 = arith.constant 0 : index
    %c0_0 = arith.constant 0 : index
    %c0_1 = arith.constant 0 : index
    %0 = vector.load %arg1[%c0, %c0_0, %c0_1] : memref<32x8x16xf32, #tpu.memory_space<vmem>>, vector<32x8x16xf32>
    %1 = vector.shape_cast %0 : vector<32x8x16xf32> to vector<256x16xf32>
    %cst = arith.constant dense<0.000000e+00> : vector<32x16xf32>
    %2 = vector.multi_reduction <add>, %0, %cst [1] : vector<32x8x16xf32> to vector<32x16xf32>
    %c0_2 = arith.constant 0 : index
    %c0_3 = arith.constant 0 : index
    %3 = vector.load %arg2[%c0_2, %c0_3] : memref<16x32xf32, #tpu.memory_space<vmem>>, vector<16x32xf32>
    %cst_4 = arith.constant dense<0.000000e+00> : vector<32x32xf32>
    %4 = tpu.matmul %2, %3, %cst_4 {dimension_numbers = #tpu.dot_dimension_numbers<[1], [0], [0], [1], [0, 0, 1, 1], [], []>} : vector<32x16xf32>, vector<16x32xf32>, vector<32x32xf32> -> vector<32x32xf32>
    %c0_5 = arith.constant 0 : index
    %c0_6 = arith.constant 0 : index
    %5 = vector.load %arg3[%c0_5, %c0_6] : memref<1x32xf32, #tpu.memory_space<vmem>>, vector<1x32xf32>
    %6 = vector.broadcast %5 : vector<1x32xf32> to vector<32x32xf32>
    %7 = arith.addf %4, %6 : vector<32x32xf32>
    %c0_7 = arith.constant 0 : index
    %c0_8 = arith.constant 0 : index
    %8 = vector.load %arg4[%c0_7, %c0_8] : memref<16x32xf32, #tpu.memory_space<vmem>>, vector<16x32xf32>
    %cst_9 = arith.constant dense<0.000000e+00> : vector<256x32xf32>
    %9 = tpu.matmul %1, %8, %cst_9 {dimension_numbers = #tpu.dot_dimension_numbers<[1], [0], [0], [1], [0, 0, 1, 1], [], []>} : vector<256x16xf32>, vector<16x32xf32>, vector<256x32xf32> -> vector<256x32xf32>
    %c0_10 = arith.constant 0 : index
    %c0_11 = arith.constant 0 : index
    %10 = vector.load %arg5[%c0_10, %c0_11] : memref<1x32xf32, #tpu.memory_space<vmem>>, vector<1x32xf32>
    %11 = vector.broadcast %10 : vector<1x32xf32> to vector<256x32xf32>
    %12 = arith.addf %9, %11 : vector<256x32xf32>
    %13 = vector.shape_cast %7 : vector<32x32xf32> to vector<32x1x32xf32>
    %14 = vector.shape_cast %12 : vector<256x32xf32> to vector<32x8x32xf32>
    %15 = vector.broadcast %13 : vector<32x1x32xf32> to vector<32x8x32xf32>
    %16 = arith.addf %15, %14 : vector<32x8x32xf32>
    %cst_12 = arith.constant 0.000000e+00 : f32
    %17 = vector.broadcast %cst_12 : f32 to vector<32x8x32xf32>
    %18 = arith.maximumf %16, %17 : vector<32x8x32xf32>
    %cst_13 = arith.constant dense<0.000000e+00> : vector<32x8xf32>
    %19 = vector.multi_reduction <add>, %18, %cst_13 [2] : vector<32x8x32xf32> to vector<32x8xf32>
    %20 = vector.shape_cast %19 : vector<32x8xf32> to vector<32x8x1xf32>
    %cst_14 = arith.constant 3.200000e+01 : f32
    %21 = vector.broadcast %cst_14 : f32 to vector<32x8x1xf32>
    %22 = arith.divf %20, %21 : vector<32x8x1xf32>
    %23 = vector.broadcast %22 : vector<32x8x1xf32> to vector<32x8x32xf32>
    %24 = arith.subf %18, %23 : vector<32x8x32xf32>
    %25 = arith.mulf %24, %24 : vector<32x8x32xf32>
    %cst_15 = arith.constant dense<0.000000e+00> : vector<32x8xf32>
    %26 = vector.multi_reduction <add>, %25, %cst_15 [2] : vector<32x8x32xf32> to vector<32x8xf32>
    %27 = vector.shape_cast %26 : vector<32x8xf32> to vector<32x8x1xf32>
    %cst_16 = arith.constant 3.200000e+01 : f32
    %28 = vector.broadcast %cst_16 : f32 to vector<32x8x1xf32>
    %29 = arith.divf %27, %28 : vector<32x8x1xf32>
    %cst_17 = arith.constant 9.99999974E-6 : f32
    %30 = vector.broadcast %cst_17 : f32 to vector<32x8x1xf32>
    %31 = arith.addf %29, %30 : vector<32x8x1xf32>
    %32 = math.rsqrt %31 : vector<32x8x1xf32>
    %33 = vector.broadcast %32 : vector<32x8x1xf32> to vector<32x8x32xf32>
    %34 = arith.mulf %24, %33 : vector<32x8x32xf32>
    %cst_18 = arith.constant dense<0.000000e+00> : vector<32x32xf32>
    %35 = vector.multi_reduction <add>, %34, %cst_18 [1] : vector<32x8x32xf32> to vector<32x32xf32>
    %c0_19 = arith.constant 0 : index
    %c0_20 = arith.constant 0 : index
    %36 = vector.load %arg6[%c0_19, %c0_20] : memref<32x32xf32, #tpu.memory_space<vmem>>, vector<32x32xf32>
    %cst_21 = arith.constant dense<0.000000e+00> : vector<32x32xf32>
    %37 = tpu.matmul %35, %36, %cst_21 {dimension_numbers = #tpu.dot_dimension_numbers<[1], [0], [0], [1], [0, 0, 1, 1], [], []>} : vector<32x32xf32>, vector<32x32xf32>, vector<32x32xf32> -> vector<32x32xf32>
    %c0_22 = arith.constant 0 : index
    %c0_23 = arith.constant 0 : index
    %38 = vector.load %arg7[%c0_22, %c0_23] : memref<1x32xf32, #tpu.memory_space<vmem>>, vector<1x32xf32>
    %39 = vector.broadcast %38 : vector<1x32xf32> to vector<32x32xf32>
    %40 = arith.addf %37, %39 : vector<32x32xf32>
    %41 = vector.shape_cast %34 : vector<32x8x32xf32> to vector<256x32xf32>
    %c0_24 = arith.constant 0 : index
    %c0_25 = arith.constant 0 : index
    %42 = vector.load %arg8[%c0_24, %c0_25] : memref<32x32xf32, #tpu.memory_space<vmem>>, vector<32x32xf32>
    %cst_26 = arith.constant dense<0.000000e+00> : vector<256x32xf32>
    %43 = tpu.matmul %41, %42, %cst_26 {dimension_numbers = #tpu.dot_dimension_numbers<[1], [0], [0], [1], [0, 0, 1, 1], [], []>} : vector<256x32xf32>, vector<32x32xf32>, vector<256x32xf32> -> vector<256x32xf32>
    %c0_27 = arith.constant 0 : index
    %c0_28 = arith.constant 0 : index
    %44 = vector.load %arg9[%c0_27, %c0_28] : memref<1x32xf32, #tpu.memory_space<vmem>>, vector<1x32xf32>
    %45 = vector.broadcast %44 : vector<1x32xf32> to vector<256x32xf32>
    %46 = arith.addf %43, %45 : vector<256x32xf32>
    %47 = vector.shape_cast %40 : vector<32x32xf32> to vector<32x1x32xf32>
    %48 = vector.shape_cast %46 : vector<256x32xf32> to vector<32x8x32xf32>
    %49 = vector.broadcast %47 : vector<32x1x32xf32> to vector<32x8x32xf32>
    %50 = arith.addf %49, %48 : vector<32x8x32xf32>
    %cst_29 = arith.constant 0.000000e+00 : f32
    %51 = vector.broadcast %cst_29 : f32 to vector<32x8x32xf32>
    %52 = arith.maximumf %50, %51 : vector<32x8x32xf32>
    %cst_30 = arith.constant dense<0.000000e+00> : vector<32x8xf32>
    %53 = vector.multi_reduction <add>, %52, %cst_30 [2] : vector<32x8x32xf32> to vector<32x8xf32>
    %54 = vector.shape_cast %53 : vector<32x8xf32> to vector<32x8x1xf32>
    %cst_31 = arith.constant 3.200000e+01 : f32
    %55 = vector.broadcast %cst_31 : f32 to vector<32x8x1xf32>
    %56 = arith.divf %54, %55 : vector<32x8x1xf32>
    %57 = vector.broadcast %56 : vector<32x8x1xf32> to vector<32x8x32xf32>
    %58 = arith.subf %52, %57 : vector<32x8x32xf32>
    %59 = arith.mulf %58, %58 : vector<32x8x32xf32>
    %cst_32 = arith.constant dense<0.000000e+00> : vector<32x8xf32>
    %60 = vector.multi_reduction <add>, %59, %cst_32 [2] : vector<32x8x32xf32> to vector<32x8xf32>
    %61 = vector.shape_cast %60 : vector<32x8xf32> to vector<32x8x1xf32>
    %cst_33 = arith.constant 3.200000e+01 : f32
    %62 = vector.broadcast %cst_33 : f32 to vector<32x8x1xf32>
    %63 = arith.divf %61, %62 : vector<32x8x1xf32>
    %cst_34 = arith.constant 9.99999974E-6 : f32
    %64 = vector.broadcast %cst_34 : f32 to vector<32x8x1xf32>
    %65 = arith.addf %63, %64 : vector<32x8x1xf32>
    %66 = math.rsqrt %65 : vector<32x8x1xf32>
    %67 = vector.broadcast %66 : vector<32x8x1xf32> to vector<32x8x32xf32>
    %68 = arith.mulf %58, %67 : vector<32x8x32xf32>
    %cst_35 = arith.constant dense<0.000000e+00> : vector<32x32xf32>
    %69 = vector.multi_reduction <add>, %68, %cst_35 [1] : vector<32x8x32xf32> to vector<32x32xf32>
    %cst_36 = arith.constant 8.000000e+00 : f32
    %70 = vector.broadcast %cst_36 : f32 to vector<32x32xf32>
    %71 = arith.divf %69, %70 : vector<32x32xf32>
    %c0_37 = arith.constant 0 : index
    %c0_38 = arith.constant 0 : index
    %72 = vector.load %arg10[%c0_37, %c0_38] : memref<32x128xf32, #tpu.memory_space<vmem>>, vector<32x128xf32>
    %cst_39 = arith.constant dense<0.000000e+00> : vector<32x128xf32>
    %73 = tpu.matmul %71, %72, %cst_39 {dimension_numbers = #tpu.dot_dimension_numbers<[1], [0], [0], [1], [0, 0, 1, 1], [], []>} : vector<32x32xf32>, vector<32x128xf32>, vector<32x128xf32> -> vector<32x128xf32>
    %c0_40 = arith.constant 0 : index
    %c0_41 = arith.constant 0 : index
    %74 = vector.load %arg11[%c0_40, %c0_41] : memref<1x128xf32, #tpu.memory_space<vmem>>, vector<1x128xf32>
    %75 = vector.broadcast %74 : vector<1x128xf32> to vector<32x128xf32>
    %76 = arith.addf %73, %75 : vector<32x128xf32>
    %c0_42 = arith.constant 0 : index
    %c0_43 = arith.constant 0 : index
    %77 = vector.load %arg12[%c0_42, %c0_43] : memref<32x128xf32, #tpu.memory_space<vmem>>, vector<32x128xf32>
    tpu.vector_store %arg12[%c0_42, %c0_43], %76 {strides = array<i32>} : memref<32x128xf32, #tpu.memory_space<vmem>>, vector<32x128xf32>,
    return
  }
  func.func @transform_0(%arg0: i32) -> (i32, i32, i32) {
    %c0_i32 = arith.constant 0 : i32
    %c0_i32_0 = arith.constant 0 : i32
    %c0_i32_1 = arith.constant 0 : i32
    return %arg0, %c0_i32, %c0_i32_0 : i32, i32, i32
  }
  func.func @transform_1(%arg0: i32) -> (i32, i32) {
    %c0_i32 = arith.constant 0 : i32
    %c0_i32_0 = arith.constant 0 : i32
    %c0_i32_1 = arith.constant 0 : i32
    return %c0_i32, %c0_i32_0 : i32, i32
  }
  func.func @transform_2(%arg0: i32) -> (i32, i32) {
    %c0_i32 = arith.constant 0 : i32
    %c0_i32_0 = arith.constant 0 : i32
    %c0_i32_1 = arith.constant 0 : i32
    return %c0_i32, %c0_i32_0 : i32, i32
  }
  func.func @transform_3(%arg0: i32) -> (i32, i32) {
    %c0_i32 = arith.constant 0 : i32
    %c0_i32_0 = arith.constant 0 : i32
    %c0_i32_1 = arith.constant 0 : i32
    return %c0_i32, %c0_i32_0 : i32, i32
  }
  func.func @transform_4(%arg0: i32) -> (i32, i32) {
    %c0_i32 = arith.constant 0 : i32
    %c0_i32_0 = arith.constant 0 : i32
    %c0_i32_1 = arith.constant 0 : i32
    return %c0_i32, %c0_i32_0 : i32, i32
  }
  func.func @transform_5(%arg0: i32) -> (i32, i32) {
    %c0_i32 = arith.constant 0 : i32
    %c0_i32_0 = arith.constant 0 : i32
    %c0_i32_1 = arith.constant 0 : i32
    return %c0_i32, %c0_i32_0 : i32, i32
  }
  func.func @transform_6(%arg0: i32) -> (i32, i32) {
    %c0_i32 = arith.constant 0 : i32
    %c0_i32_0 = arith.constant 0 : i32
    %c0_i32_1 = arith.constant 0 : i32
    return %c0_i32, %c0_i32_0 : i32, i32
  }
  func.func @transform_7(%arg0: i32) -> (i32, i32) {
    %c0_i32 = arith.constant 0 : i32
    %c0_i32_0 = arith.constant 0 : i32
    %c0_i32_1 = arith.constant 0 : i32
    return %c0_i32, %c0_i32_0 : i32, i32
  }
  func.func @transform_8(%arg0: i32) -> (i32, i32) {
    %c0_i32 = arith.constant 0 : i32
    %c0_i32_0 = arith.constant 0 : i32
    %c0_i32_1 = arith.constant 0 : i32
    return %c0_i32, %c0_i32_0 : i32, i32
  }
  func.func @transform_9(%arg0: i32) -> (i32, i32) {
    %c0_i32 = arith.constant 0 : i32
    %c0_i32_0 = arith.constant 0 : i32
    %c0_i32_1 = arith.constant 0 : i32
    return %c0_i32, %c0_i32_0 : i32, i32
  }
  func.func @transform_10(%arg0: i32) -> (i32, i32) {
    %c0_i32 = arith.constant 0 : i32
    %c0_i32_0 = arith.constant 0 : i32
    %c0_i32_1 = arith.constant 0 : i32
    return %c0_i32, %c0_i32_0 : i32, i32
  }
  func.func @transform_11(%arg0: i32) -> (i32, i32) {
    %c0_i32 = arith.constant 0 : i32
    %c0_i32_0 = arith.constant 0 : i32
    return %arg0, %c0_i32 : i32, i32
  }
}

</mosaic_0001>

<bundles_post_ra>
// kernel: tpu_custom_call.1
= control target key start
LH: loop header
LB: loop body
LE: loop exit
PB: predicated region body
PF: predicated region fallthrough
CT: control target
= control target key end

     0   :  { %s6644_s0 = inlined_call_operand.vmem [shape: f32[64,8,16], index: 0, kind: input, shape index: {}]   ;;  %s6645_s1 = inlined_call_operand.vmem [shape: f32[16,32], index: 1, kind: input, shape index: {}]   ;;  %s6646_s2 = inlined_call_operand.vmem [shape: f32[1,32], index: 2, kind: input, shape index: {}]   ;;  %s6647_s3 = inlined_call_operand.vmem [shape: f32[16,32], index: 3, kind: input, shape index: {}]   ;;  %s6648_s4 = inlined_call_operand.vmem [shape: f32[1,32], index: 4, kind: input, shape index: {}]   ;;  %s6649_s5 = inlined_call_operand.vmem [shape: f32[32,32], index: 5, kind: input, shape index: {}]   ;;  %s6650_s6 = inlined_call_operand.vmem [shape: f32[1,32], index: 6, kind: input, shape index: {}]   ;;  %s6651_s7 = inlined_call_operand.vmem [shape: f32[32,32], index: 7, kind: input, shape index: {}]   ;;  %s6652_s8 = inlined_call_operand.vmem [shape: f32[1,32], index: 8, kind: input, shape index: {}]   ;;  %s6653_s9 = inlined_call_operand.vmem [shape: f32[32,128], index: 9, kind: input, shape index: {}]   ;;  %s6654_s10 = inlined_call_operand.vmem [shape: f32[1,128], index: 10, kind: input, shape index: {}]   ;;  %s6655_s11 = inlined_call_operand.hbm [shape: f32[64,128], index: 11, kind: output, shape index: {}]  }
   0x1   :  { %6695 = sst [smem:[#allocation16_spill]] %s6644_s0 }
   0x2   :  { %16 = vsyncpa [#allocation3], 0 }
   0x3   :  { %18 = vsyncpa [#allocation3 + $0x1], 0  ;;  %s4675_s17 = smov 0   ;;  %s4677_s18 = smov 0  }
   0x4   :  { %s4679_s19 = smov 0   ;;  %s4681_s20 = smov 0  }
   0x5 LB: > { %s4696_s21 = sadd.s32 4294967295, %s4609_s20   ;;  %s4047_s22 = sadd.s32 4294967294, %s4609_s20   ;;  %s4609_s20 = sphi %s4681_s20, %s6757_s20   ;;  %s4605_s19 = sphi %s4679_s19, %s6756_s19   ;;  %s4601_s18 = sphi %s4677_s18, %s6755_s18   ;;  %s4597_s17 = sphi %s4675_s17, %s6754_s17  }
   0x6   : > { %s4700_s23 = sadd.s32 1, %s4609_s20   ;;  %s267_s24 = sadd.s32 1, %s4605_s19 }
   0x7   : > { %s264_s25 = ssub.s32 %s4609_s20, %s4700_s23  ;;  %p277_p0 = scmp.ne.s32.totalorder %s4605_s19, %s4601_s18 }
   0x8   : > { %p265_p1 = scmp.eq.s32.totalorder %s264_s25, 0  ;;  %p278_p2 = scmp.eq.s32.totalorder %s4696_s21, 1 }
   0x9   : > { %p283_p3 = scmp.ne.s32.totalorder %s4601_s18, %s4597_s17  ;;  %p284_p4 = scmp.eq.s32.totalorder %s4047_s22, 1 }
   0xa   : > { %s4711_s26 = scalar_select %p265_p1, %s4605_s19, %s267_s24  }
   0xb   : > { %p4713_p5 = por %p278_p2, %p277_p0  ;;  %p4717_p6 = por %p284_p4, %p283_p3 }
   0xc   : > { %p4050_p7 = scmp.ge.s32.totalorder %s4609_s20, 1  ;;  %p341_p8 = scmp.lt.s32.totalorder %s4609_s20, 3 }
   0xe   : > { %p342_p9 = pnand %p4050_p7, %p341_p8 }
  0x10   : > { %345 = sbr.rel (%p342_p9) target bundleno = 1500 (0x5dc), region = 64 }
  0x15   : > { %v815_v0 = vld [vmem:[%s6647_s3 + $0x8] sm:$0xff]  ;;  %v814_v1 = vld [vmem:[%s6647_s3] sm:$0xff]  ;;  %s4052_s14 = sshll.u32 %s4696_s21, 5  ;;  %vm420_vm0 = vcmask 130048   ;;  %s6698_s0 = sld [smem:[#allocation16_spill]]  ;;  %vm686_vm1 = vcmask 1041409  }
  0x16   : > { %v646_v2 = vld [vmem:[%s6645_s1 + $0x8] sm:$0xff]  ;;  %4243 = vmatprep.subr.mxu1 %v815_v0  ;;  %p382_p10 = scmp.lt.s32.totalorder %s4052_s14, 63  ;;  %v645_v3 = vld [vmem:[%s6645_s1] sm:$0xff]  ;;  %vm688_vm2 = vcmask 1042434   ;;  %vm690_vm3 = vcmask 1043459   ;;  %vm692_vm4 = vcmask 1044484  }
  0x17   : > { %4233 = vmatprep.subr.mxu0 %v646_v2  ;;  %4244 = vmatpush3.msra.mxu1 %v815_v0  ;;  %vm694_vm5 = vcmask 1045509   ;;  %vm696_vm6 = vcmask 1046534   ;;  %vm698_vm7 = vcmask 1047559   ;;  %vm1568_vm8 = vcmask 261120   ;;  %s378_s15 = sand.u32 1, %s4601_s18   ;;  %s4140_s30 = sshll.u32 %s4696_s21, 9 }
  0x18   : > { %4234 = vmatpush3.msra.mxu0 %v646_v2  ;;  %4245 = vmatprep.subr.mxu1 %v814_v1  ;;  %s6759_s14 = smov (!%p382_p10, %s4052_s14), 63  ;;  %s4051_s16 = sshll.u32 %s378_s15, 5 }
  0x19   : > { %4235 = vmatprep.subr.mxu0 %v645_v3  ;;  %4246 = vmatpush3.msra.mxu1 %v814_v1  ;;  %s4053_s25 = sshll.u32 %s6759_s14, 3  ;;  %s6602_s14 = scalar_lea.hbm %s6655_s11, %s4140_s30 }
  0x1a   : > { %4236 = vmatpush3.msra.mxu0 %v645_v3  ;;  %s4612_s21 = smov [#allocation2]  }
  0x1b   : > { %s4739_s12 = scalar_lea.vmem %s6698_s0, %s4053_s25  ;;  %s380_s25 = scalar_lea.vmem [#allocation2], %s4051_s16 }
  0x1c   : > { %v388_v4 = vld [vmem:[%s4739_s12] sm:$0xff]  ;;  %v389_v5 = vld [vmem:[%s4739_s12 + $0x8] sm:$0xff]  ;;  %v390_v6 = vld [vmem:[%s4739_s12 + $0x10] sm:$0xff]  ;;  %s3985_s29 = sshll.u32 %s380_s25, 4  ;;  %s6604_s16 = scalar_lea.sflag [#allocation3], %s378_s15  ;;  %s6597_s29 = int_to_ptr.vmem [resolvable:$true] %s3985_s29 }
  0x1d   : > { %v421_v7 = vsel %vm420_vm0, %v388_v4, 0.0  ;;  %4247 = vmatprep.mubr.msk.f32.mxu1 %vm420_vm0, %v388_v4  ;;  %v428_v8 = vsel %vm420_vm0, %v389_v5, 0.0  ;;  %v435_v9 = vsel %vm420_vm0, %v390_v6, 0.0  ;;  %v391_v10 = vld [vmem:[%s4739_s12 + $0x18] sm:$0xff]  ;;  %v392_v11 = vld [vmem:[%s4739_s12 + $0x20] sm:$0xff]  ;;  %v393_v12 = vld [vmem:[%s4739_s12 + $0x28] sm:$0xff] }
  0x1e   : > { %v422_v13 = vrot.slane %v421_v7, 4  ;;  %v429_v14 = vrot.slane %v428_v8, 4  ;;  %4248 = vmatmul.mubr.msk.f32.vlgmr.msra.gmra.mxu1 %vm420_vm0, %v389_v5  ;;  %v436_v15 = vrot.slane %v435_v9, 4  ;;  %v442_v16 = vsel %vm420_vm0, %v391_v10, 0.0  ;;  %v394_v17 = vld [vmem:[%s4739_s12 + $0x30] sm:$0xff]  ;;  %v395_v18 = vld [vmem:[%s4739_s12 + $0x38] sm:$0xff] }
  0x1f   : > { %4250 = vmatprep.mubr.msk.f32.mxu1 %vm420_vm0, %v390_v6  ;;  %v443_v19 = vrot.slane %v442_v16, 4  ;;  %v449_v20 = vsel %vm420_vm0, %v392_v11, 0.0  ;;  %v456_v21 = vsel %vm420_vm0, %v393_v12, 0.0  ;;  %v463_v22 = vsel %vm420_vm0, %v394_v17, 0.0  ;;  %v396_v51 = vld [vmem:[%s4739_s12 + $0x40] sm:$0xff]  ;;  %v397_v52 = vld [vmem:[%s4739_s12 + $0x48] sm:$0xff] }
  0x20   : > { %v423_v23 = vadd.f32 %v422_v13, %v421_v7  ;;  %v430_v24 = vadd.f32 %v429_v14, %v428_v8  ;;  %v437_v25 = vadd.f32 %v436_v15, %v435_v9  ;;  %v450_v26 = vrot.slane %v449_v20, 4  ;;  %v398_v61 = vld [vmem:[%s4739_s12 + $0x50] sm:$0xff]  ;;  %v399_v6 = vld [vmem:[%s4739_s12 + $0x58] sm:$0xff]  ;;  %v400_v15 = vld [vmem:[%s4739_s12 + $0x60] sm:$0xff]  ;;  %s4549_s22 = scalar_lea.vmem %s6597_s29, 512  ;;  %s4553_s24 = sshll.u32 %s4612_s21, 4  ;;  %s4554_s24 = int_to_ptr.vmem [resolvable:$false] %s4553_s24 }
  0x21   : > { %v444_v27 = vadd.f32 %v443_v19, %v442_v16  ;;  %v457_v28 = vrot.slane %v456_v21, 4  ;;  %v464_v29 = vrot.slane %v463_v22, 4  ;;  %v470_v30 = vsel %vm420_vm0, %v395_v18, 0.0  ;;  %p4550_p11 = scmp.ne.s32.totalorder %s6597_s29, %s4549_s22  ;;  %s4555_s0 = scalar_lea.vmem %s4554_s24, 1024 }
  0x22   : > { %v424_v31 = vrot.slane %v423_v23, 2  ;;  %v431_v32 = vrot.slane %v430_v24, 2  ;;  %v438_v33 = vrot.slane %v437_v25, 2  ;;  %4251 = vmatmul.mubr.msk.f32.gmra.mxu1 %vm420_vm0, %v391_v10  ;;  %v451_v34 = vadd.f32 %v450_v26, %v449_v20  ;;  %p4556_p0 = scmp.lt.s32.totalorder %s6597_s29, %s4554_s24  ;;  %p4557_p1 = scmp.lt.s32.totalorder %s4555_s0, %s4549_s22 }
  0x23   : > { %v445_v35 = vrot.slane %v444_v27, 2  ;;  %4253 = vmatprep.mubr.msk.f32.mxu1 %vm420_vm0, %v392_v11  ;;  %v458_v36 = vadd.f32 %v457_v28, %v456_v21  ;;  %v465_v37 = vadd.f32 %v464_v29, %v463_v22  ;;  %v471_v38 = vrot.slane %v470_v30, 4  ;;  %p4551_p12 = pnand %p4550_p11, %p4713_p5 }
  0x24   : > { %v425_v39 = vadd.f32 %v424_v31, %v423_v23  ;;  %v432_v40 = vadd.f32 %v431_v32, %v430_v24  ;;  %v439_v41 = vadd.f32 %v438_v33, %v437_v25  ;;  %v452_v42 = vrot.slane %v451_v34, 2  ;;  %v401_v23 = vld [vmem:[%s4739_s12 + $0x68] sm:$0xff]  ;;  %v402_v32 = vld [vmem:[%s4739_s12 + $0x70] sm:$0xff]  ;;  %v403_v33 = vld [vmem:[%s4739_s12 + $0x78] sm:$0xff]  ;;  %p4558_p2 = por %p4557_p1, %p4556_p0 }
  0x25   : > { %v446_v43 = vadd.f32 %v445_v35, %v444_v27  ;;  %v459_v44 = vrot.slane %v458_v36, 2  ;;  %v466_v45 = vrot.slane %v465_v37, 2  ;;  %v472_v46 = vadd.f32 %v471_v38, %v470_v30  ;;  %p4552_p13 = pneg %p4551_p12 }
  0x26   : > { %v426_v47 = vrot.slane %v425_v39, 1  ;;  %v433_v48 = vrot.slane %v432_v40, 1  ;;  %v440_v49 = vrot.slane %v439_v41, 1  ;;  %v453_v50 = vadd.f32 %v452_v42, %v451_v34  ;;  %4254 = vmatmul.mubr.msk.f32.gmra.mxu1 %vm420_vm0, %v393_v12 }
  0x27   : > { %v447_v53 = vrot.slane %v446_v43, 1  ;;  %v460_v54 = vadd.f32 %v459_v44, %v458_v36  ;;  %v467_v55 = vadd.f32 %v466_v45, %v465_v37  ;;  %4256 = vmatprep.mubr.msk.f32.mxu1 %vm420_vm0, %v394_v17  ;;  %v473_v56 = vrot.slane %v472_v46, 2  ;;  %p4559_p3 = pnand %p4558_p2, %p4552_p13 }
  0x28   : > { %v427_v57 = vadd.f32 %v426_v47, %v425_v39  ;;  %v434_v58 = vadd.f32 %v433_v48, %v432_v40  ;;  %v441_v59 = vadd.f32 %v440_v49, %v439_v41  ;;  %v454_v60 = vrot.slane %v453_v50, 1  ;;  %v404_v47 = vld [vmem:[%s4739_s12 + $0x80] sm:$0xff] }
  0x29   : > { %v448_v62 = vadd.f32 %v447_v53, %v446_v43  ;;  %v461_v63 = vrot.slane %v460_v54, 1  ;;  %v477_v0 = vsel %vm420_vm0, %v396_v51, 0.0  ;;  %v484_v1 = vsel %vm420_vm0, %v397_v52, 0.0 }
  0x2a   : > { %v455_v2 = vadd.f32 %v454_v60, %v453_v50  ;;  %4257 = vmatmul.mubr.msk.f32.gmra.mxu1 %vm420_vm0, %v395_v18  ;;  %v478_v3 = vrot.slane %v477_v0, 4  ;;  %v485_v4 = vrot.slane %v484_v1, 4  ;;  %v468_v5 = vrot.slane %v467_v55, 1 }
  0x2b   : > { %4259 = vmatprep.mubr.msk.f32.mxu1 %vm420_vm0, %v396_v51  ;;  %v462_v7 = vadd.f32 %v461_v63, %v460_v54  ;;  %v474_v8 = vadd.f32 %v473_v56, %v472_v46  ;;  %v687_v9 = vsel %vm686_vm1, %v434_v58, %v427_v57  ;;  %v491_v10 = vsel %vm420_vm0, %v398_v61, 0.0  ;;  %v405_v56 = vld [vmem:[%s4739_s12 + $0x88] sm:$0xff] }
  0x2c   : > { %v479_v11 = vadd.f32 %v478_v3, %v477_v0  ;;  %v486_v12 = vadd.f32 %v485_v4, %v484_v1  ;;  %v469_v13 = vadd.f32 %v468_v5, %v467_v55  ;;  %v689_v14 = vsel %vm688_vm2, %v441_v59, %v687_v9  ;;  %v406_v5 = vld [vmem:[%s4739_s12 + $0x90] sm:$0xff] }
  0x2d   : > { %v475_v16 = vrot.slane %v474_v8, 1  ;;  %v691_v17 = vsel %vm690_vm3, %v448_v62, %v689_v14  ;;  %v492_v18 = vrot.slane %v491_v10, 4  ;;  %v498_v19 = vsel %vm420_vm0, %v399_v6, 0.0  ;;  %v407_v14 = vld [vmem:[%s4739_s12 + $0x98] sm:$0xff] }
  0x2e   : > { %v480_v20 = vrot.slane %v479_v11, 2  ;;  %v487_v21 = vrot.slane %v486_v12, 2  ;;  %4260 = vmatmul.mubr.msk.f32.gmra.mxu1 %vm420_vm0, %v397_v52  ;;  %v693_v22 = vsel %vm692_vm4, %v455_v2, %v691_v17  ;;  %v499_v24 = vrot.slane %v498_v19, 4 }
  0x2f   : > { %v476_v25 = vadd.f32 %v475_v16, %v474_v8  ;;  %v695_v26 = vsel %vm694_vm5, %v462_v7, %v693_v22  ;;  %v493_v27 = vadd.f32 %v492_v18, %v491_v10  ;;  %4262 = vmatprep.mubr.msk.f32.mxu1 %vm420_vm0, %v398_v61  ;;  %v505_v28 = vsel %vm420_vm0, %v400_v15, 0.0 }
  0x30   : > { %v481_v29 = vadd.f32 %v480_v20, %v479_v11  ;;  %v488_v30 = vadd.f32 %v487_v21, %v486_v12  ;;  %v697_v31 = vsel %vm696_vm6, %v469_v13, %v695_v26  ;;  %v500_v34 = vadd.f32 %v499_v24, %v498_v19 }
  0x31   : > { %v699_v35 = vsel %vm698_vm7, %v476_v25, %v697_v31  ;;  %v494_v36 = vrot.slane %v493_v27, 2  ;;  %v506_v37 = vrot.slane %v505_v28, 4  ;;  %v512_v38 = vsel %vm420_vm0, %v401_v23, 0.0 }
  0x32   : > { %v482_v39 = vrot.slane %v481_v29, 1  ;;  %v489_v40 = vrot.slane %v488_v30, 1  ;;  %4237 = vmatprep.mubr.msk.f32.mxu0 %vm420_vm0, %v699_v35  ;;  %v501_v41 = vrot.slane %v500_v34, 2  ;;  %v513_v42 = vrot.slane %v512_v38, 4  ;;  %4263 = vmatmul.mubr.msk.f32.gmra.mxu1 %vm420_vm0, %v399_v6 }
  0x33   : > { %v495_v43 = vadd.f32 %v494_v36, %v493_v27  ;;  %v507_v44 = vadd.f32 %v506_v37, %v505_v28  ;;  %v519_v45 = vsel %vm420_vm0, %v402_v32, 0.0  ;;  %v526_v46 = vsel %vm420_vm0, %v403_v33, 0.0  ;;  %4265 = vmatprep.mubr.msk.f32.mxu1 %vm420_vm0, %v400_v15 }
  0x34   : > { %v483_v48 = vadd.f32 %v482_v39, %v481_v29  ;;  %v490_v49 = vadd.f32 %v489_v40, %v488_v30  ;;  %v502_v50 = vadd.f32 %v501_v41, %v500_v34  ;;  %v514_v51 = vadd.f32 %v513_v42, %v512_v38 }
  0x35   : > { %v496_v52 = vrot.slane %v495_v43, 1  ;;  %v508_v53 = vrot.slane %v507_v44, 2  ;;  %v520_v54 = vrot.slane %v519_v45, 4  ;;  %v527_v55 = vrot.slane %v526_v46, 4 }
  0x36   : > { %v700_v57 = vsel %vm686_vm1, %v490_v49, %v483_v48  ;;  %v503_v58 = vrot.slane %v502_v50, 1  ;;  %v515_v59 = vrot.slane %v514_v51, 2  ;;  %4266 = vmatmul.mubr.msk.f32.gmra.mxu1 %vm420_vm0, %v401_v23  ;;  %v533_v60 = vsel %vm420_vm0, %v404_v47, 0.0  ;;  %v408_v23 = vld [vmem:[%s4739_s12 + $0xa0] sm:$0xff] }
  0x37   : > { %v497_v61 = vadd.f32 %v496_v52, %v495_v43  ;;  %v509_v62 = vadd.f32 %v508_v53, %v507_v44  ;;  %v521_v63 = vadd.f32 %v520_v54, %v519_v45  ;;  %v528_v0 = vadd.f32 %v527_v55, %v526_v46  ;;  %4268 = vmatprep.mubr.msk.f32.mxu1 %vm420_vm0, %v402_v32  ;;  %v409_v32 = vld [vmem:[%s4739_s12 + $0xa8] sm:$0xff]  ;;  %v411_v44 = vld [vmem:[%s4739_s12 + $0xb8] sm:$0xff] }
  0x38   : > { %v504_v1 = vadd.f32 %v503_v58, %v502_v50  ;;  %v516_v2 = vadd.f32 %v515_v59, %v514_v51  ;;  %v534_v3 = vrot.slane %v533_v60, 4  ;;  %v540_v4 = vsel %vm420_vm0, %v405_v56, 0.0 }
  0x39   : > { %v701_v6 = vsel %vm688_vm2, %v497_v61, %v700_v57  ;;  %v510_v7 = vrot.slane %v509_v62, 1  ;;  %v522_v8 = vrot.slane %v521_v63, 2  ;;  %v529_v9 = vrot.slane %v528_v0, 2 }
  0x3a   : > { %v517_v10 = vrot.slane %v516_v2, 1  ;;  %v702_v11 = vsel %vm690_vm3, %v504_v1, %v701_v6  ;;  %4269 = vmatmul.mubr.msk.f32.gmra.mxu1 %vm420_vm0, %v403_v33  ;;  %v535_v12 = vadd.f32 %v534_v3, %v533_v60  ;;  %v541_v13 = vrot.slane %v540_v4, 4  ;;  %v410_v33 = vld [vmem:[%s4739_s12 + $0xb0] sm:$0xff] }
  0x3b   : > { %v511_v15 = vadd.f32 %v510_v7, %v509_v62  ;;  %v523_v16 = vadd.f32 %v522_v8, %v521_v63  ;;  %v530_v17 = vadd.f32 %v529_v9, %v528_v0  ;;  %4271 = vmatprep.mubr.msk.f32.mxu1 %vm420_vm0, %v404_v47  ;;  %v547_v18 = vsel %vm420_vm0, %v406_v5, 0.0  ;;  %v412_v47 = vld [vmem:[%s4739_s12 + $0xc0] sm:$0xff]  ;;  %v413_v0 = vld [vmem:[%s4739_s12 + $0xc8] sm:$0xff]  ;;  %v414_v9 = vld [vmem:[%s4739_s12 + $0xd0] sm:$0xff] }
  0x3c   : > { %v518_v19 = vadd.f32 %v517_v10, %v516_v2  ;;  %v536_v20 = vrot.slane %v535_v12, 2  ;;  %v542_v21 = vadd.f32 %v541_v13, %v540_v4  ;;  %v548_v22 = vrot.slane %v547_v18, 4 }
  0x3d   : > { %v524_v24 = vrot.slane %v523_v16, 1  ;;  %v531_v25 = vrot.slane %v530_v17, 1  ;;  %v703_v26 = vsel %vm692_vm4, %v511_v15, %v702_v11  ;;  %v554_v27 = vsel %vm420_vm0, %v407_v14, 0.0 }
  0x3e   : > { %v704_v28 = vsel %vm694_vm5, %v518_v19, %v703_v26  ;;  %v537_v29 = vadd.f32 %v536_v20, %v535_v12  ;;  %v543_v30 = vrot.slane %v542_v21, 2  ;;  %4272 = vmatmul.mubr.msk.f32.gmra.mxu1 %vm420_vm0, %v405_v56  ;;  %v549_v31 = vadd.f32 %v548_v22, %v547_v18  ;;  %v415_v19 = vld [vmem:[%s4739_s12 + $0xd8] sm:$0xff] }
  0x3f   : > { %v525_v34 = vadd.f32 %v524_v24, %v523_v16  ;;  %v532_v35 = vadd.f32 %v531_v25, %v530_v17  ;;  %4274 = vmatprep.mubr.msk.f32.mxu1 %vm420_vm0, %v406_v5  ;;  %v555_v36 = vrot.slane %v554_v27, 4  ;;  %v561_v37 = vsel %vm420_vm0, %v408_v23, 0.0 }
  0x40   : > { %v538_v38 = vrot.slane %v537_v29, 1  ;;  %v544_v39 = vadd.f32 %v543_v30, %v542_v21  ;;  %v550_v40 = vrot.slane %v549_v31, 2  ;;  %v562_v41 = vrot.slane %v561_v37, 4 }
  0x41   : > { %v705_v42 = vsel %vm696_vm6, %v525_v34, %v704_v28  ;;  %v556_v43 = vadd.f32 %v555_v36, %v554_v27  ;;  %v568_v45 = vsel %vm420_vm0, %v409_v32, 0.0  ;;  %v575_v46 = vsel %vm420_vm0, %v410_v33, 0.0  ;;  %v416_v28 = vld [vmem:[%s4739_s12 + $0xe0] sm:$0xff] }
  0x42   : > { %v706_v48 = vsel %vm698_vm7, %v532_v35, %v705_v42  ;;  %v539_v49 = vadd.f32 %v538_v38, %v537_v29  ;;  %v545_v50 = vrot.slane %v544_v39, 1  ;;  %v551_v51 = vadd.f32 %v550_v40, %v549_v31  ;;  %4275 = vmatmul.mubr.msk.f32.gmra.mxu1 %vm420_vm0, %v407_v14  ;;  %v417_v29 = vld [vmem:[%s4739_s12 + $0xe8] sm:$0xff]  ;;  %v418_v42 = vld [vmem:[%s4739_s12 + $0xf0] sm:$0xff] }
  0x43   : > { %4238 = vmatmul.mubr.msk.f32.vlgmr.msra.gmra.mxu0 %vm420_vm0, %v706_v48  ;;  %v557_v52 = vrot.slane %v556_v43, 2  ;;  %v563_v53 = vadd.f32 %v562_v41, %v561_v37  ;;  %v569_v54 = vrot.slane %v568_v45, 4  ;;  %v576_v55 = vrot.slane %v575_v46, 4  ;;  %4277 = vmatprep.mubr.msk.f32.mxu1 %vm420_vm0, %v408_v23 }
  0x44   : > { %v546_v56 = vadd.f32 %v545_v50, %v544_v39  ;;  %v552_v57 = vrot.slane %v551_v51, 1  ;;  %v582_v58 = vsel %vm420_vm0, %v411_v44, 0.0  ;;  %v589_v59 = vsel %vm420_vm0, %v412_v47, 0.0 }
  0x45   : > { %v558_v60 = vadd.f32 %v557_v52, %v556_v43  ;;  %v564_v61 = vrot.slane %v563_v53, 2  ;;  %v570_v62 = vadd.f32 %v569_v54, %v568_v45  ;;  %v577_v63 = vadd.f32 %v576_v55, %v575_v46  ;;  %v419_v43 = vld [vmem:[%s4739_s12 + $0xf8] sm:$0xff] }
  0x46   : > { %v707_v1 = vsel %vm686_vm1, %v546_v56, %v539_v49  ;;  %v553_v2 = vadd.f32 %v552_v57, %v551_v51  ;;  %v583_v3 = vrot.slane %v582_v58, 4  ;;  %v590_v4 = vrot.slane %v589_v59, 4  ;;  %4278 = vmatmul.mubr.msk.f32.gmra.mxu1 %vm420_vm0, %v409_v32 }
  0x47   : > { %v559_v5 = vrot.slane %v558_v60, 1  ;;  %v565_v6 = vadd.f32 %v564_v61, %v563_v53  ;;  %v571_v7 = vrot.slane %v570_v62, 2  ;;  %v578_v8 = vrot.slane %v577_v63, 2  ;;  %4280 = vmatprep.mubr.msk.f32.mxu1 %vm420_vm0, %v410_v33 }
  0x48   : > { %v708_v10 = vsel %vm688_vm2, %v553_v2, %v707_v1  ;;  %v584_v11 = vadd.f32 %v583_v3, %v582_v58  ;;  %v591_v12 = vadd.f32 %v590_v4, %v589_v59  ;;  %v596_v13 = vsel %vm420_vm0, %v413_v0, 0.0 }
  0x49   : > { %v560_v14 = vadd.f32 %v559_v5, %v558_v60  ;;  %v566_v15 = vrot.slane %v565_v6, 1  ;;  %v572_v16 = vadd.f32 %v571_v7, %v570_v62  ;;  %v579_v17 = vadd.f32 %v578_v8, %v577_v63 }
  0x4a   : > { %v585_v18 = vrot.slane %v584_v11, 2  ;;  %v592_v20 = vrot.slane %v591_v12, 2  ;;  %v597_v21 = vrot.slane %v596_v13, 4  ;;  %v603_v22 = vsel %vm420_vm0, %v414_v9, 0.0  ;;  %4281 = vmatmul.mubr.msk.f32.gmra.mxu1 %vm420_vm0, %v411_v44 }
  0x4b   : > { %v567_v23 = vadd.f32 %v566_v15, %v565_v6  ;;  %v573_v24 = vrot.slane %v572_v16, 1  ;;  %v580_v25 = vrot.slane %v579_v17, 1  ;;  %v709_v26 = vsel %vm690_vm3, %v560_v14, %v708_v10  ;;  %4283 = vmatprep.mubr.msk.f32.mxu1 %vm420_vm0, %v412_v47 }
  0x4c   : > { %v586_v27 = vadd.f32 %v585_v18, %v584_v11  ;;  %v593_v30 = vadd.f32 %v592_v20, %v591_v12  ;;  %v598_v31 = vadd.f32 %v597_v21, %v596_v13  ;;  %v604_v32 = vrot.slane %v603_v22, 4 }
  0x4d   : > { %v574_v33 = vadd.f32 %v573_v24, %v572_v16  ;;  %v581_v34 = vadd.f32 %v580_v25, %v579_v17  ;;  %v710_v35 = vsel %vm692_vm4, %v567_v23, %v709_v26  ;;  %v610_v36 = vsel %vm420_vm0, %v415_v19, 0.0 }
  0x4e   : > { %v587_v37 = vrot.slane %v586_v27, 1  ;;  %v594_v38 = vrot.slane %v593_v30, 1  ;;  %v599_v39 = vrot.slane %v598_v31, 2  ;;  %v605_v40 = vadd.f32 %v604_v32, %v603_v22  ;;  %4284 = vmatmul.mubr.msk.f32.gmra.mxu1 %vm420_vm0, %v413_v0 }
  0x4f   : > { %v711_v41 = vsel %vm694_vm5, %v574_v33, %v710_v35  ;;  %v611_v44 = vrot.slane %v610_v36, 4  ;;  %v617_v45 = vsel %vm420_vm0, %v416_v28, 0.0  ;;  %v624_v46 = vsel %vm420_vm0, %v417_v29, 0.0  ;;  %4286 = vmatprep.mubr.msk.f32.mxu1 %vm420_vm0, %v414_v9 }
  0x50   : > { %v588_v47 = vadd.f32 %v587_v37, %v586_v27  ;;  %v712_v48 = vsel %vm696_vm6, %v581_v34, %v711_v41  ;;  %v595_v49 = vadd.f32 %v594_v38, %v593_v30  ;;  %v600_v50 = vadd.f32 %v599_v39, %v598_v31 }
  0x51   : > { %v606_v51 = vrot.slane %v605_v40, 2  ;;  %v612_v52 = vadd.f32 %v611_v44, %v610_v36  ;;  %v618_v53 = vrot.slane %v617_v45, 4  ;;  %v625_v54 = vrot.slane %v624_v46, 4 }
  0x52   : > { %v713_v55 = vsel %vm698_vm7, %v588_v47, %v712_v48  ;;  %v601_v56 = vrot.slane %v600_v50, 1  ;;  %v631_v57 = vsel %vm420_vm0, %v418_v42, 0.0  ;;  %v638_v58 = vsel %vm420_vm0, %v419_v43, 0.0  ;;  %4287 = vmatmul.mubr.msk.f32.gmra.mxu1 %vm420_vm0, %v415_v19 }
  0x53   : > { %4240 = vmatprep.mubr.msk.f32.mxu0 %vm420_vm0, %v713_v55  ;;  %v607_v59 = vadd.f32 %v606_v51, %v605_v40  ;;  %v613_v60 = vrot.slane %v612_v52, 2  ;;  %v619_v61 = vadd.f32 %v618_v53, %v617_v45  ;;  %v626_v62 = vadd.f32 %v625_v54, %v624_v46  ;;  %4289 = vmatprep.mubr.msk.f32.mxu1 %vm420_vm0, %v416_v28  ;;  %v4886_v51 = vld [vmem:[%s6646_s2] ss:$0 sm:$0xff] }
  0x54   : > { %v602_v63 = vadd.f32 %v601_v56, %v600_v50  ;;  %v632_v0 = vrot.slane %v631_v57, 4  ;;  %v639_v1 = vrot.slane %v638_v58, 4  ;;  %v4611_v44 = vmov 1966171168  }
  0x55   : > { %v608_v2 = vrot.slane %v607_v59, 1  ;;  %v614_v3 = vadd.f32 %v613_v60, %v612_v52  ;;  %v620_v4 = vrot.slane %v619_v61, 2  ;;  %v627_v5 = vrot.slane %v626_v62, 2 }
  0x56   : > { %v633_v6 = vadd.f32 %v632_v0, %v631_v57  ;;  %v640_v7 = vadd.f32 %v639_v1, %v638_v58  ;;  %v714_v8 = vsel %vm686_vm1, %v602_v63, %v595_v49  ;;  %4290 = vmatmul.mubr.msk.f32.gmra.mxu1 %vm420_vm0, %v417_v29  ;;  %v1150_v45 = vunpack.c.l.s4 %v4611_v44 }
  0x57   : > { %v609_v9 = vadd.f32 %v608_v2, %v607_v59  ;;  %v615_v10 = vrot.slane %v614_v3, 1  ;;  %v621_v11 = vadd.f32 %v620_v4, %v619_v61  ;;  %v628_v12 = vadd.f32 %v627_v5, %v626_v62  ;;  %4292 = vmatprep.mubr.msk.f32.mxu1 %vm420_vm0, %v418_v42  ;;  %v4906_v2 = vld [vmem:[%s6648_s4] ss:$0 sm:$0xff] }
  0x58   : > { %v634_v13 = vrot.slane %v633_v6, 2  ;;  %v641_v14 = vrot.slane %v640_v7, 2  ;;  %v1152_v46 = vlaneseq  ;;  %v1151_v48 = vunpack.c.0.s8 %v1150_v45 }
  0x59   : > { %v616_v15 = vadd.f32 %v615_v10, %v614_v3  ;;  %v622_v16 = vrot.slane %v621_v11, 1  ;;  %v629_v17 = vrot.slane %v628_v12, 1  ;;  %v715_v18 = vsel %vm688_vm2, %v609_v9, %v714_v8 }
  0x5a   : > { %v635_v19 = vadd.f32 %v634_v13, %v633_v6  ;;  %v642_v20 = vadd.f32 %v641_v14, %v640_v7  ;;  %4293 = vmatmul.mubr.msk.f32.gmra.mxu1 %vm420_vm0, %v419_v43  ;;  %v1153_v49 = vshrl.u32 %v1152_v46, 7 }
  0x5b   : > { %v623_v21 = vadd.f32 %v622_v16, %v621_v11  ;;  %v630_v22 = vadd.f32 %v629_v17, %v628_v12  ;;  %v716_v23 = vsel %vm690_vm3, %v616_v15, %v715_v18 }
  0x5c   : > { %v636_v24 = vrot.slane %v635_v19, 1  ;;  %v643_v25 = vrot.slane %v642_v20, 1  ;;  %v4888_v52 = vsub.s32 %v1151_v48, %v1153_v49  ;;  %v4895_v61 = vsub.s32 0, %v1153_v49 }
  0x5d   : > { %v717_v26 = vsel %vm692_vm4, %v623_v21, %v716_v23 }
  0x5e   : > { %v637_v27 = vadd.f32 %v636_v24, %v635_v19  ;;  %v644_v28 = vadd.f32 %v643_v25, %v642_v20  ;;  %v718_v29 = vsel %vm694_vm5, %v630_v22, %v717_v26  ;;  %6699 = vst [vmem:[#allocation5_spill] sm:$0xff] %v4888_v52  ;;  %6700 = vst [vmem:[#allocation6_spill] sm:$0xff] %v4895_v61 }
  0x60   : > { %v719_v30 = vsel %vm696_vm6, %v637_v27, %v718_v29 }
  0x61   : > { %v720_v31 = vsel %vm698_vm7, %v644_v28, %v719_v30 }
  0x62   : > { %4241 = vmatmul.mubr.msk.f32.gmra.mxu0 %vm420_vm0, %v720_v31 }
  0xde   : > { %v4869_v32 = vpop.f32.mrf.mxu1 }
  0xe0   : > { %v985_v33 = vpop.f32.mrf.mxu1 }
  0xe1   : > { %v986_v15 = vadd.f32 %v4906_v2, %v985_v33 }
  0xe2   : > { %v4871_v34 = vpop.f32.mrf.mxu1 }
  0xe4   : > { %v995_v35 = vpop.f32.mrf.mxu1 }
  0xe5   : > { %v996_v19 = vadd.f32 %v4906_v2, %v995_v35 }
  0xe6   : > { %v4873_v36 = vpop.f32.mrf.mxu1 }
  0xe8   : > { %v1005_v37 = vpop.f32.mrf.mxu1 }
  0xe9   : > { %v1006_v33 = vadd.f32 %v4906_v2, %v1005_v37 }
  0xea   : > { %v4875_v38 = vpop.f32.mrf.mxu1 }
  0xec   : > { %v4877_v39 = vpop.f32.mrf.mxu1 }
  0xee   : > { %v4261_v40 = vpop.f32.mrf.mxu1 }
  0xef   : > { %v1031_v20 = vadd.f32 %v4261_v40, %v4906_v2 }
  0xf0   : > { %v1025_v41 = vpop.f32.mrf.mxu1 }
  0xf1   : > { %v1026_v5 = vadd.f32 %v4906_v2, %v1025_v41 }
  0xf2   : > { %v4879_v42 = vpop.f32.mrf.mxu1 }
  0xf4   : > { %v1035_v43 = vpop.f32.mrf.mxu1 }
  0xf5   : > { %v1036_v21 = vadd.f32 %v4906_v2, %v1035_v43 }
  0xf6   : > { %v4881_v47 = vpop.f32.mrf.mxu1 }
  0xf8   : > { %v1045_v50 = vpop.f32.mrf.mxu1 }
  0xf9   : > { %v1046_v44 = vadd.f32 %v4906_v2, %v1045_v50 }
  0xfa   : > { %v4890_v53 = vpop.f32.mrf.mxu1 }
  0xfc   : > { %v1055_v60 = vpop.f32.mrf.mxu1 }
  0xfd   : > { %v1056_v24 = vadd.f32 %v4906_v2, %v1055_v60 }
  0xfe   : > { %v4901_v1 = vpop.f32.mrf.mxu1 }
 0x100   : > { %v4915_v11 = vpop.f32.mrf.mxu1 }
 0x102   : > { %v4934_v27 = vpop.f32.mrf.mxu1 }
 0x103   : > { %v4239_v54 = vpop.f32.mrf.mxu0 }
 0x104   : > { %v801_v55 = vadd.f32 %v4239_v54, %v4886_v51 }
 0x105   : > { %v795_v56 = vpop.f32.mrf.mxu0 }
 0x106   : > { %v1197_v57 = vcombine.high %v801_v55, %v801_v55  ;;  %v1204_v58 = vrot.slane %v801_v55, %v4888_v52  ;;  %v796_v59 = vadd.f32 %v4886_v51, %v795_v56  ;;  %v4960_v55 = vpop.f32.mrf.mxu1 }
 0x108   : > { %v4898_v62 = vrot.slane %v1197_v57, %v4888_v52  ;;  %v1220_v63 = vrot.slane %v1204_v58, %v4888_v52  ;;  %v1148_v0 = vcombine.high %v796_v59, %v796_v59  ;;  %v1212_v3 = vcombine.high %v1204_v58, %v1204_v58 }
 0x109   : > { %v1155_v4 = vrot.slane %v796_v59, %v4888_v52 }
 0x10a   : > { %v1162_v6 = vrot.slane %v1148_v0, %v4888_v52  ;;  %v1227_v8 = vrot.slane %v4898_v62, %v4888_v52  ;;  %v1379_v9 = vrot.slane %v1220_v63, %v4895_v61  ;;  %v1242_v10 = vcombine.high %v1220_v63, %v1220_v63 }
 0x10b   : > { %v1171_v7 = vrot.slane %v1155_v4, %v4888_v52  ;;  %v4918_v12 = vrot.slane %v1212_v3, %v4888_v52  ;;  %v1163_v13 = vcombine.high %v1155_v4, %v1155_v4  ;;  %v1001_v63 = vadd.f32 %v4871_v34, %v4906_v2 }
 0x10c   : > { %v4922_v16 = vrot.slane %v1162_v6, %v4888_v52  ;;  %v1243_v17 = vcombine.high %v1227_v8, %v1227_v8  ;;  %v4924_v18 = vadd.f32 %v1379_v9, %v1026_v5  ;;  %v1387_v23 = vrot.slane %v1242_v10, %v4895_v61 }
 0x10d   : > { %v1193_v14 = vcombine.high %v1171_v7, %v1171_v7  ;;  %v1347_v22 = vrot.slane %v1171_v7, %v4895_v61  ;;  %v1185_v28 = vrot.slane %v1163_v13, %v4888_v52  ;;  %v1383_v31 = vrot.slane %v4918_v12, %v4895_v61 }
 0x10e   : > { %v1544_v25 = vmax.f32 %v4924_v18, 0.0  ;;  %v1403_v29 = vrot.slane %v1243_v17, %v4895_v61  ;;  %v1363_v41 = vrot.slane %v4922_v16, %v4895_v61  ;;  %v1164_v43 = vcombine.high %v1162_v6, %v1162_v6  ;;  %v4981_v6 = vpop.f32.mrf.mxu1 }
 0x10f   : > { %v1355_v26 = vrot.slane %v1193_v14, %v4895_v61  ;;  %v4938_v30 = vadd.f32 %v1347_v22, %v986_v15  ;;  %v4952_v46 = vadd.f32 %v1383_v31, %v1031_v20  ;;  %v4954_v48 = vadd.f32 %v1387_v23, %v1036_v21 }
 0x110   : > { %v1593_v35 = vsel %vm1568_vm8, %v1544_v25, 0.0  ;;  %v1395_v37 = vrot.slane %v1227_v8, %v4895_v61  ;;  %v4958_v54 = vadd.f32 %v1363_v41, %v1006_v33  ;;  %v4962_v56 = vadd.f32 %v1403_v29, %v1056_v24  ;;  %v5008_v21 = vpop.f32.mrf.mxu1 }
 0x111   : > { %v4946_v40 = vadd.f32 %v1355_v26, %v996_v19  ;;  %1594 = vadd.xlane.f32.xlu1 %v1593_v35  ;;  %v1536_v45 = vmax.f32 %v4938_v30, 0.0  ;;  %v1545_v57 = vmax.f32 %v4952_v46, 0.0  ;;  %v1195_v58 = vcombine.high %v1185_v28, %v1185_v28 }
 0x112   : > { %v1540_v60 = vmax.f32 %v4958_v54, 0.0  ;;  %v1213_v3 = vcombine.high %v4898_v62, %v4898_v62  ;;  %v1244_v4 = vcombine.high %v4918_v12, %v4918_v12  ;;  %v4979_v5 = vadd.f32 %v1395_v37, %v1046_v44  ;;  %v5029_v33 = vpop.f32.mrf.mxu1 }
 0x113   : > { %v1538_v49 = vmax.f32 %v4946_v40, 0.0  ;;  %v1569_v50 = vsel %vm1568_vm8, %v1536_v45, 0.0  ;;  %v1359_v0 = vrot.slane %v1195_v58, %v4895_v61  ;;  %v4984_v7 = vrot.slane %v1164_v43, %v4888_v52 }
 0x114   : > { %1570 = vadd.xlane.f32.xlu0 %v1569_v50  ;;  %v1596_v34 = vsel %vm1568_vm8, %v1545_v57, 0.0  ;;  %v1546_v8 = vmax.f32 %v4954_v48, 0.0  ;;  %v1550_v9 = vmax.f32 %v4962_v56, 0.0  ;;  %v1351_v62 = vrot.slane %v1185_v28, %v4895_v61 }
 0x115   : > { %v1575_v59 = vsel %vm1568_vm8, %v1538_v49, 0.0  ;;  %v1581_v10 = vsel %vm1568_vm8, %v1540_v60, 0.0  ;;  %v4995_v12 = vadd.f32 %v1359_v0, %v1001_v63  ;;  %v1367_v13 = vrot.slane %v4984_v7, %v4895_v61  ;;  %v5047_v0 = vpop.f32.mrf.mxu1 }
 0x116   : > { %1576 = vadd.xlane.f32.xlu1 %v1575_v59  ;;  %v1194_v14 = vcombine.high %v4922_v16, %v4922_v16  ;;  %v991_v15 = vadd.f32 %v4869_v32, %v4906_v2  ;;  %v1011_v17 = vadd.f32 %v4873_v36, %v4906_v2  ;;  %v1041_v19 = vadd.f32 %v4879_v42, %v4906_v2 }
 0x117   : > { %v1241_v20 = vrot.slane %v1213_v3, %v4888_v52  ;;  %v1391_v22 = vrot.slane %v1244_v4, %v4895_v61  ;;  %v1599_v16 = vsel %vm1568_vm8, %v1546_v8, 0.0  ;;  %v1548_v23 = vmax.f32 %v4979_v5, 0.0 }
 0x118   : > { %1597 = vadd.xlane.f32.xlu0 %v1596_v34  ;;  %v5015_v32 = vadd.f32 %v1351_v62, %v991_v15  ;;  %v1611_v36 = vsel %vm1568_vm8, %v1550_v9, 0.0  ;;  %v1539_v42 = vmax.f32 %v4995_v12, 0.0  ;;  %v5021_v24 = vadd.f32 %v1367_v13, %v1011_v17  ;;  %v5060_v15 = vpop.f32.mrf.mxu1 }
 0x119   : > { %v1371_v26 = vrot.slane %v1194_v14, %v4895_v61  ;;  %v1016_v28 = vadd.f32 %v4906_v2, %v4877_v39  ;;  %v1051_v29 = vadd.f32 %v4881_v47, %v4906_v2  ;;  %v1399_v31 = vrot.slane %v1241_v20, %v4895_v61 }
 0x11a   : > { %1582 = vadd.xlane.f32.xlu1 %v1581_v10  ;;  %v5031_v35 = vadd.f32 %v1391_v22, %v1041_v19  ;;  %v1245_v41 = vcombine.high %v1241_v20, %v1241_v20  ;;  %v1605_v43 = vsel %vm1568_vm8, %v1548_v23, 0.0  ;;  %v1537_v44 = vmax.f32 %v5015_v32, 0.0 }
 0x11b   : > { %v1578_v39 = vsel %vm1568_vm8, %v1539_v42, 0.0  ;;  %v6660_v47 = vmax.f32 %v5021_v24, 0.0  ;;  %v5041_v50 = vadd.f32 %v1371_v26, %v1016_v28  ;;  %v5043_v58 = vadd.f32 %v1399_v31, %v1051_v29 }
 0x11c   : > { %1600 = vadd.xlane.f32.xlu0 %v1599_v16  ;;  %v1061_v59 = vadd.f32 %v4890_v53, %v4906_v2  ;;  %v1407_v3 = vrot.slane %v1245_v41, %v4895_v61  ;;  %v1572_v34 = vsel %vm1568_vm8, %v1537_v44, 0.0  ;;  %v1547_v62 = vmax.f32 %v5031_v35, 0.0 }
 0x11d   : > { %v1584_v10 = vsel %vm1568_vm8, %v6660_v47, 0.0  ;;  %v6656_v53 = vmax.f32 %v5041_v50, 0.0  ;;  %v6661_v17 = vmax.f32 %v5043_v58, 0.0  ;;  %v1066_v31 = vadd.f32 %v4906_v2, %v4915_v11 }
 0x11e   : > { %1612 = vadd.xlane.f32.xlu1 %v1611_v36  ;;  %v5063_v19 = vadd.f32 %v1407_v3, %v1061_v59  ;;  %v1602_v16 = vsel %vm1568_vm8, %v1547_v62, 0.0  ;;  %v1091_v3 = vadd.f32 %v4981_v6, %v4906_v2 }
 0x11f   : > { %v1587_v26 = vsel %vm1568_vm8, %v6656_v53, 0.0  ;;  %v1608_v41 = vsel %vm1568_vm8, %v6661_v17, 0.0 }
 0x120   : > { %1606 = vadd.xlane.f32.xlu0 %v1605_v43  ;;  %v1196_v43 = vcombine.high %v4984_v7, %v4984_v7  ;;  %v1076_v7 = vadd.f32 %v4906_v2, %v4960_v55 }
 0x122   : > { %v4242_v37 = vpop.f32.mrf.mxu0  ;;  %1579 = vadd.xlane.f32.xlu1 %v1578_v39 }
 0x123   : > { %v811_v20 = vadd.f32 %v4242_v37, %v4886_v51 }
 0x124   : > { %v805_v63 = vpop.f32.mrf.mxu0  ;;  %1573 = vadd.xlane.f32.xlu0 %v1572_v34  ;;  %v1021_v34 = vadd.f32 %v4875_v38, %v4906_v2  ;;  %v1086_v38 = vadd.f32 %v4906_v2, %v5008_v21 }
 0x125   : > { %v806_v4 = vadd.f32 %v4886_v51, %v805_v63  ;;  %v1105_v51 = vpop.f32.mrf.mxu1  ;;  %v1302_v37 = vrot.slane %v811_v20, %v4888_v52  ;;  %v6657_v63 = vmax.f32 %v5063_v19, 0.0  ;;  %v1295_v6 = vcombine.high %v811_v20, %v811_v20 }
 0x126   : > { %1585 = vadd.xlane.f32.xlu1 %v1584_v10 }
 0x127   : > { %v1246_v13 = vcombine.high %v806_v4, %v806_v4  ;;  %v1253_v14 = vrot.slane %v806_v4, %v4888_v52  ;;  %v1614_v55 = vsel %vm1568_vm8, %v6657_v63, 0.0  ;;  %v1318_v53 = vrot.slane %v1302_v37, %v4888_v52 }
 0x128   : > { %1603 = vadd.xlane.f32.xlu0 %v1602_v16  ;;  %v4288_v16 = vpop.f32.mrf.mxu1 }
 0x129   : > { %v1260_v22 = vrot.slane %v1246_v13, %v4888_v52  ;;  %v1269_v36 = vrot.slane %v1253_v14, %v4888_v52  ;;  %v1261_v28 = vcombine.high %v1253_v14, %v1253_v14  ;;  %v1071_v14 = vadd.f32 %v4901_v1, %v4906_v2 }
 0x12a   : > { %1588 = vadd.xlane.f32.xlu1 %v1587_v26  ;;  %v1310_v26 = vcombine.high %v1302_v37, %v1302_v37  ;;  %v1096_v37 = vadd.f32 %v4906_v2, %v5047_v0  ;;  %v1443_v0 = vrot.slane %v1318_v53, %v4895_v61 }
 0x12b   : > { %v1262_v29 = vcombine.high %v1260_v22, %v1260_v22  ;;  %v1291_v39 = vcombine.high %v1269_v36, %v1269_v36  ;;  %v1276_v11 = vrot.slane %v1260_v22, %v4888_v52  ;;  %v1411_v4 = vrot.slane %v1269_v36, %v4895_v61 }
 0x12c   : > { %1609 = vadd.xlane.f32.xlu0 %v1608_v41  ;;  %v1283_v10 = vrot.slane %v1261_v28, %v4888_v52  ;;  %v1375_v36 = vrot.slane %v1196_v43, %v4895_v61  ;;  %v1081_v41 = vadd.f32 %v4934_v27, %v4906_v2 }
 0x12d   : > { %v5083_v59 = vrot.slane %v1262_v29, %v4888_v52  ;;  %v5099_v22 = vadd.f32 %v1411_v4, %v1066_v31  ;;  %v1419_v28 = vrot.slane %v1291_v39, %v4895_v61  ;;  %v1427_v1 = vrot.slane %v1276_v11, %v4895_v61  ;;  %v1115_v39 = vpop.f32.mrf.mxu1 }
 0x12e   : > { %v1292_v20 = vcombine.high %v1276_v11, %v1276_v11  ;;  %v1415_v21 = vrot.slane %v1283_v10, %v4895_v61  ;;  %v1309_v4 = vrot.slane %v1295_v6, %v4888_v52  ;;  %v5122_v11 = vadd.f32 %v1375_v36, %v1021_v34 }
 0x12f   : > { %v1431_v13 = vrot.slane %v5083_v59, %v4895_v61  ;;  %v6659_v31 = vmax.f32 %v5099_v22, 0.0  ;;  %v5114_v43 = vadd.f32 %v1419_v28, %v1076_v7  ;;  %v5128_v28 = vadd.f32 %v1427_v1, %v1086_v38  ;;  %v4291_v38 = vpop.f32.mrf.mxu1 }
 0x130   : > { %1615 = vadd.xlane.f32.xlu0 %v1614_v55  ;;  %v5126_v7 = vadd.f32 %v1415_v21, %v1071_v14  ;;  %v1293_v55 = vcombine.high %v1283_v10, %v1283_v10  ;;  %v1435_v6 = vrot.slane %v1292_v20, %v4895_v61  ;;  %v1311_v14 = vcombine.high %v1309_v4, %v1309_v4 }
 0x131   : > { %v5108_v29 = vadd.f32 %v1431_v13, %v1091_v3  ;;  %v1617_v3 = vsel %vm1568_vm8, %v6659_v31, 0.0  ;;  %v1332_v13 = vrot.slane %v1310_v26, %v4888_v52  ;;  %v6658_v27 = vmax.f32 %v5114_v43, 0.0 }
 0x132   : > { %1618 = vadd.xlane.f32.xlu1 %v1617_v3  ;;  %v1553_v36 = vmax.f32 %v5126_v7, 0.0  ;;  %v1423_v26 = vrot.slane %v1293_v55, %v4895_v61  ;;  %v1106_v10 = vadd.f32 %v4906_v2, %v1105_v51  ;;  %v6665_v1 = vmax.f32 %v5122_v11, 0.0 }
 0x133   : > { %v6662_v63 = vmax.f32 %v5108_v29, 0.0  ;;  %v1623_v34 = vsel %vm1568_vm8, %v6658_v27, 0.0  ;;  %v1342_v21 = vcombine.high %v1332_v13, %v1332_v13  ;;  %v5147_v27 = vadd.f32 %v1435_v6, %v1096_v37 }
 0x134   : > { %v1620_v20 = vsel %vm1568_vm8, %v1553_v36, 0.0  ;;  %v5145_v3 = vadd.f32 %v1423_v26, %v1081_v41  ;;  %v6663_v55 = vmax.f32 %v5128_v28, 0.0  ;;  %v1340_v31 = vcombine.high %v1318_v53, %v1318_v53  ;;  %v1125_v26 = vpop.f32.mrf.mxu1 }
 0x135   : > { %1621 = vadd.xlane.f32.xlu0 %v1620_v20  ;;  %v1632_v51 = vsel %vm1568_vm8, %v6662_v63, 0.0  ;;  %v1447_v17 = vrot.slane %v1332_v13, %v4895_v61  ;;  %v1121_v41 = vadd.f32 %v4288_v16, %v4906_v2  ;;  %v5158_v37 = vadd.f32 %v1443_v0, %v1106_v10 }
 0x136   : > { %1624 = vadd.xlane.f32.xlu1 %v1623_v34  ;;  %v6664_v47 = vmax.f32 %v5145_v3, 0.0  ;;  %v1111_v34 = vadd.f32 %v5060_v15, %v4906_v2  ;;  %v1455_v6 = vrot.slane %v1342_v21, %v4895_v61  ;;  %v1339_v20 = vrot.slane %v1311_v14, %v4888_v52 }
 0x137   : > { %v1590_v53 = vsel %vm1568_vm8, %v6665_v1, 0.0  ;;  %v1629_v15 = vsel %vm1568_vm8, %v6663_v55, 0.0  ;;  %v1558_v13 = vmax.f32 %v5147_v27, 0.0  ;;  %v1116_v16 = vadd.f32 %v4906_v2, %v1115_v39 }
 0x138   : > { %v1451_v10 = vrot.slane %v1340_v31, %v4895_v61  ;;  %v1626_v14 = vsel %vm1568_vm8, %v6664_v47, 0.0  ;;  %v1294_v0 = vcombine.high %v5083_v59, %v5083_v59  ;;  %v5176_v21 = vadd.f32 %v1447_v17, %v1111_v34 }
 0x139   : > { %1591 = vadd.xlane.f32.xlu0 %v1590_v53  ;;  %v4294_v53 = vpop.f32.mrf.mxu1  ;;  %v5179_v63 = vadd.f32 %v1455_v6, %v1121_v41  ;;  %v1131_v55 = vadd.f32 %v4291_v38, %v4906_v2  ;;  %v1463_v39 = vrot.slane %v1339_v20, %v4895_v61  ;;  %v1560_v31 = vmax.f32 %v5158_v37, 0.0 }
 0x13a   : > { %1633 = vadd.xlane.f32.xlu1 %v1632_v51  ;;  %v1325_v51 = vrot.slane %v1309_v4, %v4888_v52  ;;  %v1635_v47 = vsel %vm1568_vm8, %v1558_v13, 0.0  ;;  %v1101_v17 = vadd.f32 %v5029_v33, %v4906_v2  ;;  %v5189_v59 = vadd.f32 %v1451_v10, %v1116_v16 }
 0x13b   : > { %v1126_v4 = vadd.f32 %v4906_v2, %v1125_v26  ;;  %v1439_v34 = vrot.slane %v1294_v0, %v4895_v61  ;;  %v1343_v41 = vcombine.high %v1339_v20, %v1339_v20  ;;  %v1135_v6 = vpop.f32.mrf.mxu1  ;;  %v1641_v33 = vsel %vm1568_vm8, %v1560_v31, 0.0 }
 0x13c   : > { %v1459_v38 = vrot.slane %v1325_v51, %v4895_v61  ;;  %v1341_v1 = vcombine.high %v1325_v51, %v1325_v51  ;;  %v1563_v16 = vmax.f32 %v5179_v63, 0.0  ;;  %v1141_v26 = vadd.f32 %v4294_v53, %v4906_v2 }
 0x13d   : > { %1627 = vadd.xlane.f32.xlu0 %v1626_v14  ;;  %v5195_v14 = vadd.f32 %v1463_v39, %v1131_v55  ;;  %v1136_v10 = vadd.f32 %v4906_v2, %v1135_v6  ;;  %v5203_v0 = vadd.f32 %v1439_v34, %v1101_v17  ;;  %v1471_v20 = vrot.slane %v1343_v41, %v4895_v61 }
 0x13e   : > { %1630 = vadd.xlane.f32.xlu1 %v1629_v15  ;;  %v1561_v15 = vmax.f32 %v5176_v21, 0.0  ;;  %v5210_v51 = vadd.f32 %v1459_v38, %v1126_v4  ;;  %v1467_v39 = vrot.slane %v1341_v1, %v4895_v61  ;;  %v1650_v53 = vsel %vm1568_vm8, %v1563_v16, 0.0 }
 0x13f   : > { %v1565_v2 = vmax.f32 %v5195_v14, 0.0  ;;  %v5217_v17 = vadd.f32 %v1471_v20, %v1141_v26  ;;  %v6666_v41 = vmax.f32 %v5203_v0, 0.0  ;;  %v6707_v7 = vmax.f32 %v5122_v11, 0.0 }
 0x140   : > { %v1644_v55 = vsel %vm1568_vm8, %v1561_v15, 0.0  ;;  %v5223_v4 = vadd.f32 %v1467_v39, %v1136_v10  ;;  %v6669_v38 = vmax.f32 %v5210_v51, 0.0 }
 0x141   : > { %1642 = vadd.xlane.f32.xlu0 %v1641_v33  ;;  %v1656_v1 = vsel %vm1568_vm8, %v1565_v2, 0.0  ;;  %v1638_v6 = vsel %vm1568_vm8, %v6666_v41, 0.0  ;;  %v6667_v33 = vmax.f32 %v5217_v17, 0.0 }
 0x142   : > { %1636 = vadd.xlane.f32.xlu1 %v1635_v47  ;;  %v1562_v47 = vmax.f32 %v5189_v59, 0.0  ;;  %v1653_v26 = vsel %vm1568_vm8, %v6669_v38, 0.0  ;;  %v6668_v10 = vmax.f32 %v5223_v4, 0.0 }
 0x143   : > { %v1662_v20 = vsel %vm1568_vm8, %v6667_v33, 0.0 }
 0x144   : > { %v1647_v34 = vsel %vm1568_vm8, %v1562_v47, 0.0 }
 0x145   : > { %1651 = vadd.xlane.f32.xlu0 %v1650_v53 }
 0x146   : > { %1645 = vadd.xlane.f32.xlu1 %v1644_v55  ;;  %v1659_v55 = vsel %vm1568_vm8, %v6668_v10, 0.0 }
 0x149   : > { %1657 = vadd.xlane.f32.xlu0 %v1656_v1 }
 0x14a   : > { %1648 = vadd.xlane.f32.xlu1 %v1647_v34 }
 0x14d   : > { %1654 = vadd.xlane.f32.xlu0 %v1653_v26 }
 0x14e   : > { %1639 = vadd.xlane.f32.xlu1 %v1638_v6 }
 0x151   : > { %1660 = vadd.xlane.f32.xlu0 %v1659_v55 }
 0x152   : > { %1663 = vadd.xlane.f32.xlu1 %v1662_v20 }
 0x19a   : > { %v1595_v39 = vpop.xlane.xlu1 %1594 }
 0x19b   : > { %v1674_v53 = vmul.f32 0.03125, %v1595_v39 }
 0x19d   : > { %v5245_v34 = vsub.f32 %v1544_v25, %v1674_v53  ;;  %v1571_v1 = vpop.xlane.xlu0 %1570 }
 0x19e   : > { %v1666_v6 = vmul.f32 0.03125, %v1571_v1 }
 0x19f   : > { %v1577_v41 = vpop.xlane.xlu1 %1576  ;;  %v1738_v26 = vmul.f32 %v5245_v34, %v5245_v34 }
 0x1a0   : > { %v5251_v20 = vsub.f32 %v1536_v45, %v1666_v6  ;;  %v1668_v6 = vmul.f32 0.03125, %v1577_v41 }
 0x1a1   : > { %v1598_v33 = vpop.xlane.xlu0 %1597  ;;  %v1786_v10 = vsel %vm1568_vm8, %v1738_v26, 0.0 }
 0x1a2   : > { %v1675_v55 = vmul.f32 0.03125, %v1598_v33  ;;  %1787 = vadd.xlane.f32.xlu1 %v1786_v10  ;;  %v1730_v18 = vmul.f32 %v5251_v20, %v5251_v20 }
 0x1a3   : > { %v1583_v38 = vpop.xlane.xlu1 %1582 }
 0x1a4   : > { %v5258_v25 = vsub.f32 %v1545_v57, %v1675_v55  ;;  %v1762_v39 = vsel %vm1568_vm8, %v1730_v18, 0.0  ;;  %v5272_v18 = vsub.f32 %v1538_v49, %v1668_v6 }
 0x1a5   : > { %v1601_v53 = vpop.xlane.xlu0 %1600  ;;  %1763 = vadd.xlane.f32.xlu0 %v1762_v39  ;;  %v1670_v39 = vmul.f32 0.03125, %v1583_v38 }
 0x1a6   : > { %v1676_v30 = vmul.f32 0.03125, %v1601_v53  ;;  %v1739_v1 = vmul.f32 %v5258_v25, %v5258_v25 }
 0x1a7   : > { %v1613_v45 = vpop.xlane.xlu1 %1612 }
 0x1a8   : > { %v5265_v33 = vsub.f32 %v1546_v8, %v1676_v30  ;;  %v1789_v10 = vsel %vm1568_vm8, %v1739_v1, 0.0  ;;  %v1680_v1 = vmul.f32 0.03125, %v1613_v45 }
 0x1a9   : > { %v1607_v26 = vpop.xlane.xlu0 %1606  ;;  %1790 = vadd.xlane.f32.xlu0 %v1789_v10  ;;  %v5283_v10 = vsub.f32 %v1540_v60, %v1670_v39 }
 0x1aa   : > { %v1678_v46 = vmul.f32 0.03125, %v1607_v26  ;;  %v1740_v55 = vmul.f32 %v5265_v33, %v5265_v33  ;;  %v5296_v54 = vsub.f32 %v1550_v9, %v1680_v1 }
 0x1ab   : > { %v1580_v57 = vpop.xlane.xlu1 %1579 }
 0x1ac   : > { %v5276_v41 = vsub.f32 %v1548_v23, %v1678_v46  ;;  %v1792_v48 = vsel %vm1568_vm8, %v1740_v55, 0.0  ;;  %v1732_v23 = vmul.f32 %v5272_v18, %v5272_v18  ;;  %v1669_v60 = vmul.f32 0.03125, %v1580_v57 }
 0x1ad   : > { %v1574_v8 = vpop.xlane.xlu0 %1573  ;;  %1793 = vadd.xlane.f32.xlu0 %v1792_v48  ;;  %v1734_v46 = vmul.f32 %v5283_v10, %v5283_v10  ;;  %v1744_v35 = vmul.f32 %v5296_v54, %v5296_v54  ;;  %v6701_v57 = vmax.f32 %v5043_v58, 0.0  ;;  %v6702_v58 = vmax.f32 %v5021_v24, 0.0 }
 0x1ae   : > { %v1667_v53 = vmul.f32 0.03125, %v1574_v8  ;;  %v1742_v30 = vmul.f32 %v5276_v41, %v5276_v41  ;;  %v1768_v26 = vsel %vm1568_vm8, %v1732_v23, 0.0  ;;  %v5310_v9 = vsub.f32 %v1539_v42, %v1669_v60 }
 0x1af   : > { %v1586_v49 = vpop.xlane.xlu1 %1585  ;;  %v1804_v42 = vsel %vm1568_vm8, %v1744_v35, 0.0 }
 0x1b0   : > { %v5287_v40 = vsub.f32 %v1537_v44, %v1667_v53  ;;  %v1798_v5 = vsel %vm1568_vm8, %v1742_v30, 0.0  ;;  %v1774_v53 = vsel %vm1568_vm8, %v1734_v46, 0.0 }
 0x1b1   : > { %v1604_v38 = vpop.xlane.xlu0 %1603  ;;  %1799 = vadd.xlane.f32.xlu0 %v1798_v5 }
 0x1b2   : > { %v1677_v6 = vmul.f32 0.03125, %v1604_v38  ;;  %v1731_v45 = vmul.f32 %v5287_v40, %v5287_v40 }
 0x1b3   : > { %v1589_v39 = vpop.xlane.xlu1 %1588 }
 0x1b4   : > { %v5300_v32 = vsub.f32 %v1547_v62, %v1677_v6  ;;  %v1765_v44 = vsel %vm1568_vm8, %v1731_v45, 0.0  ;;  %v1671_v62 = vmul.f32 0.03125, %v1586_v49  ;;  %v1733_v49 = vmul.f32 %v5310_v9, %v5310_v9 }
 0x1b5   : > { %v1610_v55 = vpop.xlane.xlu0 %1609  ;;  %1766 = vadd.xlane.f32.xlu1 %v1765_v44  ;;  %1769 = vadd.xlane.f32.xlu0 %v1768_v26  ;;  %v1672_v38 = vmul.f32 0.03125, %v1589_v39  ;;  %v6703_v45 = vmax.f32 %v5063_v19, 0.0 }
 0x1b6   : > { %v1679_v48 = vmul.f32 0.03125, %v1610_v55  ;;  %v1741_v56 = vmul.f32 %v5300_v32, %v5300_v32  ;;  %v5327_v23 = vsub.f32 %v6702_v58, %v1671_v62  ;;  %v1771_v46 = vsel %vm1568_vm8, %v1733_v49, 0.0 }
 0x1b7   : > { %v6704_v55 = vmax.f32 %v5041_v50, 0.0 }
 0x1b8   : > { %v5316_v8 = vsub.f32 %v6701_v57, %v1679_v48  ;;  %v1795_v30 = vsel %vm1568_vm8, %v1741_v56, 0.0  ;;  %v1735_v19 = vmul.f32 %v5327_v23, %v5327_v23 }
 0x1b9   : > { %v1616_v1 = vpop.xlane.xlu0 %1615  ;;  %1775 = vadd.xlane.f32.xlu1 %v1774_v53  ;;  %1796 = vadd.xlane.f32.xlu0 %v1795_v30  ;;  %v5339_v24 = vsub.f32 %v6704_v55, %v1672_v38  ;;  %v6705_v53 = vmax.f32 %v5099_v22, 0.0  ;;  %v6706_v22 = vmax.f32 %v5114_v43, 0.0 }
 0x1ba   : > { %v1681_v5 = vmul.f32 0.03125, %v1616_v1  ;;  %v1743_v12 = vmul.f32 %v5316_v8, %v5316_v8 }
 0x1bb   : > { %v1619_v6 = vpop.xlane.xlu1 %1618 }
 0x1bc   : > { %v5331_v60 = vsub.f32 %v6703_v45, %v1681_v5  ;;  %v1801_v44 = vsel %vm1568_vm8, %v1743_v12, 0.0  ;;  %v1682_v48 = vmul.f32 0.03125, %v1619_v6  ;;  %v1777_v5 = vsel %vm1568_vm8, %v1735_v19, 0.0 }
 0x1bd   : > { %1805 = vadd.xlane.f32.xlu1 %v1804_v42  ;;  %1802 = vadd.xlane.f32.xlu0 %v1801_v44  ;;  %v1736_v12 = vmul.f32 %v5339_v24, %v5339_v24 }
 0x1be   : > { %v1745_v26 = vmul.f32 %v5331_v60, %v5331_v60  ;;  %v1622_v35 = vpop.xlane.xlu0 %1621  ;;  %v5346_v30 = vsub.f32 %v6705_v53, %v1682_v48 }
 0x1bf   : > { %v1625_v39 = vpop.xlane.xlu1 %1624  ;;  %v1683_v62 = vmul.f32 0.03125, %v1622_v35  ;;  %v6709_v35 = vmax.f32 %v5145_v3, 0.0  ;;  %v6710_v3 = vmax.f32 %v5128_v28, 0.0 }
 0x1c0   : > { %v1807_v56 = vsel %vm1568_vm8, %v1745_v26, 0.0  ;;  %v1684_v57 = vmul.f32 0.03125, %v1625_v39  ;;  %v1780_v26 = vsel %vm1568_vm8, %v1736_v12, 0.0  ;;  %v6708_v39 = vmax.f32 %v5108_v29, 0.0 }
 0x1c1   : > { %1772 = vadd.xlane.f32.xlu1 %v1771_v46  ;;  %1808 = vadd.xlane.f32.xlu0 %v1807_v56  ;;  %v5350_v50 = vsub.f32 %v1553_v36, %v1683_v62  ;;  %v1746_v46 = vmul.f32 %v5346_v30, %v5346_v30 }
 0x1c2   : > { %v1592_v42 = vpop.xlane.xlu0 %1591  ;;  %v5359_v38 = vsub.f32 %v6706_v22, %v1684_v57 }
 0x1c3   : > { %v1634_v1 = vpop.xlane.xlu1 %1633  ;;  %v1673_v49 = vmul.f32 0.03125, %v1592_v42  ;;  %v1747_v58 = vmul.f32 %v5350_v50, %v5350_v50 }
 0x1c4   : > { %v1687_v6 = vmul.f32 0.03125, %v1634_v1  ;;  %v1748_v56 = vmul.f32 %v5359_v38, %v5359_v38  ;;  %v1810_v1 = vsel %vm1568_vm8, %v1746_v46, 0.0 }
 0x1c5   : > { %1778 = vadd.xlane.f32.xlu1 %v1777_v5  ;;  %v5363_v36 = vsub.f32 %v6707_v7, %v1673_v49  ;;  %v1813_v44 = vsel %vm1568_vm8, %v1747_v58, 0.0 }
 0x1c6   : > { %1814 = vadd.xlane.f32.xlu0 %v1813_v44  ;;  %v1628_v55 = vpop.xlane.xlu0 %1627  ;;  %v5373_v11 = vsub.f32 %v6708_v39, %v1687_v6  ;;  %v1816_v42 = vsel %vm1568_vm8, %v1748_v56, 0.0 }
 0x1c7   : > { %v1631_v45 = vpop.xlane.xlu1 %1630  ;;  %v1685_v48 = vmul.f32 0.03125, %v1628_v55  ;;  %v1737_v43 = vmul.f32 %v5363_v36, %v5363_v36 }
 0x1c8   : > { %v1686_v19 = vmul.f32 0.03125, %v1631_v45  ;;  %v1751_v49 = vmul.f32 %v5373_v11, %v5373_v11 }
 0x1c9   : > { %1781 = vadd.xlane.f32.xlu1 %v1780_v26  ;;  %v5379_v62 = vsub.f32 %v6709_v35, %v1685_v48  ;;  %v1783_v53 = vsel %vm1568_vm8, %v1737_v43, 0.0 }
 0x1ca   : > { %1784 = vadd.xlane.f32.xlu0 %v1783_v53  ;;  %v1643_v5 = vpop.xlane.xlu0 %1642  ;;  %v5390_v58 = vsub.f32 %v6710_v3, %v1686_v19  ;;  %v1825_v28 = vsel %vm1568_vm8, %v1751_v49, 0.0 }
 0x1cb   : > { %v1637_v57 = vpop.xlane.xlu1 %1636  ;;  %v1690_v12 = vmul.f32 0.03125, %v1643_v5  ;;  %v1749_v29 = vmul.f32 %v5379_v62, %v5379_v62 }
 0x1cc   : > { %v1688_v22 = vmul.f32 0.03125, %v1637_v57  ;;  %v1750_v39 = vmul.f32 %v5390_v58, %v5390_v58 }
 0x1cd   : > { %1811 = vadd.xlane.f32.xlu1 %v1810_v1  ;;  %v5394_v6 = vsub.f32 %v1560_v31, %v1690_v12  ;;  %v1819_v45 = vsel %vm1568_vm8, %v1749_v29, 0.0  ;;  %v6711_v29 = vmax.f32 %v5210_v51, 0.0  ;;  %v6712_v51 = vmax.f32 %v5203_v0, 0.0 }
 0x1ce   : > { %1820 = vadd.xlane.f32.xlu0 %v1819_v45  ;;  %v1652_v44 = vpop.xlane.xlu0 %1651  ;;  %v5402_v48 = vsub.f32 %v1558_v13, %v1688_v22  ;;  %v1822_v53 = vsel %vm1568_vm8, %v1750_v39, 0.0  ;;  %v6714_v39 = vmax.f32 %v5217_v17, 0.0  ;;  %v2213_v17 = vld [vmem:[%s6649_s5 + $0x18] sm:$0xff] }
 0x1cf   : > { %v1646_v7 = vpop.xlane.xlu1 %1645  ;;  %v1693_v26 = vmul.f32 0.03125, %v1652_v44  ;;  %v1754_v46 = vmul.f32 %v5394_v6, %v5394_v6  ;;  %4295 = vmatprep.subr.mxu0 %v2213_v17 }
 0x1d0   : > { %v1691_v55 = vmul.f32 0.03125, %v1646_v7  ;;  %v1752_v1 = vmul.f32 %v5402_v48, %v5402_v48  ;;  %4296 = vmatpush3.msra.mxu0 %v2213_v17 }
 0x1d1   : > { %1817 = vadd.xlane.f32.xlu1 %v1816_v42  ;;  %v5406_v37 = vsub.f32 %v1563_v16, %v1693_v26  ;;  %v1834_v43 = vsel %vm1568_vm8, %v1754_v46, 0.0 }
 0x1d2   : > { %1835 = vadd.xlane.f32.xlu0 %v1834_v43  ;;  %v1658_v56 = vpop.xlane.xlu0 %1657  ;;  %v5415_v27 = vsub.f32 %v1561_v15, %v1691_v55  ;;  %v1828_v3 = vsel %vm1568_vm8, %v1752_v1, 0.0  ;;  %v6713_v55 = vmax.f32 %v5223_v4, 0.0  ;;  %v2210_v1 = vld [vmem:[%s6649_s5] sm:$0xff] }
 0x1d3   : > { %v1649_v31 = vpop.xlane.xlu1 %1648  ;;  %v1695_v19 = vmul.f32 0.03125, %v1658_v56  ;;  %v1757_v35 = vmul.f32 %v5406_v37, %v5406_v37 }
 0x1d4   : > { %v1692_v63 = vmul.f32 0.03125, %v1649_v31  ;;  %v1755_v14 = vmul.f32 %v5415_v27, %v5415_v27 }
 0x1d5   : > { %1826 = vadd.xlane.f32.xlu1 %v1825_v28  ;;  %v5419_v13 = vsub.f32 %v1565_v2, %v1695_v19  ;;  %v1843_v57 = vsel %vm1568_vm8, %v1757_v35, 0.0 }
 0x1d6   : > { %1844 = vadd.xlane.f32.xlu0 %v1843_v57  ;;  %v1655_v5 = vpop.xlane.xlu0 %1654  ;;  %v5429_v15 = vsub.f32 %v1562_v47, %v1692_v63  ;;  %v1837_v47 = vsel %vm1568_vm8, %v1755_v14, 0.0  ;;  %v2212_v57 = vld [vmem:[%s6649_s5 + $0x10] sm:$0xff] }
 0x1d7   : > { %v1640_v16 = vpop.xlane.xlu1 %1639  ;;  %v1694_v12 = vmul.f32 0.03125, %v1655_v5  ;;  %v1759_v21 = vmul.f32 %v5419_v13, %v5419_v13  ;;  %4297 = vmatprep.subr.mxu0 %v2212_v57  ;;  %v5482_v5 = vld [vmem:[%s6651_s7 + $0x18] sm:$0xff] }
 0x1d8   : > { %v1689_v2 = vmul.f32 0.03125, %v1640_v16  ;;  %v1756_v44 = vmul.f32 %v5429_v15, %v5429_v15  ;;  %4298 = vmatpush3.msra.mxu0 %v2212_v57 }
 0x1d9   : > { %1823 = vadd.xlane.f32.xlu1 %v1822_v53  ;;  %v5435_v42 = vsub.f32 %v6711_v29, %v1694_v12  ;;  %v1849_v49 = vsel %vm1568_vm8, %v1759_v21, 0.0  ;;  %v2211_v53 = vld [vmem:[%s6649_s5 + $0x8] sm:$0xff] }
 0x1da   : > { %1850 = vadd.xlane.f32.xlu0 %v1849_v49  ;;  %v1661_v7 = vpop.xlane.xlu0 %1660  ;;  %v5446_v26 = vsub.f32 %v6712_v51, %v1689_v2  ;;  %v1840_v19 = vsel %vm1568_vm8, %v1756_v44, 0.0  ;;  %4299 = vmatprep.subr.mxu0 %v2211_v53 }
 0x1db   : > { %v1664_v22 = vpop.xlane.xlu1 %1663  ;;  %v1696_v45 = vmul.f32 0.03125, %v1661_v7  ;;  %v1758_v59 = vmul.f32 %v5435_v42, %v5435_v42  ;;  %4300 = vmatpush3.msra.mxu0 %v2211_v53 }
 0x1dc   : > { %v1697_v46 = vmul.f32 0.03125, %v1664_v22  ;;  %v1753_v4 = vmul.f32 %v5446_v26, %v5446_v26  ;;  %4301 = vmatprep.subr.mxu0 %v2210_v1 }
 0x1dd   : > { %1829 = vadd.xlane.f32.xlu1 %v1828_v3  ;;  %v5450_v28 = vsub.f32 %v6713_v55, %v1696_v45  ;;  %v1846_v31 = vsel %vm1568_vm8, %v1758_v59, 0.0  ;;  %4302 = vmatpush3.msra.mxu0 %v2210_v1 }
 0x1de   : > { %1847 = vadd.xlane.f32.xlu0 %v1846_v31  ;;  %v5457_v56 = vsub.f32 %v6714_v39, %v1697_v46  ;;  %v1831_v35 = vsel %vm1568_vm8, %v1753_v4, 0.0  ;;  %4309 = vmatprep.subr.mxu0 %v5482_v5 }
 0x1df   : > { %v1760_v43 = vmul.f32 %v5450_v28, %v5450_v28 }
 0x1e0   : > { %v1761_v63 = vmul.f32 %v5457_v56, %v5457_v56 }
 0x1e1   : > { %1838 = vadd.xlane.f32.xlu1 %v1837_v47  ;;  %v1852_v0 = vsel %vm1568_vm8, %v1760_v43, 0.0 }
 0x1e2   : > { %1853 = vadd.xlane.f32.xlu0 %v1852_v0  ;;  %v1855_v16 = vsel %vm1568_vm8, %v1761_v63, 0.0 }
 0x1e5   : > { %1841 = vadd.xlane.f32.xlu1 %v1840_v19 }
 0x1e9   : > { %1832 = vadd.xlane.f32.xlu1 %v1831_v35 }
 0x1ed   : > { %1856 = vadd.xlane.f32.xlu1 %v1855_v16 }
 0x22b   : > { %v1788_v12 = vpop.xlane.xlu1 %1787 }
 0x22c   : > { %v1866_v21 = vmul.f32 0.03125, %v1788_v12 }
 0x22e   : > { %v1898_v14 = vadd.f32 1e-05, %v1866_v21  ;;  %v1764_v2 = vpop.xlane.xlu0 %1763 }
 0x22f   : > { %v1858_v29 = vmul.f32 0.03125, %v1764_v2 }
 0x230   : > { %4421 = vrsqrt.f32 %v1898_v14 }
 0x231   : > { %v1890_v49 = vadd.f32 1e-05, %v1858_v29 }
 0x232   : > { %v1791_v3 = vpop.xlane.xlu0 %1790 }
 0x233   : > { %4423 = vrsqrt.f32 %v1890_v49  ;;  %v1867_v22 = vmul.f32 0.03125, %v1791_v3 }
 0x235   : > { %v1899_v7 = vadd.f32 1e-05, %v1867_v22 }
 0x236   : > { %v1794_v45 = vpop.xlane.xlu0 %1793 }
 0x237   : > { %4425 = vrsqrt.f32 %v1899_v7  ;;  %v1868_v59 = vmul.f32 0.03125, %v1794_v45 }
 0x239   : > { %v1900_v47 = vadd.f32 1e-05, %v1868_v59 }
 0x23a   : > { %v1800_v44 = vpop.xlane.xlu0 %1799 }
 0x23b   : > { %4427 = vrsqrt.f32 %v1900_v47  ;;  %v1870_v51 = vmul.f32 0.03125, %v1800_v44 }
 0x23d   : > { %v4422_v46 = vpop.eup %4421  ;;  %v1902_v55 = vadd.f32 1e-05, %v1870_v51 }
 0x23e   : > { %v5486_v31 = vmul.f32 %v4422_v46, %v5245_v34  ;;  %v1767_v43 = vpop.xlane.xlu1 %1766  ;;  %v1770_v39 = vpop.xlane.xlu0 %1769 }
 0x23f   : > { %4429 = vrsqrt.f32 %v1902_v55  ;;  %v1859_v0 = vmul.f32 0.03125, %v1767_v43  ;;  %v1860_v19 = vmul.f32 0.03125, %v1770_v39 }
 0x240   : > { %v4424_v4 = vpop.eup %4423  ;;  %v2042_v35 = vsel %vm1568_vm8, %v5486_v31, 0.0 }
 0x241   : > { %v2043_v63 = vrot.slane %v2042_v35, 4  ;;  %v5491_v16 = vmul.f32 %v4424_v4, %v5251_v20  ;;  %v1891_v17 = vadd.f32 1e-05, %v1859_v0  ;;  %v1892_v57 = vadd.f32 1e-05, %v1860_v19 }
 0x242   : > { %v1776_v53 = vpop.xlane.xlu1 %1775  ;;  %v1797_v1 = vpop.xlane.xlu0 %1796 }
 0x243   : > { %v2044_v12 = vadd.f32 %v2043_v63, %v2042_v35  ;;  %v1986_v34 = vsel %vm1568_vm8, %v5491_v16, 0.0  ;;  %4431 = vrsqrt.f32 %v1891_v17  ;;  %v1862_v21 = vmul.f32 0.03125, %v1776_v53 }
 0x244   : > { %v4426_v14 = vpop.eup %4425  ;;  %v1987_v2 = vrot.slane %v1986_v34, 4  ;;  %4433 = vrsqrt.f32 %v1892_v57  ;;  %v1869_v29 = vmul.f32 0.03125, %v1797_v1 }
 0x245   : > { %v2045_v49 = vrot.slane %v2044_v12, 2  ;;  %v5496_v3 = vmul.f32 %v4426_v14, %v5258_v25  ;;  %v1894_v20 = vadd.f32 1e-05, %v1862_v21 }
 0x246   : > { %v1988_v22 = vadd.f32 %v1987_v2, %v1986_v34  ;;  %v1901_v7 = vadd.f32 1e-05, %v1869_v29  ;;  %v1806_v45 = vpop.xlane.xlu1 %1805  ;;  %v1803_v59 = vpop.xlane.xlu0 %1802 }
 0x247   : > { %v2046_v47 = vadd.f32 %v2045_v49, %v2044_v12  ;;  %v2049_v44 = vsel %vm1568_vm8, %v5496_v3, 0.0  ;;  %4435 = vrsqrt.f32 %v1894_v20  ;;  %v1872_v51 = vmul.f32 0.03125, %v1806_v45 }
 0x248   : > { %v4428_v46 = vpop.eup %4427  ;;  %v1989_v55 = vrot.slane %v1988_v22, 2  ;;  %v2050_v43 = vrot.slane %v2049_v44, 4  ;;  %4437 = vrsqrt.f32 %v1901_v7  ;;  %v1871_v39 = vmul.f32 0.03125, %v1803_v59 }
 0x249   : > { %v5501_v0 = vmul.f32 %v4428_v46, %v5265_v33  ;;  %v1904_v25 = vadd.f32 1e-05, %v1872_v51  ;;  %v2047_v12 = vrot.slane %v2046_v47, 1 }
 0x24a   : > { %v1990_v19 = vadd.f32 %v1989_v55, %v1988_v22  ;;  %v2051_v4 = vadd.f32 %v2050_v43, %v2049_v44  ;;  %v1903_v35 = vadd.f32 1e-05, %v1871_v39  ;;  %v1773_v63 = vpop.xlane.xlu1 %1772  ;;  %v1809_v17 = vpop.xlane.xlu0 %1808 }
 0x24b   : > { %v2056_v57 = vsel %vm1568_vm8, %v5501_v0, 0.0  ;;  %4439 = vrsqrt.f32 %v1904_v25  ;;  %v1861_v53 = vmul.f32 0.03125, %v1773_v63  ;;  %v1873_v29 = vmul.f32 0.03125, %v1809_v17 }
 0x24c   : > { %v4430_v1 = vpop.eup %4429  ;;  %v2052_v34 = vrot.slane %v2051_v4, 2  ;;  %v2057_v21 = vrot.slane %v2056_v57, 4  ;;  %4441 = vrsqrt.f32 %v1903_v35  ;;  %v1991_v14 = vrot.slane %v1990_v19, 1 }
 0x24d   : > { %v5506_v33 = vmul.f32 %v4430_v1, %v5276_v41  ;;  %v1893_v2 = vadd.f32 1e-05, %v1861_v53  ;;  %v1905_v45 = vadd.f32 1e-05, %v1873_v29  ;;  %v5510_v51 = vadd.f32 %v2047_v12, %v2046_v47 }
 0x24e   : > { %v2053_v49 = vadd.f32 %v2052_v34, %v2051_v4  ;;  %v2058_v20 = vadd.f32 %v2057_v21, %v2056_v57  ;;  %v1779_v22 = vpop.xlane.xlu1 %1778  ;;  %v5515_v25 = vadd.f32 %v1991_v14, %v1990_v19 }
 0x24f   : > { %6715 = vst [vmem:[#allocation7_spill] sm:$0xff] %v5506_v33  ;;  %v2070_v7 = vsel %vm1568_vm8, %v5506_v33, 0.0  ;;  %4443 = vrsqrt.f32 %v1893_v2  ;;  %v1863_v59 = vmul.f32 0.03125, %v1779_v22  ;;  %v1815_v57 = vpop.xlane.xlu0 %1814 }
 0x250   : > { %v4432_v44 = vpop.eup %4431  ;;  %v2059_v46 = vrot.slane %v2058_v20, 2  ;;  %v2071_v55 = vrot.slane %v2070_v7, 4  ;;  %4445 = vrsqrt.f32 %v1905_v45  ;;  %v2054_v4 = vrot.slane %v2053_v49, 1 }
 0x251   : > { %v4434_v43 = vpop.eup %4433  ;;  %v5513_v41 = vmul.f32 %v4432_v44, %v5287_v40  ;;  %v1895_v39 = vadd.f32 1e-05, %v1863_v59  ;;  %v1875_v1 = vmul.f32 0.03125, %v1815_v57 }
 0x252   : > { %v2060_v35 = vadd.f32 %v2059_v46, %v2058_v20  ;;  %v2072_v63 = vadd.f32 %v2071_v55, %v2070_v7  ;;  %v5518_v17 = vmul.f32 %v4434_v43, %v5272_v18  ;;  %v1782_v53 = vpop.xlane.xlu1 %1781  ;;  %v5527_v7 = vadd.f32 %v2054_v4, %v2053_v49 }
 0x253   : > { %v1993_v47 = vsel %vm1568_vm8, %v5513_v41, 0.0  ;;  %4447 = vrsqrt.f32 %v1895_v39  ;;  %v1864_v12 = vmul.f32 0.03125, %v1782_v53  ;;  %v1907_v20 = vadd.f32 1e-05, %v1875_v1  ;;  %v1785_v46 = vpop.xlane.xlu0 %1784 }
 0x254   : > { %v4436_v40 = vpop.eup %4435  ;;  %v2061_v34 = vrot.slane %v2060_v35, 1  ;;  %v2073_v21 = vrot.slane %v2072_v63, 2  ;;  %v1994_v2 = vrot.slane %v1993_v47, 4  ;;  %v2000_v19 = vsel %vm1568_vm8, %v5518_v17, 0.0 }
 0x255   : > { %v4438_v14 = vpop.eup %4437  ;;  %v2001_v29 = vrot.slane %v2000_v19, 4  ;;  %v5525_v18 = vmul.f32 %v4436_v40, %v5283_v10  ;;  %v1896_v22 = vadd.f32 1e-05, %v1864_v12  ;;  %4449 = vrsqrt.f32 %v1907_v20 }
 0x256   : > { %v5529_v45 = vadd.f32 %v2061_v34, %v2060_v35  ;;  %v1995_v59 = vadd.f32 %v1994_v2, %v1993_v47  ;;  %v5532_v44 = vmul.f32 %v4438_v14, %v5300_v32  ;;  %v1812_v55 = vpop.xlane.xlu1 %1811  ;;  %v1865_v57 = vmul.f32 0.03125, %v1785_v46 }
 0x257   : > { %v2002_v43 = vadd.f32 %v2001_v29, %v2000_v19  ;;  %v2014_v39 = vsel %vm1568_vm8, %v5525_v18, 0.0  ;;  %4451 = vrsqrt.f32 %v1896_v22  ;;  %v5538_v35 = vadd.f32 %v2073_v21, %v2072_v63  ;;  %v1821_v14 = vpop.xlane.xlu0 %1820 }
 0x258   : > { %v4440_v10 = vpop.eup %4439  ;;  %v1996_v53 = vrot.slane %v1995_v59, 2  ;;  %v2015_v1 = vrot.slane %v2014_v39, 4  ;;  %v2063_v49 = vsel %vm1568_vm8, %v5532_v44, 0.0  ;;  %v1897_v12 = vadd.f32 1e-05, %v1865_v57 }
 0x259   : > { %v4442_v4 = vpop.eup %4441  ;;  %v2064_v32 = vrot.slane %v2063_v49, 4  ;;  %v5541_v47 = vmul.f32 %v4440_v10, %v5296_v54  ;;  %v2003_v34 = vrot.slane %v2002_v43, 2  ;;  %v1874_v19 = vmul.f32 0.03125, %v1812_v55 }
 0x25a   : > { %v1997_v40 = vadd.f32 %v1996_v53, %v1995_v59  ;;  %v5544_v2 = vmul.f32 %v4442_v4, %v5316_v8  ;;  %v1818_v29 = vpop.xlane.xlu1 %1817  ;;  %v2016_v20 = vadd.f32 %v2015_v1, %v2014_v39  ;;  %4453 = vrsqrt.f32 %v1897_v12 }
 0x25b   : > { %6716 = vst [vmem:[#allocation8_spill] sm:$0xff] %v5541_v47  ;;  %v2065_v46 = vadd.f32 %v2064_v32, %v2063_v49  ;;  %v2084_v22 = vsel %vm1568_vm8, %v5541_v47, 0.0  ;;  %v1906_v59 = vadd.f32 1e-05, %v1874_v19  ;;  %v1877_v55 = vmul.f32 0.03125, %v1821_v14  ;;  %v1836_v4 = vpop.xlane.xlu0 %1835 }
 0x25c   : > { %6717 = vst [vmem:[#allocation9_spill] sm:$0xff] %v5544_v2  ;;  %v4444_v63 = vpop.eup %4443  ;;  %v1998_v21 = vrot.slane %v1997_v40, 1  ;;  %v2085_v61 = vrot.slane %v2084_v22, 4  ;;  %v2077_v54 = vsel %vm1568_vm8, %v5544_v2, 0.0  ;;  %v2004_v39 = vadd.f32 %v2003_v34, %v2002_v43 }
 0x25d   : > { %v2066_v57 = vrot.slane %v2065_v46, 2  ;;  %v2078_v10 = vrot.slane %v2077_v54, 4  ;;  %v5551_v8 = vmul.f32 %v4444_v63, %v5310_v9  ;;  %v4446_v53 = vpop.eup %4445  ;;  %4455 = vrsqrt.f32 %v1906_v59 }
 0x25e   : > { %v5553_v1 = vadd.f32 %v2085_v61, %v2084_v22  ;;  %v1876_v49 = vmul.f32 0.03125, %v1818_v29  ;;  %v1827_v32 = vpop.xlane.xlu1 %1826  ;;  %v5562_v47 = vmul.f32 %v4446_v53, %v5331_v60  ;;  %v1909_v63 = vadd.f32 1e-05, %v1877_v55 }
 0x25f   : > { %v5555_v12 = vadd.f32 %v2066_v57, %v2065_v46  ;;  %v5557_v52 = vadd.f32 %v2078_v10, %v2077_v54  ;;  %v2007_v19 = vsel %vm1568_vm8, %v5551_v8, 0.0  ;;  %v1882_v61 = vmul.f32 0.03125, %v1836_v4  ;;  %v1845_v57 = vpop.xlane.xlu0 %1844 }
 0x260   : > { %6718 = vst [vmem:[#allocation10_spill] sm:$0xff] %v5562_v47  ;;  %v4448_v9 = vpop.eup %4447  ;;  %v2008_v14 = vrot.slane %v2007_v19, 4  ;;  %v1908_v43 = vadd.f32 1e-05, %v1876_v49  ;;  %v5568_v46 = vsel %vm1568_vm8, %v5562_v47, 0.0  ;;  %v5570_v22 = vadd.f32 %v1998_v21, %v1997_v40 }
 0x261   : > { %v5573_v59 = vmul.f32 %v4448_v9, %v5327_v23  ;;  %4457 = vrsqrt.f32 %v1909_v63  ;;  %v1914_v60 = vadd.f32 1e-05, %v1882_v61  ;;  %v1879_v55 = vmul.f32 0.03125, %v1827_v32 }
 0x262   : > { %v2009_v54 = vadd.f32 %v2008_v14, %v2007_v19  ;;  %v1824_v10 = vpop.xlane.xlu1 %1823  ;;  %4459 = vrsqrt.f32 %v1908_v43  ;;  %v1885_v53 = vmul.f32 0.03125, %v1845_v57  ;;  %v4450_v4 = vpop.eup %4449  ;;  %v2005_v34 = vrot.slane %v2004_v39, 1 }
 0x263   : > { %v1878_v49 = vmul.f32 0.03125, %v1824_v10  ;;  %4461 = vrsqrt.f32 %v1914_v60  ;;  %v2017_v47 = vrot.slane %v2016_v20, 2  ;;  %v5576_v40 = vmul.f32 %v4450_v4, %v5350_v50  ;;  %v1851_v32 = vpop.xlane.xlu0 %1850 }
 0x264   : > { %v2010_v29 = vrot.slane %v2009_v54, 2  ;;  %v4452_v2 = vpop.eup %4451  ;;  %v1911_v21 = vadd.f32 1e-05, %v1879_v55  ;;  %v1917_v23 = vadd.f32 1e-05, %v1885_v53  ;;  %v1887_v57 = vmul.f32 0.03125, %v1851_v32 }
 0x265   : > { %6719 = vst [vmem:[#allocation11_spill] sm:$0xff] %v5576_v40  ;;  %v1910_v19 = vadd.f32 1e-05, %v1878_v49  ;;  %v5580_v14 = vmul.f32 %v4452_v2, %v5339_v24  ;;  %v2018_v61 = vadd.f32 %v2017_v47, %v2016_v20  ;;  %v2105_v60 = vsel %vm1568_vm8, %v5576_v40, 0.0 }
 0x266   : > { %v1830_v63 = vpop.xlane.xlu1 %1829  ;;  %v2011_v43 = vadd.f32 %v2010_v29, %v2009_v54  ;;  %4463 = vrsqrt.f32 %v1911_v21  ;;  %v2106_v4 = vrot.slane %v2105_v60, 4  ;;  %v5584_v55 = vadd.f32 %v2005_v34, %v2004_v39 }
 0x267   : > { %v1880_v10 = vmul.f32 0.03125, %v1830_v63  ;;  %v4454_v50 = vpop.eup %4453  ;;  %4465 = vrsqrt.f32 %v1917_v23  ;;  %v1919_v49 = vadd.f32 1e-05, %v1887_v57  ;;  %v2019_v2 = vrot.slane %v2018_v61, 1  ;;  %v1848_v33 = vpop.xlane.xlu0 %1847 }
 0x268   : > { %v2012_v53 = vrot.slane %v2011_v43, 1  ;;  %4467 = vrsqrt.f32 %v1910_v19  ;;  %v2107_v9 = vadd.f32 %v2106_v4, %v2105_v60  ;;  %v5587_v47 = vmul.f32 %v4454_v50, %v5363_v36 }
 0x269   : > { %v1912_v24 = vadd.f32 1e-05, %v1880_v10  ;;  %v2021_v54 = vsel %vm1568_vm8, %v5573_v59, 0.0  ;;  %4469 = vrsqrt.f32 %v1919_v49  ;;  %v1886_v39 = vmul.f32 0.03125, %v1848_v33 }
 0x26a   : > { %v1839_v29 = vpop.xlane.xlu1 %1838  ;;  %v5589_v20 = vadd.f32 %v2012_v53, %v2011_v43  ;;  %v4456_v21 = vpop.eup %4455  ;;  %v2022_v23 = vrot.slane %v2021_v54, 4  ;;  %v2108_v19 = vrot.slane %v2107_v9, 2  ;;  %v2028_v63 = vsel %vm1568_vm8, %v5580_v14, 0.0 }
 0x26b   : > { %v1883_v34 = vmul.f32 0.03125, %v1839_v29  ;;  %v5594_v32 = vmul.f32 %v4456_v21, %v5346_v30  ;;  %4471 = vrsqrt.f32 %v1912_v24  ;;  %v1918_v36 = vadd.f32 1e-05, %v1886_v39  ;;  %v1854_v50 = vpop.xlane.xlu0 %1853 }
 0x26c   : > { %v5598_v43 = vadd.f32 %v2019_v2, %v2018_v61  ;;  %v2023_v57 = vadd.f32 %v2022_v23, %v2021_v54  ;;  %v5600_v10 = vadd.f32 %v2108_v19, %v2107_v9  ;;  %v2029_v53 = vrot.slane %v2028_v63, 4 }
 0x26d   : > { %6720 = vst [vmem:[#allocation12_spill] sm:$0xff] %v5594_v32  ;;  %v1915_v60 = vadd.f32 1e-05, %v1883_v34  ;;  %v2098_v33 = vsel %vm1568_vm8, %v5594_v32, 0.0  ;;  %v5606_v30 = vsel %vm1568_vm8, %v5587_v47, 0.0  ;;  %4473 = vrsqrt.f32 %v1918_v36 }
 0x26e   : > { %v1842_v4 = vpop.xlane.xlu1 %1841  ;;  %v4458_v49 = vpop.eup %4457  ;;  %v2099_v24 = vrot.slane %v2098_v33, 4  ;;  %v1888_v29 = vmul.f32 0.03125, %v1854_v50  ;;  %v2024_v9 = vrot.slane %v2023_v57, 2  ;;  %v5614_v54 = vsel %vm686_vm1, %v5570_v22, %v5515_v25 }
 0x26f   : > { %v1884_v21 = vmul.f32 0.03125, %v1842_v4  ;;  %v4460_v61 = vpop.eup %4459  ;;  %v5609_v2 = vmul.f32 %v4458_v49, %v5379_v62  ;;  %4475 = vrsqrt.f32 %v1915_v60 }
 0x270   : > { %v4462_v39 = vpop.eup %4461  ;;  %v2100_v34 = vadd.f32 %v2099_v24, %v2098_v33  ;;  %v5617_v23 = vmul.f32 %v4460_v61, %v5359_v38  ;;  %v1920_v19 = vadd.f32 1e-05, %v1888_v29  ;;  %v2025_v49 = vadd.f32 %v2024_v9, %v2023_v57 }
 0x271   : > { %6721 = vst [vmem:[#allocation13_spill] sm:$0xff] %v5609_v2  ;;  %v1916_v36 = vadd.f32 1e-05, %v1884_v21  ;;  %v2119_v62 = vsel %vm1568_vm8, %v5609_v2, 0.0  ;;  %v5623_v60 = vmul.f32 %v4462_v39, %v5394_v6  ;;  %v2030_v57 = vadd.f32 %v2029_v53, %v2028_v63 }
 0x272   : > { %6722 = vst [vmem:[#allocation14_spill] sm:$0xff] %v5617_v23  ;;  %v1833_v4 = vpop.xlane.xlu1 %1832  ;;  %v2101_v40 = vrot.slane %v2100_v34, 2  ;;  %v2120_v25 = vrot.slane %v2119_v62, 4  ;;  %v2112_v22 = vsel %vm1568_vm8, %v5617_v23, 0.0  ;;  %4477 = vrsqrt.f32 %v1920_v19 }
 0x273   : > { %v4464_v38 = vpop.eup %4463  ;;  %v2113_v33 = vrot.slane %v2112_v22, 4  ;;  %v2154_v24 = vsel %vm1568_vm8, %v5623_v60, 0.0  ;;  %4479 = vrsqrt.f32 %v1916_v36  ;;  %v1881_v29 = vmul.f32 0.03125, %v1833_v4 }
 0x274   : > { %v4466_v21 = vpop.eup %4465  ;;  %v5629_v61 = vadd.f32 %v2101_v40, %v2100_v34  ;;  %v5631_v6 = vadd.f32 %v2120_v25, %v2119_v62  ;;  %v2155_v39 = vrot.slane %v2154_v24, 4  ;;  %v5634_v2 = vmul.f32 %v4464_v38, %v5373_v11 }
 0x275   : > { %v4468_v9 = vpop.eup %4467  ;;  %v2114_v50 = vadd.f32 %v2113_v33, %v2112_v22  ;;  %v5637_v19 = vmul.f32 %v4466_v21, %v5406_v37  ;;  %v1913_v23 = vadd.f32 1e-05, %v1881_v29  ;;  %v2026_v34 = vrot.slane %v2025_v49, 1 }
 0x276   : > { %v1857_v32 = vpop.xlane.xlu1 %1856  ;;  %v2156_v4 = vadd.f32 %v2155_v39, %v2154_v24  ;;  %v5641_v40 = vmul.f32 %v4468_v9, %v5390_v58  ;;  %v4470_v62 = vpop.eup %4469 }
 0x277   : > { %6723 = vst [vmem:[#allocation15_spill] sm:$0xff] %v5637_v19  ;;  %v2115_v25 = vrot.slane %v2114_v50, 2  ;;  %v2175_v63 = vsel %vm1568_vm8, %v5637_v19, 0.0  ;;  %4481 = vrsqrt.f32 %v1913_v23  ;;  %v1889_v11 = vmul.f32 0.03125, %v1857_v32 }
 0x278   : > { %v4472_v53 = vpop.eup %4471  ;;  %v2157_v22 = vrot.slane %v2156_v4, 2  ;;  %v2176_v38 = vrot.slane %v2175_v63, 4  ;;  %v2126_v33 = vsel %vm1568_vm8, %v5641_v40, 0.0  ;;  %v5651_v29 = vmul.f32 %v4470_v62, %v5419_v13 }
 0x279   : > { %v5648_v24 = vadd.f32 %v2115_v25, %v2114_v50  ;;  %v2127_v58 = vrot.slane %v2126_v33, 4  ;;  %v1921_v21 = vadd.f32 1e-05, %v1889_v11  ;;  %v5658_v32 = vmul.f32 %v4472_v53, %v5402_v48 }
 0x27a   : > { %v5653_v39 = vadd.f32 %v2157_v22, %v2156_v4  ;;  %v5655_v9 = vadd.f32 %v2176_v38, %v2175_v63  ;;  %v2031_v23 = vrot.slane %v2030_v57, 2  ;;  %v4474_v37 = vpop.eup %4473  ;;  %v2027_v19 = vadd.f32 %v2026_v34, %v2025_v49 }
 0x27b   : > { %v5660_v36 = vadd.f32 %v2127_v58, %v2126_v33  ;;  %4483 = vrsqrt.f32 %v1921_v21  ;;  %v2036_v50 = vrot.slane %v5606_v30, 4  ;;  %v5665_v62 = vmul.f32 %v4474_v37, %v5435_v42 }
 0x27c   : > { %v4476_v25 = vpop.eup %4475  ;;  %v2159_v13 = vrot.slane %v5653_v39, 1  ;;  %v2032_v4 = vadd.f32 %v2031_v23, %v2030_v57  ;;  %v2254_v48 = vsel %vm688_vm2, %v5584_v55, %v5614_v54  ;;  %v6724_v57 = vrot.slane %v5555_v12, 1 }
 0x27d   : > { %v5672_v11 = vmul.f32 %v4476_v25, %v5415_v27  ;;  %v2037_v49 = vadd.f32 %v2036_v50, %v5606_v30  ;;  %v2255_v34 = vsel %vm690_vm3, %v5589_v20, %v2254_v48  ;;  %v2182_v53 = vsel %vm1568_vm8, %v5665_v62, 0.0 }
 0x27e   : > { %v2033_v42 = vrot.slane %v2032_v4, 1  ;;  %v2069_v37 = vadd.f32 %v6724_v57, %v5555_v12  ;;  %v2075_v55 = vrot.slane %v5538_v35, 1  ;;  %v2183_v22 = vrot.slane %v2182_v53, 4 }
 0x27f   : > { %v4478_v54 = vpop.eup %4477  ;;  %v2161_v27 = vsel %vm1568_vm8, %v5672_v11, 0.0  ;;  %v2038_v38 = vrot.slane %v2037_v49, 2  ;;  %v2256_v30 = vsel %vm692_vm4, %v5598_v43, %v2255_v34  ;;  %v6725_v48 = vrot.slane %v5557_v52, 2 }
 0x280   : > { %v4480_v20 = vpop.eup %4479  ;;  %v2162_v33 = vrot.slane %v2161_v27, 4  ;;  %v5688_v58 = vmul.f32 %v4478_v54, %v5450_v28  ;;  %v2034_v21 = vadd.f32 %v2033_v42, %v2032_v4  ;;  %v2257_v23 = vsel %vm694_vm5, %v2027_v19, %v2256_v30 }
 0x281   : > { %v5692_v12 = vmul.f32 %v4480_v20, %v5429_v15  ;;  %v2039_v50 = vadd.f32 %v2038_v38, %v2037_v49  ;;  %v2076_v25 = vadd.f32 %v2075_v55, %v5538_v35  ;;  %v2081_v57 = vadd.f32 %v6725_v48, %v5557_v52 }
 0x282   : > { %v2163_v63 = vadd.f32 %v2162_v33, %v2161_v27  ;;  %v2258_v43 = vsel %vm696_vm6, %v2034_v21, %v2257_v23  ;;  %v2087_v34 = vrot.slane %v5553_v1, 2  ;;  %v6726_v28 = vrot.slane %v5568_v46, 4 }
 0x283   : > { %v2168_v15 = vsel %vm1568_vm8, %v5692_v12, 0.0  ;;  %v2040_v19 = vrot.slane %v2039_v50, 1  ;;  %v2082_v49 = vrot.slane %v2081_v57, 1  ;;  %v2260_v35 = vsel %vm686_vm1, %v5527_v7, %v5510_v51 }
 0x284   : > { %v2093_v4 = vadd.f32 %v6726_v28, %v5568_v46  ;;  %v4482_v42 = vpop.eup %4481  ;;  %v2164_v52 = vrot.slane %v2163_v63, 2  ;;  %v2169_v55 = vrot.slane %v2168_v15, 4  ;;  %v2088_v54 = vadd.f32 %v2087_v34, %v5553_v1 }
 0x285   : > { %v5709_v38 = vadd.f32 %v2183_v22, %v2182_v53  ;;  %v2041_v30 = vadd.f32 %v2040_v19, %v2039_v50  ;;  %v2083_v20 = vadd.f32 %v2082_v49, %v2081_v57  ;;  %v2261_v46 = vsel %vm688_vm2, %v5529_v45, %v2260_v35 }
 0x286   : > { %v2094_v27 = vrot.slane %v2093_v4, 2  ;;  %v2165_v33 = vadd.f32 %v2164_v52, %v2163_v63  ;;  %v2170_v21 = vadd.f32 %v2169_v55, %v2168_v15  ;;  %v2089_v23 = vrot.slane %v2088_v54, 1 }
 0x287   : > { %v2259_v28 = vsel %vm698_vm7, %v2041_v30, %v2258_v43  ;;  %v2262_v51 = vsel %vm690_vm3, %v2069_v37, %v2261_v46  ;;  %v5716_v7 = vmul.f32 %v4482_v42, %v5446_v26  ;;  %v6727_v1 = vrot.slane %v5629_v61, 1  ;;  %v2376_v30 = vld [vmem:[%s6651_s7 + $0x10] sm:$0xff] }
 0x288   : > { %v2095_v48 = vadd.f32 %v2094_v27, %v2093_v4  ;;  %v4484_v22 = vpop.eup %4483  ;;  %v2171_v50 = vrot.slane %v2170_v21, 2  ;;  %4303 = vmatprep.mubr.msk.f32.mxu0 %vm1568_vm8, %v2259_v28  ;;  %v2090_v45 = vadd.f32 %v2089_v23, %v2088_v54  ;;  %v6728_v57 = vrot.slane %v5600_v10, 1 }
 0x289   : > { %v2104_v53 = vadd.f32 %v6727_v1, %v5629_v61  ;;  %v2263_v43 = vsel %vm692_vm4, %v2076_v25, %v2262_v51  ;;  %v2117_v37 = vrot.slane %v5648_v24, 1  ;;  %v6729_v26 = vrot.slane %v5631_v6, 2  ;;  %v2375_v51 = vld [vmem:[%s6651_s7 + $0x8] sm:$0xff] }
 0x28a   : > { %v2096_v63 = vrot.slane %v2095_v48, 1  ;;  %v2111_v34 = vadd.f32 %v6728_v57, %v5600_v10  ;;  %v2129_v61 = vrot.slane %v5660_v36, 2  ;;  %v2166_v15 = vrot.slane %v2165_v33, 1 }
 0x28b   : > { %v2123_v4 = vadd.f32 %v6729_v26, %v5631_v6  ;;  %v2264_v49 = vsel %vm694_vm5, %v2083_v20, %v2263_v43  ;;  %v2133_v35 = vsel %vm1568_vm8, %v5634_v2, 0.0  ;;  %v2118_v10 = vadd.f32 %v2117_v37, %v5648_v24 }
 0x28c   : > { %v2097_v19 = vadd.f32 %v2096_v63, %v2095_v48  ;;  %v2265_v42 = vsel %vm696_vm6, %v2090_v45, %v2264_v49  ;;  %v2130_v52 = vadd.f32 %v2129_v61, %v5660_v36  ;;  %v2134_v54 = vrot.slane %v2133_v35, 4 }
 0x28d   : > { %v2124_v25 = vrot.slane %v2123_v4, 1  ;;  %v2140_v6 = vsel %vm1568_vm8, %v5658_v32, 0.0  ;;  %v2147_v27 = vsel %vm1568_vm8, %v5716_v7, 0.0  ;;  %v2172_v20 = vadd.f32 %v2171_v50, %v2170_v21 }
 0x28e   : > { %v2266_v55 = vsel %vm698_vm7, %v2097_v19, %v2265_v42  ;;  %v2131_v24 = vrot.slane %v2130_v52, 1  ;;  %v2141_v46 = vrot.slane %v2140_v6, 4  ;;  %v2148_v23 = vrot.slane %v2147_v27, 4 }
 0x28f   : > { %4304 = vmatmul.mubr.msk.f32.vlgmr.msra.gmra.mxu0 %vm1568_vm8, %v2266_v55  ;;  %v2125_v36 = vadd.f32 %v2124_v25, %v2123_v4  ;;  %v2135_v48 = vadd.f32 %v2134_v54, %v2133_v35  ;;  %v2267_v28 = vsel %vm686_vm1, %v2111_v34, %v2104_v53  ;;  %v5752_v1 = vmul.f32 %v4484_v22, %v5457_v56  ;;  %v2374_v56 = vld [vmem:[%s6651_s7] sm:$0xff] }
 0x290   : > { %4310 = vmatpush3.msra.mxu0 %v5482_v5  ;;  %v2132_v45 = vadd.f32 %v2131_v24, %v2130_v52  ;;  %v2142_v21 = vadd.f32 %v2141_v46, %v2140_v6  ;;  %v2149_v50 = vadd.f32 %v2148_v23, %v2147_v27  ;;  %v2268_v63 = vsel %vm688_vm2, %v2118_v10, %v2267_v28 }
 0x291   : > { %4311 = vmatprep.subr.mxu0 %v2376_v30  ;;  %v2136_v57 = vrot.slane %v2135_v48, 2  ;;  %v2269_v43 = vsel %vm690_vm3, %v2125_v36, %v2268_v63  ;;  %v2160_v5 = vadd.f32 %v2159_v13, %v5653_v39  ;;  %v2167_v53 = vadd.f32 %v2166_v15, %v2165_v33 }
 0x292   : > { %4312 = vmatpush3.msra.mxu0 %v2376_v30  ;;  %v2143_v22 = vrot.slane %v2142_v21, 2  ;;  %v2150_v34 = vrot.slane %v2149_v50, 2  ;;  %v2173_v37 = vrot.slane %v2172_v20, 1  ;;  %v6730_v26 = vrot.slane %v5655_v9, 2 }
 0x293   : > { %4313 = vmatprep.subr.mxu0 %v2375_v51  ;;  %v2137_v61 = vadd.f32 %v2136_v57, %v2135_v48  ;;  %v2270_v19 = vsel %vm692_vm4, %v2132_v45, %v2269_v43  ;;  %v2185_v49 = vrot.slane %v5709_v38, 2  ;;  %v2189_v39 = vsel %vm1568_vm8, %v5651_v29, 0.0 }
 0x294   : > { %v2179_v4 = vadd.f32 %v6730_v26, %v5655_v9  ;;  %4314 = vmatpush3.msra.mxu0 %v2375_v51  ;;  %v2144_v13 = vadd.f32 %v2143_v22, %v2142_v21  ;;  %v2151_v33 = vadd.f32 %v2150_v34, %v2149_v50  ;;  %v2190_v35 = vrot.slane %v2189_v39, 4 }
 0x295   : > { %4315 = vmatprep.subr.mxu0 %v2374_v56  ;;  %v2138_v42 = vrot.slane %v2137_v61, 1  ;;  %v2186_v10 = vadd.f32 %v2185_v49, %v5709_v38  ;;  %v2196_v9 = vsel %vm1568_vm8, %v5688_v58, 0.0  ;;  %v2203_v25 = vsel %vm1568_vm8, %v5752_v1, 0.0 }
 0x296   : > { %v2180_v15 = vrot.slane %v2179_v4, 1  ;;  %4316 = vmatpush3.msra.mxu0 %v2374_v56  ;;  %v2145_v52 = vrot.slane %v2144_v13, 1  ;;  %v2152_v55 = vrot.slane %v2151_v33, 1  ;;  %v2174_v54 = vadd.f32 %v2173_v37, %v2172_v20 }
 0x297   : > { %v2191_v6 = vadd.f32 %v2190_v35, %v2189_v39  ;;  %v2139_v27 = vadd.f32 %v2138_v42, %v2137_v61  ;;  %v2187_v30 = vrot.slane %v2186_v10, 1  ;;  %v2197_v24 = vrot.slane %v2196_v9, 4 }
 0x298   : > { %v2204_v46 = vrot.slane %v2203_v25, 4  ;;  %v2146_v23 = vadd.f32 %v2145_v52, %v2144_v13  ;;  %v2153_v36 = vadd.f32 %v2152_v55, %v2151_v33  ;;  %v2181_v48 = vadd.f32 %v2180_v15, %v2179_v4  ;;  %v6741_v52 = vld [vmem:[#allocation6_spill] sm:$0xff] }
 0x299   : > { %v2192_v28 = vrot.slane %v2191_v6, 2  ;;  %v2271_v38 = vsel %vm694_vm5, %v2139_v27, %v2270_v19  ;;  %v2198_v51 = vadd.f32 %v2197_v24, %v2196_v9  ;;  %v2274_v21 = vsel %vm686_vm1, %v2167_v53, %v2160_v5 }
 0x29a   : > { %v2205_v45 = vadd.f32 %v2204_v46, %v2203_v25  ;;  %v2272_v50 = vsel %vm696_vm6, %v2146_v23, %v2271_v38  ;;  %v2188_v63 = vadd.f32 %v2187_v30, %v2186_v10  ;;  %v2275_v20 = vsel %vm688_vm2, %v2174_v54, %v2274_v21 }
 0x29b   : > { %v2193_v57 = vadd.f32 %v2192_v28, %v2191_v6  ;;  %v2273_v43 = vsel %vm698_vm7, %v2153_v36, %v2272_v50  ;;  %v2199_v56 = vrot.slane %v2198_v51, 2  ;;  %v2276_v34 = vsel %vm690_vm3, %v2181_v48, %v2275_v20 }
 0x29c   : > { %v2206_v22 = vrot.slane %v2205_v45, 2  ;;  %4306 = vmatprep.mubr.msk.f32.mxu0 %vm1568_vm8, %v2273_v43  ;;  %v2277_v61 = vsel %vm692_vm4, %v2188_v63, %v2276_v34 }
 0x29d   : > { %v2194_v37 = vrot.slane %v2193_v57, 1  ;;  %v2200_v26 = vadd.f32 %v2199_v56, %v2198_v51 }
 0x29e   : > { %v2207_v4 = vadd.f32 %v2206_v22, %v2205_v45 }
 0x29f   : > { %v2195_v5 = vadd.f32 %v2194_v37, %v2193_v57  ;;  %v2201_v53 = vrot.slane %v2200_v26, 1 }
 0x2a0   : > { %v2208_v19 = vrot.slane %v2207_v4, 1 }
 0x2a1   : > { %v2278_v49 = vsel %vm694_vm5, %v2195_v5, %v2277_v61  ;;  %v2202_v39 = vadd.f32 %v2201_v53, %v2200_v26 }
 0x2a2   : > { %v2209_v13 = vadd.f32 %v2208_v19, %v2207_v4 }
 0x2a3   : > { %v2279_v33 = vsel %vm696_vm6, %v2202_v39, %v2278_v49 }
 0x2a4   : > { %v2280_v15 = vsel %vm698_vm7, %v2209_v13, %v2279_v33 }
 0x2a5   : > { %4307 = vmatmul.mubr.msk.f32.gmra.mxu0 %vm1568_vm8, %v2280_v15 }
 0x2a6   : > { %4317 = vmatprep.mubr.msk.f32.mxu0 %vm1568_vm8, %v5491_v16  ;;  %v6731_v16 = vld [vmem:[#allocation7_spill] sm:$0xff] }
 0x2a9   : > { %4318 = vmatmul.mubr.msk.f32.vlgmr.msra.gmra.mxu0 %vm1568_vm8, %v5513_v41  ;;  %v6732_v41 = vld [vmem:[#allocation9_spill] sm:$0xff] }
 0x2aa   : > { %4320 = vmatprep.mubr.msk.f32.mxu0 %vm1568_vm8, %v5518_v17  ;;  %v6733_v17 = vld [vmem:[#allocation8_spill] sm:$0xff] }
 0x2ad   : > { %4321 = vmatmul.mubr.msk.f32.gmra.mxu0 %vm1568_vm8, %v5551_v8  ;;  %v6739_v8 = vld [vmem:[#allocation15_spill] sm:$0xff] }
 0x2ae   : > { %4323 = vmatprep.mubr.msk.f32.mxu0 %vm1568_vm8, %v5525_v18  ;;  %v6734_v18 = vld [vmem:[#allocation10_spill] sm:$0xff] }
 0x2b1   : > { %4324 = vmatmul.mubr.msk.f32.gmra.mxu0 %vm1568_vm8, %v5573_v59 }
 0x2b2   : > { %4326 = vmatprep.mubr.msk.f32.mxu0 %vm1568_vm8, %v5580_v14 }
 0x2b5   : > { %4327 = vmatmul.mubr.msk.f32.gmra.mxu0 %vm1568_vm8, %v5587_v47  ;;  %v5853_v47 = vld [vmem:[%s6650_s6] ss:$0 sm:$0xff] }
 0x2b6   : > { %4329 = vmatprep.mubr.msk.f32.mxu0 %vm1568_vm8, %v5486_v31  ;;  %v6735_v31 = vld [vmem:[#allocation12_spill] sm:$0xff] }
 0x2b9   : > { %4330 = vmatmul.mubr.msk.f32.gmra.mxu0 %vm1568_vm8, %v5496_v3  ;;  %v6736_v3 = vld [vmem:[#allocation11_spill] sm:$0xff] }
 0x2ba   : > { %4332 = vmatprep.mubr.msk.f32.mxu0 %vm1568_vm8, %v5501_v0  ;;  %v6737_v0 = vld [vmem:[#allocation14_spill] sm:$0xff] }
 0x2bd   : > { %4333 = vmatmul.mubr.msk.f32.gmra.mxu0 %vm1568_vm8, %v5532_v44  ;;  %v6738_v44 = vld [vmem:[#allocation13_spill] sm:$0xff] }
 0x2be   : > { %4335 = vmatprep.mubr.msk.f32.mxu0 %vm1568_vm8, %v6731_v16 }
 0x2c1   : > { %4336 = vmatmul.mubr.msk.f32.gmra.mxu0 %vm1568_vm8, %v6732_v41 }
 0x2c2   : > { %4338 = vmatprep.mubr.msk.f32.mxu0 %vm1568_vm8, %v6733_v17 }
 0x2c5   : > { %4339 = vmatmul.mubr.msk.f32.gmra.mxu0 %vm1568_vm8, %v6734_v18 }
 0x2c6   : > { %4341 = vmatprep.mubr.msk.f32.mxu0 %vm1568_vm8, %v6735_v31 }
 0x2c9   : > { %4342 = vmatmul.mubr.msk.f32.gmra.mxu0 %vm1568_vm8, %v6736_v3 }
 0x2ca   : > { %4344 = vmatprep.mubr.msk.f32.mxu0 %vm1568_vm8, %v6737_v0 }
 0x2cd   : > { %4345 = vmatmul.mubr.msk.f32.gmra.mxu0 %vm1568_vm8, %v6738_v44 }
 0x2ce   : > { %4347 = vmatprep.mubr.msk.f32.mxu0 %vm1568_vm8, %v5641_v40 }
 0x2d1   : > { %4348 = vmatmul.mubr.msk.f32.gmra.mxu0 %vm1568_vm8, %v5634_v2 }
 0x2d2   : > { %4350 = vmatprep.mubr.msk.f32.mxu0 %vm1568_vm8, %v5658_v32 }
 0x2d5   : > { %4351 = vmatmul.mubr.msk.f32.gmra.mxu0 %vm1568_vm8, %v5716_v7 }
 0x2d6   : > { %4353 = vmatprep.mubr.msk.f32.mxu0 %vm1568_vm8, %v5623_v60  ;;  %v6740_v60 = vld [vmem:[#allocation5_spill] sm:$0xff] }
 0x2d9   : > { %4354 = vmatmul.mubr.msk.f32.gmra.mxu0 %vm1568_vm8, %v5672_v11 }
 0x2da   : > { %4356 = vmatprep.mubr.msk.f32.mxu0 %vm1568_vm8, %v5692_v12 }
 0x2dd   : > { %4357 = vmatmul.mubr.msk.f32.gmra.mxu0 %vm1568_vm8, %v6739_v8 }
 0x2de   : > { %4359 = vmatprep.mubr.msk.f32.mxu0 %vm1568_vm8, %v5665_v62 }
 0x2e1   : > { %4360 = vmatmul.mubr.msk.f32.gmra.mxu0 %vm1568_vm8, %v5651_v29 }
 0x2e2   : > { %4362 = vmatprep.mubr.msk.f32.mxu0 %vm1568_vm8, %v5688_v58 }
 0x2e5   : > { %4363 = vmatmul.mubr.msk.f32.gmra.mxu0 %vm1568_vm8, %v5752_v1  ;;  %v5867_v1 = vld [vmem:[%s6652_s8] ss:$0 sm:$0xff] }
 0x34f   : > { %v4305_v59 = vpop.f32.mrf.mxu0 }
 0x350   : > { %v2361_v35 = vadd.f32 %v4305_v59, %v5853_v47 }
 0x351   : > { %v2355_v14 = vpop.f32.mrf.mxu0 }
 0x352   : > { %v2356_v2 = vadd.f32 %v5853_v47, %v2355_v14  ;;  %v2766_v24 = vrot.slane %v2361_v35, %v6740_v60  ;;  %v2759_v51 = vcombine.high %v2361_v35, %v2361_v35 }
 0x354   : > { %v2717_v40 = vrot.slane %v2356_v2, %v6740_v60  ;;  %v2710_v32 = vcombine.high %v2356_v2, %v2356_v2  ;;  %v2774_v56 = vcombine.high %v2766_v24, %v2766_v24  ;;  %v2773_v41 = vrot.slane %v2759_v51, %v6740_v60 }
 0x355   : > { %v2782_v59 = vrot.slane %v2766_v24, %v6740_v60 }
 0x356   : > { %v2725_v62 = vcombine.high %v2717_v40, %v2717_v40  ;;  %v2724_v29 = vrot.slane %v2710_v32, %v6740_v60  ;;  %v2733_v7 = vrot.slane %v2717_v40, %v6740_v60  ;;  %v2796_v31 = vrot.slane %v2774_v56, %v6740_v60 }
 0x357   : > { %v2804_v24 = vcombine.high %v2782_v59, %v2782_v59  ;;  %v2789_v56 = vrot.slane %v2773_v41, %v6740_v60 }
 0x358   : > { %v2747_v58 = vrot.slane %v2725_v62, %v6740_v60  ;;  %v2726_v42 = vcombine.high %v2724_v29, %v2724_v29  ;;  %v2909_v27 = vrot.slane %v2733_v7, %v6741_v52  ;;  %v2755_v30 = vcombine.high %v2733_v7, %v2733_v7 }
 0x359   : > { %v2740_v50 = vrot.slane %v2724_v29, %v6740_v60  ;;  %v2775_v29 = vcombine.high %v2773_v41, %v2773_v41  ;;  %v2945_v7 = vrot.slane %v2796_v31, %v6741_v52 }
 0x35a   : > { %v2757_v9 = vcombine.high %v2747_v58, %v2747_v58  ;;  %v2913_v55 = vrot.slane %v2747_v58, %v6741_v52  ;;  %v2754_v36 = vrot.slane %v2726_v42, %v6740_v60  ;;  %v2917_v20 = vrot.slane %v2755_v30, %v6741_v52 }
 0x35b   : > { %v2925_v49 = vrot.slane %v2740_v50, %v6741_v52  ;;  %v2756_v39 = vcombine.high %v2740_v50, %v2740_v50 }
 0x35c   : > { %v2921_v38 = vrot.slane %v2757_v9, %v6741_v52  ;;  %v2929_v37 = vrot.slane %v2754_v36, %v6741_v52  ;;  %v2758_v26 = vcombine.high %v2754_v36, %v2754_v36  ;;  %v2806_v9 = vcombine.high %v2796_v31, %v2796_v31 }
 0x35d   : > { %v2933_v32 = vrot.slane %v2756_v39, %v6741_v52  ;;  %v2805_v31 = vcombine.high %v2789_v56, %v2789_v56 }
 0x35e   : > { %v2937_v18 = vrot.slane %v2758_v26, %v6741_v52 }
 0x365   : > { %v5858_v11 = vpop.f32.mrf.mxu0 }
 0x367   : > { %v5861_v12 = vpop.f32.mrf.mxu0 }
 0x369   : > { %v4319_v10 = vpop.f32.mrf.mxu0 }
 0x36a   : > { %v2553_v25 = vadd.f32 %v4319_v10, %v5867_v1 }
 0x36b   : > { %v2547_v54 = vpop.f32.mrf.mxu0 }
 0x36c   : > { %v2548_v6 = vadd.f32 %v5867_v1, %v2547_v54  ;;  %v5875_v46 = vadd.f32 %v2913_v55, %v2553_v25  ;;  %v2941_v54 = vrot.slane %v2782_v59, %v6741_v52 }
 0x36d   : > { %v4322_v23 = vpop.f32.mrf.mxu0 }
 0x36e   : > { %v5878_v48 = vadd.f32 %v2909_v27, %v2548_v6  ;;  %v2563_v28 = vadd.f32 %v4322_v23, %v5867_v1  ;;  %v3099_v21 = vmax.f32 %v5875_v46, 0.0  ;;  %v2366_v23 = vadd.f32 %v5853_v47, %v5861_v12 }
 0x36f   : > { %v2557_v45 = vpop.f32.mrf.mxu0 }
 0x370   : > { %v5884_v63 = vadd.f32 %v2921_v38, %v2563_v28  ;;  %v2558_v57 = vadd.f32 %v5867_v1, %v2557_v45  ;;  %v3098_v43 = vmax.f32 %v5878_v48, 0.0  ;;  %v3133_v22 = vsel %vm1568_vm8, %v3099_v21, 0.0 }
 0x371   : > { %v4325_v34 = vpop.f32.mrf.mxu0  ;;  %3134 = vadd.xlane.f32.xlu1 %v3133_v22  ;;  %v2803_v38 = vrot.slane %v2775_v29, %v6740_v60 }
 0x372   : > { %v5893_v4 = vadd.f32 %v2917_v20, %v2558_v57  ;;  %v2573_v61 = vadd.f32 %v4325_v34, %v5867_v1  ;;  %v3130_v5 = vsel %vm1568_vm8, %v3098_v43, 0.0  ;;  %v3101_v53 = vmax.f32 %v5884_v63, 0.0 }
 0x373   : > { %v2567_v19 = vpop.f32.mrf.mxu0  ;;  %3131 = vadd.xlane.f32.xlu0 %v3130_v5  ;;  %v2953_v57 = vrot.slane %v2806_v9, %v6741_v52 }
 0x374   : > { %v5901_v13 = vadd.f32 %v2929_v37, %v2573_v61  ;;  %v2568_v33 = vadd.f32 %v5867_v1, %v2567_v19  ;;  %v3139_v15 = vsel %vm1568_vm8, %v3101_v53, 0.0  ;;  %v3100_v16 = vmax.f32 %v5893_v4, 0.0 }
 0x375   : > { %v4328_v17 = vpop.f32.mrf.mxu0  ;;  %3140 = vadd.xlane.f32.xlu1 %v3139_v15  ;;  %v2949_v37 = vrot.slane %v2804_v24, %v6741_v52  ;;  %v2815_v61 = vrot.slane %v2366_v23, %v6740_v60  ;;  %v2961_v19 = vrot.slane %v2803_v38, %v6741_v52 }
 0x376   : > { %v5911_v3 = vadd.f32 %v2925_v49, %v2568_v33  ;;  %v2583_v0 = vadd.f32 %v4328_v17, %v5867_v1  ;;  %v3136_v44 = vsel %vm1568_vm8, %v3100_v16, 0.0  ;;  %v3103_v8 = vmax.f32 %v5901_v13, 0.0 }
 0x377   : > { %v2577_v14 = vpop.f32.mrf.mxu0  ;;  %3137 = vadd.xlane.f32.xlu0 %v3136_v44  ;;  %v2808_v33 = vcombine.high %v2366_v23, %v2366_v23 }
 0x378   : > { %v5919_v2 = vadd.f32 %v2937_v18, %v2583_v0  ;;  %v2578_v40 = vadd.f32 %v5867_v1, %v2577_v14  ;;  %v3145_v62 = vsel %vm1568_vm8, %v3103_v8, 0.0  ;;  %v3102_v35 = vmax.f32 %v5911_v3, 0.0 }
 0x379   : > { %v4331_v58 = vpop.f32.mrf.mxu0  ;;  %3146 = vadd.xlane.f32.xlu1 %v3145_v62  ;;  %v2807_v62 = vcombine.high %v2803_v38, %v2803_v38 }
 0x37a   : > { %v5928_v42 = vadd.f32 %v2933_v32, %v2578_v40  ;;  %v2593_v10 = vadd.f32 %v4331_v58, %v5867_v1  ;;  %v3105_v25 = vmax.f32 %v5919_v2, 0.0  ;;  %v3142_v28 = vsel %vm1568_vm8, %v3102_v35, 0.0 }
 0x37b   : > { %v2587_v55 = vpop.f32.mrf.mxu0  ;;  %v2823_v40 = vcombine.high %v2815_v61, %v2815_v61  ;;  %v2822_v58 = vrot.slane %v2808_v33, %v6740_v60 }
 0x37c   : > { %v5933_v6 = vadd.f32 %v2945_v7, %v2593_v10  ;;  %v2588_v27 = vadd.f32 %v5867_v1, %v2587_v55  ;;  %v3151_v30 = vsel %vm1568_vm8, %v3105_v25, 0.0  ;;  %v3104_v51 = vmax.f32 %v5928_v42, 0.0 }
 0x37d   : > { %v4334_v36 = vpop.f32.mrf.mxu0  ;;  %3152 = vadd.xlane.f32.xlu0 %v3151_v30  ;;  %3143 = vadd.xlane.f32.xlu1 %v3142_v28  ;;  %v2957_v7 = vrot.slane %v2789_v56, %v6741_v52  ;;  %v2831_v10 = vrot.slane %v2815_v61, %v6740_v60  ;;  %v2969_v28 = vrot.slane %v2807_v62, %v6741_v52 }
 0x37e   : > { %v5946_v45 = vadd.f32 %v2941_v54, %v2588_v27  ;;  %v2603_v50 = vadd.f32 %v4334_v36, %v5867_v1  ;;  %v3107_v20 = vmax.f32 %v5933_v6, 0.0  ;;  %v3148_v49 = vsel %vm1568_vm8, %v3104_v51, 0.0 }
 0x37f   : > { %v2597_v12 = vpop.f32.mrf.mxu0  ;;  %v2965_v54 = vrot.slane %v2805_v31, %v6741_v52  ;;  %v2371_v36 = vadd.f32 %v5858_v11, %v5853_v47  ;;  %v2853_v61 = vcombine.high %v2831_v10, %v2831_v10 }
 0x380   : > { %v5952_v22 = vadd.f32 %v2953_v57, %v2603_v50  ;;  %v2598_v34 = vadd.f32 %v5867_v1, %v2597_v12  ;;  %v3157_v26 = vsel %vm1568_vm8, %v3107_v20, 0.0  ;;  %v3106_v39 = vmax.f32 %v5946_v45, 0.0 }
 0x381   : > { %v4337_v5 = vpop.f32.mrf.mxu0  ;;  %3158 = vadd.xlane.f32.xlu0 %v3157_v26  ;;  %3149 = vadd.xlane.f32.xlu1 %v3148_v49  ;;  %v2845_v50 = vrot.slane %v2823_v40, %v6740_v60  ;;  %v2824_v57 = vcombine.high %v2822_v58, %v2822_v58  ;;  %v2973_v26 = vrot.slane %v2831_v10, %v6741_v52 }
 0x382   : > { %v5965_v15 = vadd.f32 %v2949_v37, %v2598_v34  ;;  %v2613_v41 = vadd.f32 %v4337_v5, %v5867_v1  ;;  %v3109_v17 = vmax.f32 %v5952_v22, 0.0  ;;  %v3154_v29 = vsel %vm1568_vm8, %v3106_v39, 0.0 }
 0x383   : > { %v2607_v18 = vpop.f32.mrf.mxu0  ;;  %v2864_v49 = vrot.slane %v2371_v36, %v6740_v60  ;;  %v2977_v33 = vrot.slane %v2845_v50, %v6741_v52  ;;  %v2981_v62 = vrot.slane %v2853_v61, %v6741_v52 }
 0x384   : > { %v5969_v0 = vadd.f32 %v2961_v19, %v2613_v41  ;;  %v2608_v44 = vadd.f32 %v5867_v1, %v2607_v18  ;;  %v3163_v59 = vsel %vm1568_vm8, %v3109_v17, 0.0  ;;  %v3108_v14 = vmax.f32 %v5965_v15, 0.0 }
 0x385   : > { %v4340_v32 = vpop.f32.mrf.mxu0  ;;  %3164 = vadd.xlane.f32.xlu0 %v3163_v59  ;;  %3155 = vadd.xlane.f32.xlu1 %v3154_v29  ;;  %v2855_v18 = vcombine.high %v2845_v50, %v2845_v50  ;;  %v6015_v59 = vrot.slane %v2824_v57, %v6740_v60  ;;  %v2838_v29 = vrot.slane %v2822_v58, %v6740_v60 }
 0x386   : > { %v2623_v9 = vadd.f32 %v4340_v32, %v5867_v1  ;;  %v5984_v27 = vadd.f32 %v2957_v7, %v2608_v44  ;;  %v3160_v24 = vsel %vm1568_vm8, %v3108_v14, 0.0  ;;  %v3111_v23 = vmax.f32 %v5969_v0, 0.0 }
 0x387   : > { %v2617_v55 = vpop.f32.mrf.mxu0  ;;  %v2993_v57 = vrot.slane %v6015_v59, %v6741_v52  ;;  %v2854_v61 = vcombine.high %v2838_v29, %v2838_v29 }
 0x388   : > { %v2618_v30 = vadd.f32 %v5867_v1, %v2617_v55  ;;  %v5997_v56 = vadd.f32 %v2969_v28, %v2623_v9  ;;  %v3169_v47 = vsel %vm1568_vm8, %v3111_v23, 0.0  ;;  %v6692_v19 = vmax.f32 %v5984_v27, 0.0 }
 0x389   : > { %v4343_v38 = vpop.f32.mrf.mxu0  ;;  %3161 = vadd.xlane.f32.xlu0 %v3160_v24  ;;  %v2872_v24 = vcombine.high %v2864_v49, %v2864_v49  ;;  %v2985_v28 = vrot.slane %v2855_v18, %v6741_v52 }
 0x38a   : > { %v5995_v12 = vadd.f32 %v2965_v54, %v2618_v30  ;;  %v2633_v34 = vadd.f32 %v4343_v38, %v5867_v1  ;;  %v6688_v7 = vmax.f32 %v5997_v56, 0.0  ;;  %v3166_v55 = vsel %vm1568_vm8, %v6692_v19, 0.0 }
 0x38b   : > { %v2627_v37 = vpop.f32.mrf.mxu0  ;;  %v2857_v30 = vcombine.high %v2371_v36, %v2371_v36 }
 0x38c   : > { %v2628_v5 = vadd.f32 %v5867_v1, %v2627_v37  ;;  %v3112_v11 = vmax.f32 %v5995_v12, 0.0  ;;  %v6017_v40 = vadd.f32 %v2977_v33, %v2633_v34  ;;  %v3175_v36 = vsel %vm1568_vm8, %v6688_v7, 0.0 }
 0x38d   : > { %v4346_v41 = vpop.f32.mrf.mxu0  ;;  %3170 = vadd.xlane.f32.xlu0 %v3169_v47 }
 0x38e   : > { %v6009_v31 = vadd.f32 %v2973_v26, %v2628_v5  ;;  %v3172_v44 = vsel %vm1568_vm8, %v3112_v11, 0.0  ;;  %v2643_v10 = vadd.f32 %v4346_v41, %v5867_v1  ;;  %v2989_v26 = vrot.slane %v2838_v29, %v6741_v52 }
 0x38f   : > { %v2637_v32 = vpop.f32.mrf.mxu0  ;;  %3173 = vadd.xlane.f32.xlu1 %v3172_v44  ;;  %v6683_v5 = vmax.f32 %v6017_v40, 0.0  ;;  %v2871_v44 = vrot.slane %v2857_v30, %v6740_v60  ;;  %v2997_v30 = vrot.slane %v2854_v61, %v6741_v52 }
 0x390   : > { %v2638_v9 = vadd.f32 %v5867_v1, %v2637_v32  ;;  %v6690_v54 = vmax.f32 %v6009_v31, 0.0  ;;  %v6042_v47 = vadd.f32 %v2985_v28, %v2643_v10  ;;  %v6743_v12 = vmax.f32 %v6009_v31, 0.0 }
 0x391   : > { %v4349_v38 = vpop.f32.mrf.mxu0  ;;  %3167 = vadd.xlane.f32.xlu0 %v3166_v55  ;;  %v2880_v55 = vrot.slane %v2864_v49, %v6740_v60 }
 0x392   : > { %v6029_v50 = vadd.f32 %v2981_v62, %v2638_v9  ;;  %v2653_v58 = vadd.f32 %v4349_v38, %v5867_v1  ;;  %v3178_v34 = vsel %vm1568_vm8, %v6690_v54, 0.0  ;;  %v2894_v62 = vrot.slane %v2872_v24, %v6740_v60 }
 0x393   : > { %v2647_v37 = vpop.f32.mrf.mxu0  ;;  %3179 = vadd.xlane.f32.xlu1 %v3178_v34  ;;  %v3181_v24 = vsel %vm1568_vm8, %v6683_v5, 0.0 }
 0x394   : > { %v6044_v33 = vadd.f32 %v2993_v57, %v2653_v58  ;;  %v2648_v41 = vadd.f32 %v5867_v1, %v2647_v37  ;;  %v6685_v18 = vmax.f32 %v6029_v50, 0.0  ;;  %v6686_v58 = vmax.f32 %v6042_v47, 0.0 }
 0x395   : > { %v4352_v32 = vpop.f32.mrf.mxu0  ;;  %3176 = vadd.xlane.f32.xlu0 %v3175_v36  ;;  %v2873_v57 = vcombine.high %v2871_v44, %v2871_v44  ;;  %v2904_v37 = vcombine.high %v2894_v62, %v2894_v62 }
 0x396   : > { %v6050_v9 = vadd.f32 %v2989_v26, %v2648_v41  ;;  %v3184_v29 = vsel %vm1568_vm8, %v6685_v18, 0.0  ;;  %v6684_v10 = vmax.f32 %v6044_v33, 0.0  ;;  %v3009_v41 = vrot.slane %v2894_v62, %v6741_v52 }
 0x397   : > { %v2657_v28 = vpop.f32.mrf.mxu0  ;;  %3185 = vadd.xlane.f32.xlu1 %v3184_v29 }
 0x398   : > { %v2658_v38 = vadd.f32 %v5867_v1, %v2657_v28  ;;  %v3193_v36 = vsel %vm1568_vm8, %v6684_v10, 0.0  ;;  %v6687_v61 = vmax.f32 %v6050_v9, 0.0  ;;  %v2902_v28 = vcombine.high %v2880_v55, %v2880_v55 }
 0x399   : > { %v4355_v34 = vpop.f32.mrf.mxu0  ;;  %3182 = vadd.xlane.f32.xlu0 %v3181_v24  ;;  %v3005_v24 = vrot.slane %v2880_v55, %v6741_v52  ;;  %v2901_v10 = vrot.slane %v2873_v57, %v6740_v60 }
 0x39a   : > { %v6063_v26 = vadd.f32 %v2997_v30, %v2658_v38  ;;  %v2673_v49 = vadd.f32 %v4355_v34, %v5867_v1  ;;  %v3187_v38 = vsel %vm1568_vm8, %v6686_v58, 0.0  ;;  %v3190_v55 = vsel %vm1568_vm8, %v6687_v61, 0.0 }
 0x39b   : > { %v2667_v29 = vpop.f32.mrf.mxu0  ;;  %3194 = vadd.xlane.f32.xlu1 %v3193_v36  ;;  %v3025_v61 = vrot.slane %v2901_v10, %v6741_v52 }
 0x39c   : > { %v2668_v5 = vadd.f32 %v5867_v1, %v2667_v29  ;;  %v6076_v30 = vadd.f32 %v3009_v41, %v2673_v49  ;;  %v6689_v18 = vmax.f32 %v6063_v26, 0.0  ;;  %v3017_v29 = vrot.slane %v2904_v37, %v6741_v52 }
 0x39d   : > { %v4358_v34 = vpop.f32.mrf.mxu0  ;;  %3188 = vadd.xlane.f32.xlu0 %v3187_v38  ;;  %v2856_v49 = vcombine.high %v6015_v59, %v6015_v59  ;;  %v3013_v38 = vrot.slane %v2902_v28, %v6741_v52  ;;  %v2663_v37 = vadd.f32 %v4352_v32, %v5867_v1 }
 0x39e   : > { %v6080_v62 = vadd.f32 %v3005_v24, %v2668_v5  ;;  %v2683_v36 = vadd.f32 %v4358_v34, %v5867_v1  ;;  %v2887_v24 = vrot.slane %v2871_v44, %v6740_v60  ;;  %v3196_v59 = vsel %vm1568_vm8, %v6689_v18, 0.0 }
 0x39f   : > { %v2677_v41 = vpop.f32.mrf.mxu0  ;;  %3191 = vadd.xlane.f32.xlu1 %v3190_v55  ;;  %v3123_v28 = vmax.f32 %v6076_v30, 0.0  ;;  %v3001_v32 = vrot.slane %v2856_v49, %v6741_v52 }
 0x3a0   : > { %v6090_v57 = vadd.f32 %v3017_v29, %v2683_v36  ;;  %v2678_v5 = vadd.f32 %v5867_v1, %v2677_v41  ;;  %v6691_v34 = vmax.f32 %v6080_v62, 0.0  ;;  %v2905_v41 = vcombine.high %v2901_v10, %v2901_v10 }
 0x3a1   : > { %v4361_v58 = vpop.f32.mrf.mxu0 }
 0x3a2   : > { %v6101_v55 = vadd.f32 %v3013_v38, %v2678_v5  ;;  %v2693_v36 = vadd.f32 %v4361_v58, %v5867_v1  ;;  %v3202_v60 = vsel %vm1568_vm8, %v6691_v34, 0.0  ;;  %v3125_v44 = vmax.f32 %v6090_v57, 0.0 }
 0x3a3   : > { %v2687_v29 = vpop.f32.mrf.mxu0  ;;  %3203 = vadd.xlane.f32.xlu0 %v3202_v60  ;;  %3197 = vadd.xlane.f32.xlu1 %v3196_v59  ;;  %v3021_v38 = vrot.slane %v2887_v24, %v6741_v52  ;;  %v2903_v5 = vcombine.high %v2887_v24, %v2887_v24  ;;  %v6113_v58 = vadd.f32 %v3001_v32, %v2663_v37  ;;  %v3205_v34 = vsel %vm1568_vm8, %v3123_v28, 0.0 }
 0x3a4   : > { %v6109_v7 = vadd.f32 %v3025_v61, %v2693_v36  ;;  %v2688_v18 = vadd.f32 %v5867_v1, %v2687_v29  ;;  %v3124_v49 = vmax.f32 %v6101_v55, 0.0  ;;  %v3211_v61 = vsel %vm1568_vm8, %v3125_v44, 0.0 }
 0x3a5   : > { %v4364_v54 = vpop.f32.mrf.mxu0  ;;  %v3033_v37 = vrot.slane %v2905_v41, %v6741_v52  ;;  %v3029_v60 = vrot.slane %v2903_v5, %v6741_v52 }
 0x3a6   : > { %v6119_v19 = vadd.f32 %v3021_v38, %v2688_v18  ;;  %v2703_v10 = vadd.f32 %v4364_v54, %v5867_v1  ;;  %v3127_v59 = vmax.f32 %v6109_v7, 0.0  ;;  %v3208_v18 = vsel %vm1568_vm8, %v3124_v49, 0.0 }
 0x3a7   : > { %v2697_v24 = vpop.f32.mrf.mxu0  ;;  %3212 = vadd.xlane.f32.xlu0 %v3211_v61  ;;  %3206 = vadd.xlane.f32.xlu1 %v3205_v34  ;;  %v3121_v54 = vmax.f32 %v6113_v58, 0.0 }
 0x3a8   : > { %v2698_v36 = vadd.f32 %v5867_v1, %v2697_v24  ;;  %v6133_v32 = vadd.f32 %v3033_v37, %v2703_v10  ;;  %v3217_v34 = vsel %vm1568_vm8, %v3127_v59, 0.0  ;;  %v3126_v41 = vmax.f32 %v6119_v19, 0.0 }
 0x3a9   : > { %v3199_v52 = vsel %vm1568_vm8, %v3121_v54, 0.0 }
 0x3aa   : > { %v6135_v29 = vadd.f32 %v3029_v60, %v2698_v36  ;;  %v3214_v1 = vsel %vm1568_vm8, %v3126_v41, 0.0  ;;  %v6694_v5 = vmax.f32 %v6133_v32, 0.0 }
 0x3ab   : > { %3218 = vadd.xlane.f32.xlu0 %v3217_v34  ;;  %3209 = vadd.xlane.f32.xlu1 %v3208_v18 }
 0x3ac   : > { %v6693_v38 = vmax.f32 %v6135_v29, 0.0  ;;  %v3223_v61 = vsel %vm1568_vm8, %v6694_v5, 0.0  ;;  %v6752_v58 = vmax.f32 %v6135_v29, 0.0 }
 0x3ae   : > { %v3220_v10 = vsel %vm1568_vm8, %v6693_v38, 0.0 }
 0x3af   : > { %3215 = vadd.xlane.f32.xlu0 %v3214_v1  ;;  %3200 = vadd.xlane.f32.xlu1 %v3199_v52 }
 0x3b3   : > { %3221 = vadd.xlane.f32.xlu0 %v3220_v10  ;;  %3224 = vadd.xlane.f32.xlu1 %v3223_v61 }
 0x3fa   : > { %v3135_v24 = vpop.xlane.xlu1 %3134 }
 0x3fb   : > { %v3227_v37 = vmul.f32 0.03125, %v3135_v24 }
 0x3fc   : > { %v3132_v36 = vpop.xlane.xlu0 %3131 }
 0x3fd   : > { %v3226_v60 = vmul.f32 0.03125, %v3132_v36  ;;  %v6157_v18 = vsub.f32 %v3099_v21, %v3227_v37 }
 0x3fe   : > { %v3141_v1 = vpop.xlane.xlu1 %3140 }
 0x3ff   : > { %v6161_v34 = vsub.f32 %v3098_v43, %v3226_v60  ;;  %v3229_v52 = vmul.f32 0.03125, %v3141_v1  ;;  %v3291_v5 = vmul.f32 %v6157_v18, %v6157_v18 }
 0x400   : > { %v3138_v38 = vpop.xlane.xlu0 %3137 }
 0x401   : > { %v3228_v10 = vmul.f32 0.03125, %v3138_v38  ;;  %v3290_v61 = vmul.f32 %v6161_v34, %v6161_v34  ;;  %v6169_v24 = vsub.f32 %v3101_v53, %v3229_v52  ;;  %v3325_v46 = vsel %vm1568_vm8, %v3291_v5, 0.0 }
 0x402   : > { %v3147_v21 = vpop.xlane.xlu1 %3146  ;;  %3326 = vadd.xlane.f32.xlu1 %v3325_v46 }
 0x403   : > { %v6174_v48 = vsub.f32 %v3100_v16, %v3228_v10  ;;  %v3322_v43 = vsel %vm1568_vm8, %v3290_v61, 0.0  ;;  %v3231_v37 = vmul.f32 0.03125, %v3147_v21  ;;  %v3293_v38 = vmul.f32 %v6169_v24, %v6169_v24 }
 0x404   : > { %3323 = vadd.xlane.f32.xlu0 %v3322_v43 }
 0x405   : > { %v3292_v63 = vmul.f32 %v6174_v48, %v6174_v48  ;;  %v6183_v53 = vsub.f32 %v3103_v8, %v3231_v37  ;;  %v3331_v4 = vsel %vm1568_vm8, %v3293_v38, 0.0 }
 0x406   : > { %v3153_v5 = vpop.xlane.xlu0 %3152  ;;  %v3144_v16 = vpop.xlane.xlu1 %3143  ;;  %3332 = vadd.xlane.f32.xlu1 %v3331_v4 }
 0x407   : > { %v3233_v36 = vmul.f32 0.03125, %v3153_v5  ;;  %v3328_v60 = vsel %vm1568_vm8, %v3292_v63, 0.0  ;;  %v3230_v1 = vmul.f32 0.03125, %v3144_v16  ;;  %v3295_v52 = vmul.f32 %v6183_v53, %v6183_v53 }
 0x408   : > { %3329 = vadd.xlane.f32.xlu0 %v3328_v60 }
 0x409   : > { %v6191_v10 = vsub.f32 %v3105_v25, %v3233_v36  ;;  %v6195_v13 = vsub.f32 %v3102_v35, %v3230_v1  ;;  %v3337_v61 = vsel %vm1568_vm8, %v3295_v52, 0.0 }
 0x40a   : > { %v3159_v8 = vpop.xlane.xlu0 %3158  ;;  %v3150_v46 = vpop.xlane.xlu1 %3149  ;;  %3338 = vadd.xlane.f32.xlu1 %v3337_v61 }
 0x40b   : > { %v3235_v21 = vmul.f32 0.03125, %v3159_v8  ;;  %v3297_v43 = vmul.f32 %v6191_v10, %v6191_v10  ;;  %v3232_v37 = vmul.f32 0.03125, %v3150_v46  ;;  %v3294_v38 = vmul.f32 %v6195_v13, %v6195_v13 }
 0x40d   : > { %v6204_v2 = vsub.f32 %v3107_v20, %v3235_v21  ;;  %v3343_v3 = vsel %vm1568_vm8, %v3297_v43, 0.0  ;;  %v6209_v35 = vsub.f32 %v3104_v51, %v3232_v37  ;;  %v3334_v63 = vsel %vm1568_vm8, %v3294_v38, 0.0 }
 0x40e   : > { %v3165_v25 = vpop.xlane.xlu0 %3164  ;;  %3344 = vadd.xlane.f32.xlu0 %v3343_v3  ;;  %v3156_v5 = vpop.xlane.xlu1 %3155  ;;  %3335 = vadd.xlane.f32.xlu1 %v3334_v63 }
 0x40f   : > { %v3237_v4 = vmul.f32 0.03125, %v3165_v25  ;;  %v3299_v16 = vmul.f32 %v6204_v2, %v6204_v2  ;;  %v3234_v36 = vmul.f32 0.03125, %v3156_v5  ;;  %v3296_v6 = vmul.f32 %v6209_v35, %v6209_v35 }
 0x411   : > { %v6218_v20 = vsub.f32 %v3109_v17, %v3237_v4  ;;  %v3349_v42 = vsel %vm1568_vm8, %v3299_v16, 0.0  ;;  %v6223_v51 = vsub.f32 %v3106_v39, %v3234_v36  ;;  %v3340_v1 = vsel %vm1568_vm8, %v3296_v6, 0.0 }
 0x412   : > { %v3162_v60 = vpop.xlane.xlu0 %3161  ;;  %3350 = vadd.xlane.f32.xlu0 %v3349_v42  ;;  %3341 = vadd.xlane.f32.xlu1 %v3340_v1  ;;  %v6742_v4 = vmax.f32 %v5984_v27, 0.0 }
 0x413   : > { %v3236_v52 = vmul.f32 0.03125, %v3162_v60  ;;  %v3301_v8 = vmul.f32 %v6218_v20, %v6218_v20  ;;  %v3298_v22 = vmul.f32 %v6223_v51, %v6223_v51 }
 0x415   : > { %v6232_v17 = vsub.f32 %v3108_v14, %v3236_v52  ;;  %v3355_v45 = vsel %vm1568_vm8, %v3301_v8, 0.0  ;;  %v3346_v61 = vsel %vm1568_vm8, %v3298_v22, 0.0  ;;  %v6744_v52 = vmax.f32 %v5997_v56, 0.0 }
 0x416   : > { %v3171_v39 = vpop.xlane.xlu0 %3170  ;;  %3356 = vadd.xlane.f32.xlu0 %v3355_v45  ;;  %3347 = vadd.xlane.f32.xlu1 %v3346_v61  ;;  %v6745_v61 = vmax.f32 %v6029_v50, 0.0 }
 0x417   : > { %v3239_v46 = vmul.f32 0.03125, %v3171_v39  ;;  %v3300_v21 = vmul.f32 %v6232_v17, %v6232_v17 }
 0x418   : > { %v3174_v43 = vpop.xlane.xlu1 %3173 }
 0x419   : > { %v6240_v37 = vsub.f32 %v3111_v23, %v3239_v46  ;;  %v3240_v38 = vmul.f32 0.03125, %v3174_v43  ;;  %v3352_v15 = vsel %vm1568_vm8, %v3300_v21, 0.0 }
 0x41a   : > { %v3168_v14 = vpop.xlane.xlu0 %3167  ;;  %3353 = vadd.xlane.f32.xlu0 %v3352_v15  ;;  %v6746_v15 = vmax.f32 %v6017_v40, 0.0 }
 0x41b   : > { %v6245_v3 = vsub.f32 %v3112_v11, %v3240_v38  ;;  %v3238_v25 = vmul.f32 0.03125, %v3168_v14  ;;  %v3303_v63 = vmul.f32 %v6240_v37, %v6240_v37 }
 0x41c   : > { %v3180_v5 = vpop.xlane.xlu1 %3179 }
 0x41d   : > { %v6251_v16 = vsub.f32 %v6742_v4, %v3238_v25  ;;  %v3242_v0 = vmul.f32 0.03125, %v3180_v5  ;;  %v3361_v23 = vsel %vm1568_vm8, %v3303_v63, 0.0  ;;  %v3304_v36 = vmul.f32 %v6245_v3, %v6245_v3 }
 0x41e   : > { %v3177_v6 = vpop.xlane.xlu0 %3176  ;;  %3362 = vadd.xlane.f32.xlu0 %v3361_v23  ;;  %v6747_v4 = vmax.f32 %v6044_v33, 0.0 }
 0x41f   : > { %v6258_v11 = vsub.f32 %v6743_v12, %v3242_v0  ;;  %v3241_v42 = vmul.f32 0.03125, %v3177_v6  ;;  %v3364_v60 = vsel %vm1568_vm8, %v3304_v36, 0.0  ;;  %v3302_v27 = vmul.f32 %v6251_v16, %v6251_v16 }
 0x420   : > { %v3186_v1 = vpop.xlane.xlu1 %3185  ;;  %3365 = vadd.xlane.f32.xlu1 %v3364_v60  ;;  %v6748_v12 = vmax.f32 %v6042_v47, 0.0 }
 0x421   : > { %v6265_v8 = vsub.f32 %v6744_v52, %v3241_v42  ;;  %v3244_v22 = vmul.f32 0.03125, %v3186_v1  ;;  %v3358_v45 = vsel %vm1568_vm8, %v3302_v27, 0.0  ;;  %v3306_v31 = vmul.f32 %v6258_v11, %v6258_v11 }
 0x422   : > { %v3183_v39 = vpop.xlane.xlu0 %3182  ;;  %3359 = vadd.xlane.f32.xlu0 %v3358_v45  ;;  %v6749_v1 = vmax.f32 %v6050_v9, 0.0  ;;  %v6750_v9 = vmax.f32 %v6080_v62, 0.0 }
 0x423   : > { %v6272_v46 = vsub.f32 %v6745_v61, %v3244_v22  ;;  %v3243_v21 = vmul.f32 0.03125, %v3183_v39  ;;  %v3370_v43 = vsel %vm1568_vm8, %v3306_v31, 0.0  ;;  %v3305_v56 = vmul.f32 %v6265_v8, %v6265_v8 }
 0x424   : > { %v3195_v38 = vpop.xlane.xlu1 %3194  ;;  %3371 = vadd.xlane.f32.xlu1 %v3370_v43 }
 0x425   : > { %v6279_v14 = vsub.f32 %v6746_v15, %v3243_v21  ;;  %v3247_v25 = vmul.f32 0.03125, %v3195_v38  ;;  %v3367_v63 = vsel %vm1568_vm8, %v3305_v56, 0.0  ;;  %v3308_v50 = vmul.f32 %v6272_v46, %v6272_v46 }
 0x426   : > { %3368 = vadd.xlane.f32.xlu0 %v3367_v63  ;;  %v3189_v5 = vpop.xlane.xlu0 %3188  ;;  %v6751_v38 = vmax.f32 %v6063_v26, 0.0 }
 0x427   : > { %v6286_v0 = vsub.f32 %v6747_v4, %v3247_v25  ;;  %v3245_v23 = vmul.f32 0.03125, %v3189_v5  ;;  %v3376_v36 = vsel %vm1568_vm8, %v3308_v50, 0.0  ;;  %v3307_v40 = vmul.f32 %v6279_v14, %v6279_v14 }
 0x428   : > { %v3192_v6 = vpop.xlane.xlu1 %3191  ;;  %3377 = vadd.xlane.f32.xlu1 %v3376_v36 }
 0x429   : > { %v6293_v42 = vsub.f32 %v6748_v12, %v3245_v23  ;;  %v3246_v60 = vmul.f32 0.03125, %v3192_v6  ;;  %v3373_v27 = vsel %vm1568_vm8, %v3307_v40, 0.0  ;;  %v3311_v33 = vmul.f32 %v6286_v0, %v6286_v0 }
 0x42a   : > { %3374 = vadd.xlane.f32.xlu0 %v3373_v27 }
 0x42b   : > { %v6300_v52 = vsub.f32 %v6749_v1, %v3246_v60  ;;  %v3385_v22 = vsel %vm1568_vm8, %v3311_v33, 0.0  ;;  %v3309_v45 = vmul.f32 %v6293_v42, %v6293_v42 }
 0x42c   : > { %v3204_v31 = vpop.xlane.xlu0 %3203  ;;  %v3198_v47 = vpop.xlane.xlu1 %3197  ;;  %3386 = vadd.xlane.f32.xlu1 %v3385_v22 }
 0x42d   : > { %v3250_v39 = vmul.f32 0.03125, %v3204_v31  ;;  %v3248_v61 = vmul.f32 0.03125, %v3198_v47  ;;  %v3379_v21 = vsel %vm1568_vm8, %v3309_v45, 0.0  ;;  %v3310_v43 = vmul.f32 %v6300_v52, %v6300_v52 }
 0x42e   : > { %3380 = vadd.xlane.f32.xlu0 %v3379_v21 }
 0x42f   : > { %v6310_v56 = vsub.f32 %v6750_v9, %v3250_v39  ;;  %v6314_v15 = vsub.f32 %v6751_v38, %v3248_v61  ;;  %v3382_v25 = vsel %vm1568_vm8, %v3310_v43, 0.0 }
 0x430   : > { %v3213_v63 = vpop.xlane.xlu0 %3212  ;;  %v3207_v50 = vpop.xlane.xlu1 %3206  ;;  %3383 = vadd.xlane.f32.xlu1 %v3382_v25 }
 0x431   : > { %v3253_v5 = vmul.f32 0.03125, %v3213_v63  ;;  %v3251_v4 = vmul.f32 0.03125, %v3207_v50  ;;  %v3314_v23 = vmul.f32 %v6310_v56, %v6310_v56  ;;  %v3312_v36 = vmul.f32 %v6314_v15, %v6314_v15 }
 0x433   : > { %v6323_v62 = vsub.f32 %v3125_v44, %v3253_v5  ;;  %v6327_v26 = vsub.f32 %v3123_v28, %v3251_v4  ;;  %v3394_v40 = vsel %vm1568_vm8, %v3314_v23, 0.0  ;;  %v3388_v6 = vsel %vm1568_vm8, %v3312_v36, 0.0 }
 0x434   : > { %3395 = vadd.xlane.f32.xlu0 %v3394_v40  ;;  %v3219_v12 = vpop.xlane.xlu0 %3218  ;;  %v3210_v60 = vpop.xlane.xlu1 %3209  ;;  %3389 = vadd.xlane.f32.xlu1 %v3388_v6  ;;  %v3805_v6 = vld [vmem:[%s6653_s9 + $0x10] sm:$0xff] }
 0x435   : > { %v3255_v27 = vmul.f32 0.03125, %v3219_v12  ;;  %v3252_v33 = vmul.f32 0.03125, %v3210_v60  ;;  %v3317_v1 = vmul.f32 %v6323_v62, %v6323_v62  ;;  %v3315_v57 = vmul.f32 %v6327_v26, %v6327_v26  ;;  %v3804_v12 = vld [vmem:[%s6653_s9 + $0x8] sm:$0xff]  ;;  %v3803_v60 = vld [vmem:[%s6653_s9] sm:$0xff] }
 0x437   : > { %v6337_v30 = vsub.f32 %v3127_v59, %v3255_v27  ;;  %v6341_v28 = vsub.f32 %v3124_v49, %v3252_v33  ;;  %v3403_v44 = vsel %vm1568_vm8, %v3317_v1, 0.0  ;;  %v3397_v22 = vsel %vm1568_vm8, %v3315_v57, 0.0 }
 0x438   : > { %3404 = vadd.xlane.f32.xlu0 %v3403_v44  ;;  %v3216_v45 = vpop.xlane.xlu0 %3215  ;;  %3398 = vadd.xlane.f32.xlu1 %v3397_v22  ;;  %v3201_v31 = vpop.xlane.xlu1 %3200 }
 0x439   : > { %v3254_v47 = vmul.f32 0.03125, %v3216_v45  ;;  %v3249_v39 = vmul.f32 0.03125, %v3201_v31  ;;  %v3319_v61 = vmul.f32 %v6337_v30, %v6337_v30  ;;  %v3316_v7 = vmul.f32 %v6341_v28, %v6341_v28 }
 0x43b   : > { %v6351_v55 = vsub.f32 %v3126_v41, %v3254_v47  ;;  %v6355_v49 = vsub.f32 %v3121_v54, %v3249_v39  ;;  %v3409_v59 = vsel %vm1568_vm8, %v3319_v61, 0.0  ;;  %v3400_v21 = vsel %vm1568_vm8, %v3316_v7, 0.0 }
 0x43c   : > { %3410 = vadd.xlane.f32.xlu0 %v3409_v59  ;;  %v3222_v43 = vpop.xlane.xlu0 %3221  ;;  %3401 = vadd.xlane.f32.xlu1 %v3400_v21  ;;  %v3225_v9 = vpop.xlane.xlu1 %3224  ;;  %v6753_v41 = vmax.f32 %v6133_v32, 0.0  ;;  %v3806_v32 = vld [vmem:[%s6653_s9 + $0x18] sm:$0xff] }
 0x43d   : > { %v3256_v38 = vmul.f32 0.03125, %v3222_v43  ;;  %v3257_v25 = vmul.f32 0.03125, %v3225_v9  ;;  %v3318_v63 = vmul.f32 %v6351_v55, %v6351_v55  ;;  %v3313_v19 = vmul.f32 %v6355_v49, %v6355_v49  ;;  %4365 = vmatprep.subr.mxu1 %v3806_v32 }
 0x43e   : > { %4366 = vmatpush3.msra.mxu1 %v3806_v32 }
 0x43f   : > { %v6365_v54 = vsub.f32 %v6752_v58, %v3256_v38  ;;  %v6369_v50 = vsub.f32 %v6753_v41, %v3257_v25  ;;  %v3406_v5 = vsel %vm1568_vm8, %v3318_v63, 0.0  ;;  %v3391_v4 = vsel %vm1568_vm8, %v3313_v19, 0.0  ;;  %4367 = vmatprep.subr.mxu1 %v3805_v6 }
 0x440   : > { %3407 = vadd.xlane.f32.xlu0 %v3406_v5  ;;  %3392 = vadd.xlane.f32.xlu1 %v3391_v4 }
 0x441   : > { %v3320_v23 = vmul.f32 %v6365_v54, %v6365_v54  ;;  %v3321_v36 = vmul.f32 %v6369_v50, %v6369_v50  ;;  %4368 = vmatpush3.msra.mxu1 %v3805_v6 }
 0x442   : > { %4369 = vmatprep.subr.mxu1 %v3804_v12 }
 0x443   : > { %v3412_v29 = vsel %vm1568_vm8, %v3320_v23, 0.0  ;;  %v3415_v40 = vsel %vm1568_vm8, %v3321_v36, 0.0  ;;  %4370 = vmatpush3.msra.mxu1 %v3804_v12 }
 0x444   : > { %3413 = vadd.xlane.f32.xlu0 %v3412_v29  ;;  %3416 = vadd.xlane.f32.xlu1 %v3415_v40 }
 0x445   : > { %4371 = vmatprep.subr.mxu1 %v3803_v60 }
 0x446   : > { %4372 = vmatpush3.msra.mxu1 %v3803_v60 }
 0x48b   : > { %v3327_v27 = vpop.xlane.xlu1 %3326 }
 0x48c   : > { %v3419_v33 = vmul.f32 0.03125, %v3327_v27 }
 0x48d   : > { %v3324_v1 = vpop.xlane.xlu0 %3323 }
 0x48e   : > { %v3418_v57 = vmul.f32 0.03125, %v3324_v1  ;;  %v3451_v44 = vadd.f32 1e-05, %v3419_v33 }
 0x48f   : > { %v3333_v45 = vpop.xlane.xlu1 %3332 }
 0x490   : > { %v3450_v22 = vadd.f32 1e-05, %v3418_v57  ;;  %4485 = vrsqrt.f32 %v3451_v44  ;;  %v3421_v31 = vmul.f32 0.03125, %v3333_v45 }
 0x491   : > { %v3330_v47 = vpop.xlane.xlu0 %3329 }
 0x492   : > { %4487 = vrsqrt.f32 %v3450_v22  ;;  %v3420_v39 = vmul.f32 0.03125, %v3330_v47  ;;  %v3453_v61 = vadd.f32 1e-05, %v3421_v31 }
 0x493   : > { %v3339_v59 = vpop.xlane.xlu1 %3338 }
 0x494   : > { %v3452_v7 = vadd.f32 1e-05, %v3420_v39  ;;  %4489 = vrsqrt.f32 %v3453_v61  ;;  %v3423_v21 = vmul.f32 0.03125, %v3339_v59 }
 0x496   : > { %4491 = vrsqrt.f32 %v3452_v7  ;;  %v3455_v43 = vadd.f32 1e-05, %v3423_v21 }
 0x497   : > { %v3345_v9 = vpop.xlane.xlu0 %3344  ;;  %v3336_v25 = vpop.xlane.xlu1 %3335 }
 0x498   : > { %v3425_v38 = vmul.f32 0.03125, %v3345_v9  ;;  %4493 = vrsqrt.f32 %v3455_v43  ;;  %v3422_v63 = vmul.f32 0.03125, %v3336_v25 }
 0x49a   : > { %v3457_v19 = vadd.f32 1e-05, %v3425_v38  ;;  %v3454_v58 = vadd.f32 1e-05, %v3422_v63 }
 0x49b   : > { %v3351_v41 = vpop.xlane.xlu0 %3350  ;;  %v3342_v4 = vpop.xlane.xlu1 %3341 }
 0x49c   : > { %4495 = vrsqrt.f32 %v3457_v19  ;;  %v3427_v5 = vmul.f32 0.03125, %v3351_v41  ;;  %v3424_v23 = vmul.f32 0.03125, %v3342_v4 }
 0x49d   : > { %4497 = vrsqrt.f32 %v3454_v58  ;;  %v4486_v36 = vpop.eup %4485 }
 0x49e   : > { %v3459_v29 = vadd.f32 1e-05, %v3427_v5  ;;  %v3515_v32 = vmul.f32 %v4486_v36, %v6157_v18  ;;  %v3456_v6 = vadd.f32 1e-05, %v3424_v23 }
 0x49f   : > { %v4488_v40 = vpop.eup %4487  ;;  %v3357_v12 = vpop.xlane.xlu0 %3356 }
 0x4a0   : > { %v3514_v60 = vmul.f32 %v4488_v40, %v6161_v34  ;;  %4499 = vrsqrt.f32 %v3459_v29  ;;  %v3429_v27 = vmul.f32 0.03125, %v3357_v12  ;;  %v3348_v33 = vpop.xlane.xlu1 %3347  ;;  %v3553_v1 = vsel %vm1568_vm8, %v3515_v32, 0.0 }
 0x4a1   : > { %4501 = vrsqrt.f32 %v3456_v6  ;;  %v3426_v57 = vmul.f32 0.03125, %v3348_v33  ;;  %v4490_v44 = vpop.eup %4489  ;;  %v3554_v22 = vrot.slane %v3553_v1, 4 }
 0x4a2   : > { %v3546_v45 = vsel %vm1568_vm8, %v3514_v60, 0.0  ;;  %v3461_v31 = vadd.f32 1e-05, %v3429_v27  ;;  %v3517_v18 = vmul.f32 %v4490_v44, %v6169_v24 }
 0x4a3   : > { %v4492_v47 = vpop.eup %4491  ;;  %v3547_v39 = vrot.slane %v3546_v45, 4  ;;  %v3458_v61 = vadd.f32 1e-05, %v3426_v57  ;;  %v3354_v7 = vpop.xlane.xlu0 %3353  ;;  %v3555_v59 = vadd.f32 %v3554_v22, %v3553_v1 }
 0x4a4   : > { %v3516_v34 = vmul.f32 %v4492_v47, %v6174_v48  ;;  %4503 = vrsqrt.f32 %v3461_v31  ;;  %v3428_v21 = vmul.f32 0.03125, %v3354_v7  ;;  %v3567_v9 = vsel %vm1568_vm8, %v3517_v18, 0.0 }
 0x4a5   : > { %v3548_v43 = vadd.f32 %v3547_v39, %v3546_v45  ;;  %4505 = vrsqrt.f32 %v3458_v61  ;;  %v4494_v38 = vpop.eup %4493  ;;  %v3556_v25 = vrot.slane %v3555_v59, 2  ;;  %v3568_v63 = vrot.slane %v3567_v9, 4 }
 0x4a6   : > { %v3560_v19 = vsel %vm1568_vm8, %v3516_v34, 0.0  ;;  %v3460_v58 = vadd.f32 1e-05, %v3428_v21  ;;  %v3519_v24 = vmul.f32 %v4494_v38, %v6183_v53 }
 0x4a7   : > { %v3549_v41 = vrot.slane %v3548_v43, 2  ;;  %v3561_v5 = vrot.slane %v3560_v19, 4  ;;  %v3363_v4 = vpop.xlane.xlu0 %3362  ;;  %v3557_v23 = vadd.f32 %v3556_v25, %v3555_v59  ;;  %v3569_v36 = vadd.f32 %v3568_v63, %v3567_v9 }
 0x4a8   : > { %4507 = vrsqrt.f32 %v3460_v58  ;;  %v3431_v48 = vmul.f32 0.03125, %v3363_v4  ;;  %v6401_v6 = vsel %vm1568_vm8, %v3519_v24, 0.0 }
 0x4a9   : > { %v4496_v29 = vpop.eup %4495  ;;  %v3550_v40 = vadd.f32 %v3549_v41, %v3548_v43  ;;  %v3562_v32 = vadd.f32 %v3561_v5, %v3560_v19  ;;  %v3366_v12 = vpop.xlane.xlu1 %3365  ;;  %v3558_v27 = vrot.slane %v3557_v23, 1  ;;  %v3570_v1 = vrot.slane %v3569_v36, 2 }
 0x4aa   : > { %v4498_v60 = vpop.eup %4497  ;;  %v3463_v33 = vadd.f32 1e-05, %v3431_v48  ;;  %v3432_v53 = vmul.f32 0.03125, %v3366_v12  ;;  %v3582_v31 = vrot.slane %v6401_v6, 4  ;;  %v6407_v34 = vmul.f32 %v4496_v29, %v6191_v10 }
 0x4ab   : > { %v3563_v57 = vrot.slane %v3562_v32, 2  ;;  %v3518_v44 = vmul.f32 %v4498_v60, %v6195_v13  ;;  %v3360_v22 = vpop.xlane.xlu0 %3359  ;;  %v3551_v45 = vrot.slane %v3550_v40, 1  ;;  %v6410_v63 = vadd.f32 %v3558_v27, %v3557_v23 }
 0x4ac   : > { %4509 = vrsqrt.f32 %v3463_v33  ;;  %v3430_v47 = vmul.f32 0.03125, %v3360_v22  ;;  %v3464_v7 = vadd.f32 1e-05, %v3432_v53  ;;  %v3571_v58 = vadd.f32 %v3570_v1, %v3569_v36 }
 0x4ad   : > { %v4500_v39 = vpop.eup %4499  ;;  %v3564_v18 = vadd.f32 %v3563_v57, %v3562_v32  ;;  %v3574_v61 = vsel %vm1568_vm8, %v3518_v44, 0.0  ;;  %v3372_v59 = vpop.xlane.xlu1 %3371  ;;  %v6416_v32 = vadd.f32 %v3551_v45, %v3550_v40 }
 0x4ae   : > { %v4502_v21 = vpop.eup %4501  ;;  %v3575_v43 = vrot.slane %v3574_v61, 4  ;;  %v3523_v13 = vmul.f32 %v4500_v39, %v6204_v2  ;;  %v3462_v9 = vadd.f32 1e-05, %v3430_v47  ;;  %v3434_v38 = vmul.f32 0.03125, %v3372_v59 }
 0x4af   : > { %4511 = vrsqrt.f32 %v3464_v7  ;;  %v3369_v25 = vpop.xlane.xlu0 %3368  ;;  %v3565_v19 = vrot.slane %v3564_v18, 1  ;;  %v6414_v48 = vmul.f32 %v4502_v21, %v6209_v35  ;;  %v3572_v47 = vrot.slane %v3571_v58, 1 }
 0x4b0   : > { %v3576_v41 = vadd.f32 %v3575_v43, %v3574_v61  ;;  %v3609_v5 = vsel %vm1568_vm8, %v3523_v13, 0.0  ;;  %4513 = vrsqrt.f32 %v3462_v9  ;;  %v3466_v24 = vadd.f32 1e-05, %v3434_v38 }
 0x4b1   : > { %v4504_v4 = vpop.eup %4503  ;;  %v3610_v10 = vrot.slane %v3609_v5, 4  ;;  %v3433_v29 = vmul.f32 0.03125, %v3369_v25  ;;  %v3378_v2 = vpop.xlane.xlu1 %3377  ;;  %v6419_v36 = vadd.f32 %v3565_v19, %v3564_v18 }
 0x4b2   : > { %v4506_v12 = vpop.eup %4505  ;;  %v3525_v23 = vmul.f32 %v4504_v4, %v6218_v20  ;;  %4515 = vrsqrt.f32 %v3466_v24  ;;  %v3436_v60 = vmul.f32 0.03125, %v3378_v2  ;;  %v3577_v44 = vrot.slane %v3576_v41, 2 }
 0x4b3   : > { %v3611_v27 = vadd.f32 %v3610_v10, %v3609_v5  ;;  %v3522_v33 = vmul.f32 %v4506_v12, %v6223_v51  ;;  %v3465_v1 = vadd.f32 1e-05, %v3433_v29  ;;  %v3375_v57 = vpop.xlane.xlu0 %3374 }
 0x4b4   : > { %v3623_v35 = vsel %vm1568_vm8, %v3525_v23, 0.0  ;;  %v3468_v53 = vadd.f32 1e-05, %v3436_v60  ;;  %v3435_v22 = vmul.f32 0.03125, %v3375_v57  ;;  %v6425_v9 = vadd.f32 %v3577_v44, %v3576_v41 }
 0x4b5   : > { %v4508_v40 = vpop.eup %4507  ;;  %v3612_v45 = vrot.slane %v3611_v27, 2  ;;  %v3624_v39 = vrot.slane %v3623_v35, 4  ;;  %v3602_v20 = vsel %vm1568_vm8, %v3522_v33, 0.0  ;;  %4517 = vrsqrt.f32 %v3465_v1  ;;  %v3387_v61 = vpop.xlane.xlu1 %3386 }
 0x4b6   : > { %v3603_v18 = vrot.slane %v3602_v20, 4  ;;  %v3524_v7 = vmul.f32 %v4508_v40, %v6232_v17  ;;  %4519 = vrsqrt.f32 %v3468_v53  ;;  %v3467_v51 = vadd.f32 1e-05, %v3435_v22 }
 0x4b7   : > { %v3613_v59 = vadd.f32 %v3612_v45, %v3611_v27  ;;  %v3625_v21 = vadd.f32 %v3624_v39, %v3623_v35  ;;  %v3439_v43 = vmul.f32 0.03125, %v3387_v61  ;;  %v3381_v13 = vpop.xlane.xlu0 %3380  ;;  %v6429_v41 = vadd.f32 %v3572_v47, %v3571_v58 }
 0x4b8   : > { %v3604_v38 = vadd.f32 %v3603_v18, %v3602_v20  ;;  %v3616_v25 = vsel %vm1568_vm8, %v3524_v7, 0.0  ;;  %4521 = vrsqrt.f32 %v3467_v51  ;;  %v3437_v19 = vmul.f32 0.03125, %v3381_v13 }
 0x4b9   : > { %v4510_v5 = vpop.eup %4509  ;;  %v3614_v24 = vrot.slane %v3613_v59, 1  ;;  %v3626_v4 = vrot.slane %v3625_v21, 2  ;;  %v3617_v10 = vrot.slane %v3616_v25, 4  ;;  %v3471_v29 = vadd.f32 1e-05, %v3439_v43  ;;  %v3384_v2 = vpop.xlane.xlu1 %3383 }
 0x4ba   : > { %v3605_v17 = vrot.slane %v3604_v38, 2  ;;  %v3527_v12 = vmul.f32 %v4510_v5, %v6240_v37  ;;  %v3469_v23 = vadd.f32 1e-05, %v3437_v19  ;;  %v3438_v60 = vmul.f32 0.03125, %v3384_v2 }
 0x4bb   : > { %v3615_v27 = vadd.f32 %v3614_v24, %v3613_v59  ;;  %v3618_v33 = vadd.f32 %v3617_v10, %v3616_v25  ;;  %4523 = vrsqrt.f32 %v3471_v29  ;;  %v6432_v22 = vadd.f32 %v3626_v4, %v3625_v21 }
 0x4bc   : > { %v4512_v1 = vpop.eup %4511  ;;  %v3606_v57 = vadd.f32 %v3605_v17, %v3604_v38  ;;  %v3637_v44 = vsel %vm1568_vm8, %v3527_v12, 0.0  ;;  %4525 = vrsqrt.f32 %v3469_v23  ;;  %v3470_v35 = vadd.f32 1e-05, %v3438_v60 }
 0x4bd   : > { %v4514_v53 = vpop.eup %4513  ;;  %v3619_v40 = vrot.slane %v3618_v33, 2  ;;  %v3638_v45 = vrot.slane %v3637_v44, 4  ;;  %v3396_v39 = vpop.xlane.xlu0 %3395  ;;  %v3579_v20 = vrot.slane %v6425_v9, 1  ;;  %v3528_v18 = vmul.f32 %v4512_v1, %v6245_v3 }
 0x4be   : > { %v3390_v37 = vpop.xlane.xlu1 %3389  ;;  %v3607_v61 = vrot.slane %v3606_v57, 1  ;;  %v3526_v58 = vmul.f32 %v4514_v53, %v6251_v16  ;;  %4527 = vrsqrt.f32 %v3470_v35  ;;  %v3442_v59 = vmul.f32 0.03125, %v3396_v39 }
 0x4bf   : > { %v4516_v47 = vpop.eup %4515  ;;  %v3620_v7 = vadd.f32 %v3619_v40, %v3618_v33  ;;  %v6437_v51 = vadd.f32 %v3638_v45, %v3637_v44  ;;  %v3440_v43 = vmul.f32 0.03125, %v3390_v37  ;;  %v6439_v21 = vmul.f32 0.125, %v3615_v27 }
 0x4c0   : > { %v3644_v13 = vsel %vm1568_vm8, %v3528_v18, 0.0  ;;  %v3630_v38 = vsel %vm1568_vm8, %v3526_v58, 0.0  ;;  %v3530_v25 = vmul.f32 %v4516_v47, %v6258_v11  ;;  %v3608_v19 = vadd.f32 %v3607_v61, %v3606_v57 }
 0x4c1   : > { %v3621_v5 = vrot.slane %v3620_v7, 1  ;;  %v3645_v3 = vrot.slane %v3644_v13, 4  ;;  %v3631_v24 = vrot.slane %v3630_v38, 4  ;;  %v3405_v16 = vpop.xlane.xlu0 %3404  ;;  %v3628_v10 = vrot.slane %v6432_v22, 1 }
 0x4c2   : > { %v4518_v4 = vpop.eup %4517  ;;  %v3640_v29 = vrot.slane %v6437_v51, 2  ;;  %v3658_v2 = vsel %vm1568_vm8, %v3530_v25, 0.0  ;;  %v3474_v17 = vadd.f32 1e-05, %v3442_v59  ;;  %v3472_v33 = vadd.f32 1e-05, %v3440_v43 }
 0x4c3   : > { %v4520_v12 = vpop.eup %4519  ;;  %v3622_v23 = vadd.f32 %v3621_v5, %v3620_v7  ;;  %v3632_v60 = vadd.f32 %v3631_v24, %v3630_v38  ;;  %v3659_v27 = vrot.slane %v3658_v2, 4  ;;  %v3529_v11 = vmul.f32 %v4518_v4, %v6265_v8 }
 0x4c4   : > { %v3532_v1 = vmul.f32 %v4520_v12, %v6272_v46  ;;  %4529 = vrsqrt.f32 %v3474_v17  ;;  %v3445_v57 = vmul.f32 0.03125, %v3405_v16  ;;  %v6449_v35 = vmul.f32 0.125, %v3608_v19 }
 0x4c5   : > { %v4522_v44 = vpop.eup %4521  ;;  %v6451_v53 = vadd.f32 %v3645_v3, %v3644_v13  ;;  %v3633_v40 = vrot.slane %v3632_v60, 2  ;;  %v3660_v45 = vadd.f32 %v3659_v27, %v3658_v2  ;;  %v6453_v39 = vmul.f32 0.125, %v3622_v23  ;;  %v3399_v13 = vpop.xlane.xlu1 %3398 }
 0x4c6   : > { %v3672_v37 = vsel %vm1568_vm8, %v3532_v1, 0.0  ;;  %v3531_v61 = vmul.f32 %v4522_v44, %v6279_v14  ;;  %v3477_v18 = vadd.f32 1e-05, %v3445_v57  ;;  %v6458_v8 = vsel %vm1568_vm8, %v3529_v11, 0.0  ;;  %v3411_v27 = vpop.xlane.xlu0 %3410 }
 0x4c7   : > { %v3661_v58 = vrot.slane %v3660_v45, 2  ;;  %v3673_v46 = vrot.slane %v3672_v37, 4  ;;  %4531 = vrsqrt.f32 %v3472_v33  ;;  %v6460_v7 = vadd.f32 %v3633_v40, %v3632_v60 }
 0x4c8   : > { %v4524_v47 = vpop.eup %4523  ;;  %v3665_v59 = vsel %vm1568_vm8, %v3531_v61, 0.0  ;;  %4533 = vrsqrt.f32 %v3477_v18  ;;  %v3583_v43 = vadd.f32 %v3582_v31, %v6401_v6  ;;  %v3652_v3 = vrot.slane %v6458_v8, 4 }
 0x4c9   : > { %v4526_v38 = vpop.eup %4525  ;;  %v6466_v14 = vadd.f32 %v3661_v58, %v3660_v45  ;;  %v3674_v25 = vadd.f32 %v3673_v46, %v3672_v37  ;;  %v3666_v19 = vrot.slane %v3665_v59, 4  ;;  %v3535_v5 = vmul.f32 %v4524_v47, %v6286_v0  ;;  %v3402_v40 = vpop.xlane.xlu1 %3401 }
 0x4ca   : > { %v3533_v24 = vmul.f32 %v4526_v38, %v6293_v42  ;;  %v3584_v16 = vrot.slane %v3583_v43, 2  ;;  %v3588_v4 = vsel %vm1568_vm8, %v6414_v48, 0.0  ;;  %v3580_v31 = vadd.f32 %v3579_v20, %v6425_v9 }
 0x4cb   : > { %v4528_v2 = vpop.eup %4527  ;;  %v3667_v17 = vadd.f32 %v3666_v19, %v3665_v59  ;;  %v6474_v6 = vsel %vm1568_vm8, %v3535_v5, 0.0  ;;  %v3595_v0 = vsel %vm1568_vm8, %v6407_v34, 0.0  ;;  %v3675_v12 = vrot.slane %v3674_v25, 2 }
 0x4cc   : > { %v3679_v23 = vsel %vm1568_vm8, %v3533_v24, 0.0  ;;  %v3534_v42 = vmul.f32 %v4528_v2, %v6300_v52  ;;  %v3585_v60 = vadd.f32 %v3584_v16, %v3583_v43  ;;  %v3663_v48 = vrot.slane %v6466_v14, 1 }
 0x4cd   : > { %v3668_v33 = vrot.slane %v3667_v17, 2  ;;  %v3680_v11 = vrot.slane %v3679_v23, 4  ;;  %v3589_v1 = vrot.slane %v3588_v4, 4  ;;  %v3694_v57 = vrot.slane %v6474_v6, 4 }
 0x4ce   : > { %v3686_v44 = vsel %vm1568_vm8, %v3534_v42, 0.0  ;;  %v3586_v9 = vrot.slane %v3585_v60, 1  ;;  %v3596_v20 = vrot.slane %v3595_v0, 4  ;;  %v3771_v52 = vmul.f32 0.125, %v6416_v32  ;;  %v3408_v32 = vpop.xlane.xlu0 %3407 }
 0x4cf   : > { %v6486_v34 = vadd.f32 %v3668_v33, %v3667_v17  ;;  %v6488_v45 = vadd.f32 %v3680_v11, %v3679_v23  ;;  %v3590_v37 = vadd.f32 %v3589_v1, %v3588_v4  ;;  %v6491_v61 = vadd.f32 %v3675_v12, %v3674_v25 }
 0x4d0   : > { %v3587_v18 = vadd.f32 %v3586_v9, %v3585_v60  ;;  %v3597_v58 = vadd.f32 %v3596_v20, %v3595_v0  ;;  %v3773_v46 = vmul.f32 0.125, %v6419_v36  ;;  %v3687_v43 = vrot.slane %v3686_v44, 4  ;;  %v3393_v60 = vpop.xlane.xlu1 %3392 }
 0x4d1   : > { %v4530_v47 = vpop.eup %4529  ;;  %v3670_v59 = vrot.slane %v6486_v34, 1  ;;  %v3591_v38 = vrot.slane %v3590_v37, 2  ;;  %v3772_v19 = vmul.f32 0.125, %v6410_v63  ;;  %v3682_v5 = vrot.slane %v6488_v45, 2 }
 0x4d2   : > { %v3538_v24 = vmul.f32 %v4530_v47, %v6310_v56  ;;  %v3598_v16 = vrot.slane %v3597_v58, 2  ;;  %v3775_v4 = vmul.f32 0.125, %v3580_v31  ;;  %v3774_v2 = vmul.f32 0.125, %v6429_v41 }
 0x4d3   : > { %v3592_v25 = vadd.f32 %v3591_v38, %v3590_v37  ;;  %v3776_v17 = vmul.f32 0.125, %v3587_v18  ;;  %v3846_v36 = vsel %vm686_vm1, %v3772_v19, %v3771_v52  ;;  %v3443_v63 = vmul.f32 0.03125, %v3399_v13  ;;  %v3414_v19 = vpop.xlane.xlu0 %3413 }
 0x4d4   : > { %v4532_v0 = vpop.eup %4531  ;;  %v3714_v12 = vsel %vm1568_vm8, %v3538_v24, 0.0  ;;  %v3599_v23 = vadd.f32 %v3598_v16, %v3597_v58  ;;  %v3847_v42 = vsel %vm688_vm2, %v3773_v46, %v3846_v36  ;;  %v3447_v1 = vmul.f32 0.03125, %v3411_v27 }
 0x4d5   : > { %v4534_v33 = vpop.eup %4533  ;;  %v3715_v11 = vrot.slane %v3714_v12, 4  ;;  %v3593_v56 = vrot.slane %v3592_v25, 1  ;;  %v3848_v31 = vsel %vm690_vm3, %v3774_v2, %v3847_v42  ;;  %v3475_v37 = vadd.f32 1e-05, %v3443_v63  ;;  %v3417_v42 = vpop.xlane.xlu1 %3416 }
 0x4d6   : > { %v3541_v9 = vmul.f32 %v4534_v33, %v6323_v62  ;;  %v3600_v41 = vrot.slane %v3599_v23, 1  ;;  %v3849_v20 = vsel %vm692_vm4, %v3775_v4, %v3848_v31  ;;  %v3479_v47 = vadd.f32 1e-05, %v3447_v1 }
 0x4d7   : > { %v3716_v52 = vadd.f32 %v3715_v11, %v3714_v12  ;;  %v3594_v18 = vadd.f32 %v3593_v56, %v3592_v25  ;;  %v3850_v58 = vsel %vm694_vm5, %v3776_v17, %v3849_v20  ;;  %4535 = vrsqrt.f32 %v3475_v37 }
 0x4d8   : > { %v3735_v13 = vsel %vm1568_vm8, %v3541_v9, 0.0  ;;  %v3601_v46 = vadd.f32 %v3600_v41, %v3599_v23  ;;  %v3444_v38 = vmul.f32 0.03125, %v3402_v40  ;;  %4537 = vrsqrt.f32 %v3479_v47 }
 0x4d9   : > { %v3717_v24 = vrot.slane %v3716_v52, 2  ;;  %v3736_v16 = vrot.slane %v3735_v13, 4  ;;  %v3777_v27 = vmul.f32 0.125, %v3594_v18  ;;  %v3446_v36 = vmul.f32 0.03125, %v3408_v32 }
 0x4da   : > { %v3778_v62 = vmul.f32 0.125, %v3601_v46  ;;  %v3476_v2 = vadd.f32 1e-05, %v3444_v38  ;;  %v3441_v4 = vmul.f32 0.03125, %v3393_v60  ;;  %v3688_v12 = vadd.f32 %v3687_v43, %v3686_v44 }
 0x4db   : > { %v3536_v25 = vmul.f32 %v4532_v0, %v6314_v15  ;;  %v3851_v17 = vsel %vm696_vm6, %v3777_v27, %v3850_v58  ;;  %v3448_v63 = vmul.f32 0.03125, %v3414_v19  ;;  %v3478_v40 = vadd.f32 1e-05, %v3446_v36 }
 0x4dc   : > { %v3852_v23 = vsel %vm698_vm7, %v3778_v62, %v3851_v17  ;;  %4539 = vrsqrt.f32 %v3476_v2  ;;  %v3473_v33 = vadd.f32 1e-05, %v3441_v4  ;;  %v6510_v11 = vadd.f32 %v3717_v24, %v3716_v52 }
 0x4dd   : > { %v6512_v56 = vadd.f32 %v3736_v16, %v3735_v13  ;;  %4373 = vmatprep.mubr.msk.f32.mxu1 %vm1568_vm8, %v3852_v23  ;;  %v3480_v32 = vadd.f32 1e-05, %v3448_v63  ;;  %v3449_v60 = vmul.f32 0.03125, %v3417_v42  ;;  %4541 = vrsqrt.f32 %v3478_v40 }
 0x4de   : > { %v3629_v15 = vadd.f32 %v3628_v10, %v6432_v22  ;;  %v3635_v44 = vrot.slane %v6460_v7, 1  ;;  %v3641_v43 = vadd.f32 %v3640_v29, %v6437_v51  ;;  %4543 = vrsqrt.f32 %v3473_v33 }
 0x4df   : > { %v3481_v0 = vadd.f32 1e-05, %v3449_v60  ;;  %v3647_v31 = vrot.slane %v6451_v53, 2  ;;  %v3653_v1 = vadd.f32 %v3652_v3, %v6458_v8  ;;  %4545 = vrsqrt.f32 %v3480_v32 }
 0x4e0   : > { %v3636_v9 = vadd.f32 %v3635_v44, %v6460_v7  ;;  %v3642_v41 = vrot.slane %v3641_v43, 1  ;;  %v3782_v20 = vmul.f32 0.125, %v3629_v15  ;;  %v3853_v51 = vsel %vm686_vm1, %v6439_v21, %v6449_v35 }
 0x4e1   : > { %4547 = vrsqrt.f32 %v3481_v0  ;;  %v3648_v22 = vadd.f32 %v3647_v31, %v6451_v53  ;;  %v3654_v10 = vrot.slane %v3653_v1, 2  ;;  %v3719_v29 = vrot.slane %v6510_v11, 1 }
 0x4e2   : > { %v3643_v37 = vadd.f32 %v3642_v41, %v3641_v43  ;;  %v3783_v52 = vmul.f32 0.125, %v3636_v9  ;;  %v3854_v8 = vsel %vm688_vm2, %v6453_v39, %v3853_v51  ;;  %v3738_v3 = vrot.slane %v6512_v56, 2 }
 0x4e3   : > { %v3649_v7 = vrot.slane %v3648_v22, 1  ;;  %v3655_v18 = vadd.f32 %v3654_v10, %v3653_v1  ;;  %v3855_v58 = vsel %vm690_vm3, %v3782_v20, %v3854_v8  ;;  %v3664_v21 = vadd.f32 %v3663_v48, %v6466_v14 }
 0x4e4   : > { %v3784_v47 = vmul.f32 0.125, %v3643_v37  ;;  %v3856_v53 = vsel %vm692_vm4, %v3783_v52, %v3855_v58  ;;  %v3683_v35 = vadd.f32 %v3682_v5, %v6488_v45  ;;  %v4536_v13 = vpop.eup %4535  ;;  %v3689_v38 = vrot.slane %v3688_v12, 2 }
 0x4e5   : > { %v3650_v46 = vadd.f32 %v3649_v7, %v3648_v22  ;;  %v3656_v39 = vrot.slane %v3655_v18, 1  ;;  %v3695_v19 = vadd.f32 %v3694_v57, %v6474_v6  ;;  %v4538_v24 = vpop.eup %4537  ;;  %v3539_v16 = vmul.f32 %v4536_v13, %v6327_v26 }
 0x4e6   : > { %v3857_v27 = vsel %vm694_vm5, %v3784_v47, %v3856_v53  ;;  %v3677_v62 = vrot.slane %v6491_v61, 1  ;;  %v3684_v14 = vrot.slane %v3683_v35, 1  ;;  %v3543_v48 = vmul.f32 %v4538_v24, %v6337_v30 }
 0x4e7   : > { %v3657_v2 = vadd.f32 %v3656_v39, %v3655_v18  ;;  %v3785_v45 = vmul.f32 0.125, %v3650_v46  ;;  %v3690_v5 = vadd.f32 %v3689_v38, %v3688_v12  ;;  %v3721_v36 = vsel %vm1568_vm8, %v3539_v16, 0.0 }
 0x4e8   : > { %v3671_v4 = vadd.f32 %v3670_v59, %v6486_v34  ;;  %v3696_v6 = vrot.slane %v3695_v19, 2  ;;  %v3700_v57 = vsel %vm1568_vm8, %v3536_v25, 0.0  ;;  %v3722_v42 = vrot.slane %v3721_v36, 4 }
 0x4e9   : > { %v4540_v26 = vpop.eup %4539  ;;  %v3749_v17 = vsel %vm1568_vm8, %v3543_v48, 0.0  ;;  %v3786_v63 = vmul.f32 0.125, %v3657_v2  ;;  %v3858_v23 = vsel %vm696_vm6, %v3785_v45, %v3857_v27  ;;  %v3678_v12 = vadd.f32 %v3677_v62, %v6491_v61 }
 0x4ea   : > { %v3540_v30 = vmul.f32 %v4540_v26, %v6341_v28  ;;  %v3691_v40 = vrot.slane %v3690_v5, 1  ;;  %v3697_v33 = vadd.f32 %v3696_v6, %v3695_v19  ;;  %v4542_v32 = vpop.eup %4541  ;;  %v3723_v60 = vadd.f32 %v3722_v42, %v3721_v36 }
 0x4eb   : > { %v3859_v34 = vsel %vm698_vm7, %v3786_v63, %v3858_v23  ;;  %v3685_v59 = vadd.f32 %v3684_v14, %v3683_v35  ;;  %v3701_v15 = vrot.slane %v3700_v57, 4  ;;  %v4544_v25 = vpop.eup %4543  ;;  %v3750_v44 = vrot.slane %v3749_v17, 4 }
 0x4ec   : > { %v3728_v43 = vsel %vm1568_vm8, %v3540_v30, 0.0  ;;  %v3542_v0 = vmul.f32 %v4542_v32, %v6351_v55  ;;  %4374 = vmatmul.mubr.msk.f32.vlgmr.msra.gmra.mxu1 %vm1568_vm8, %v3859_v34  ;;  %v3698_v31 = vrot.slane %v3697_v33, 1  ;;  %v4546_v28 = vpop.eup %4545  ;;  %v3724_v1 = vrot.slane %v3723_v60, 2 }
 0x4ed   : > { %v3729_v61 = vrot.slane %v3728_v43, 4  ;;  %v3537_v9 = vmul.f32 %v4544_v25, %v6355_v49  ;;  %v3702_v41 = vadd.f32 %v3701_v15, %v3700_v57  ;;  %v3692_v10 = vadd.f32 %v3691_v40, %v3690_v5 }
 0x4ee   : > { %v4548_v20 = vpop.eup %4547  ;;  %v3742_v22 = vsel %vm1568_vm8, %v3542_v0, 0.0  ;;  %v3787_v51 = vmul.f32 0.125, %v3664_v21  ;;  %v3788_v37 = vmul.f32 0.125, %v3671_v4  ;;  %v3725_v52 = vadd.f32 %v3724_v1, %v3723_v60 }
 0x4ef   : > { %v3730_v8 = vadd.f32 %v3729_v61, %v3728_v43  ;;  %v3743_v7 = vrot.slane %v3742_v22, 4  ;;  %v3699_v18 = vadd.f32 %v3698_v31, %v3697_v33  ;;  %v3544_v55 = vmul.f32 %v4546_v28, %v6365_v54 }
 0x4f0   : > { %v3545_v58 = vmul.f32 %v4548_v20, %v6369_v50  ;;  %v3703_v47 = vrot.slane %v3702_v41, 2  ;;  %v3707_v53 = vsel %vm1568_vm8, %v3537_v9, 0.0  ;;  %v3790_v46 = vmul.f32 0.125, %v3685_v59 }
 0x4f1   : > { %v3731_v35 = vrot.slane %v3730_v8, 2  ;;  %v3744_v49 = vadd.f32 %v3743_v7, %v3742_v22  ;;  %v3708_v13 = vrot.slane %v3707_v53, 4  ;;  %v3726_v39 = vrot.slane %v3725_v52, 1 }
 0x4f2   : > { %v3704_v38 = vadd.f32 %v3703_v47, %v3702_v41  ;;  %v3789_v19 = vmul.f32 0.125, %v3678_v12  ;;  %v3860_v21 = vsel %vm686_vm1, %v3788_v37, %v3787_v51  ;;  %v3791_v27 = vmul.f32 0.125, %v3692_v10 }
 0x4f3   : > { %v3732_v24 = vadd.f32 %v3731_v35, %v3730_v8  ;;  %v3709_v16 = vadd.f32 %v3708_v13, %v3707_v53  ;;  %v3792_v62 = vmul.f32 0.125, %v3699_v18  ;;  %v3720_v50 = vadd.f32 %v3719_v29, %v6510_v11 }
 0x4f4   : > { %v3705_v14 = vrot.slane %v3704_v38, 1  ;;  %v3861_v54 = vsel %vm688_vm2, %v3789_v19, %v3860_v21  ;;  %v3739_v48 = vadd.f32 %v3738_v3, %v6512_v56  ;;  %v3745_v36 = vrot.slane %v3744_v49, 2  ;;  %v4130_v21 = vld [vmem:[%s6654_s10] ss:$0 sm:$0xff] }
 0x4f5   : > { %v3710_v2 = vrot.slane %v3709_v16, 2  ;;  %v3862_v45 = vsel %vm690_vm3, %v3790_v46, %v3861_v54  ;;  %v3733_v5 = vrot.slane %v3732_v24, 1  ;;  %v3727_v6 = vadd.f32 %v3726_v39, %v3725_v52 }
 0x4f6   : > { %v3706_v4 = vadd.f32 %v3705_v14, %v3704_v38  ;;  %v3740_v57 = vrot.slane %v3739_v48, 1  ;;  %v3751_v26 = vadd.f32 %v3750_v44, %v3749_v17  ;;  %v3746_v23 = vadd.f32 %v3745_v36, %v3744_v49 }
 0x4f7   : > { %v3711_v42 = vadd.f32 %v3710_v2, %v3709_v16  ;;  %v3734_v63 = vadd.f32 %v3733_v5, %v3732_v24  ;;  %v3756_v30 = vsel %vm1568_vm8, %v3544_v55, 0.0  ;;  %v3863_v11 = vsel %vm692_vm4, %v3791_v27, %v3862_v45 }
 0x4f8   : > { %v3793_v12 = vmul.f32 0.125, %v3706_v4  ;;  %v3752_v29 = vrot.slane %v3751_v26, 2  ;;  %v3757_v40 = vrot.slane %v3756_v30, 4  ;;  %v3741_v3 = vadd.f32 %v3740_v57, %v3739_v48 }
 0x4f9   : > { %v3712_v56 = vrot.slane %v3711_v42, 1  ;;  %v3747_v33 = vrot.slane %v3746_v23, 1  ;;  %v3763_v32 = vsel %vm1568_vm8, %v3545_v58, 0.0  ;;  %v3795_v15 = vmul.f32 0.125, %v3720_v50 }
 0x4fa   : > { %v3753_v60 = vadd.f32 %v3752_v29, %v3751_v26  ;;  %v3758_v34 = vadd.f32 %v3757_v40, %v3756_v30  ;;  %v3764_v59 = vrot.slane %v3763_v32, 4  ;;  %v3796_v44 = vmul.f32 0.125, %v3727_v6 }
 0x4fb   : > { %v3713_v17 = vadd.f32 %v3712_v56, %v3711_v42  ;;  %v3748_v25 = vadd.f32 %v3747_v33, %v3746_v23  ;;  %v3797_v43 = vmul.f32 0.125, %v3734_v63  ;;  %v3864_v0 = vsel %vm694_vm5, %v3792_v62, %v3863_v11 }
 0x4fc   : > { %v3754_v31 = vrot.slane %v3753_v60, 1  ;;  %v3759_v28 = vrot.slane %v3758_v34, 2  ;;  %v3765_v1 = vadd.f32 %v3764_v59, %v3763_v32  ;;  %v3865_v9 = vsel %vm696_vm6, %v3793_v12, %v3864_v0 }
 0x4fd   : > { %v3794_v61 = vmul.f32 0.125, %v3713_v17  ;;  %v3867_v41 = vsel %vm686_vm1, %v3796_v44, %v3795_v15  ;;  %v3799_v10 = vmul.f32 0.125, %v3748_v25  ;;  %v3798_v8 = vmul.f32 0.125, %v3741_v3 }
 0x4fe   : > { %v3760_v20 = vadd.f32 %v3759_v28, %v3758_v34  ;;  %v3766_v22 = vrot.slane %v3765_v1, 2  ;;  %v3868_v51 = vsel %vm688_vm2, %v3797_v43, %v3867_v41  ;;  %v3755_v52 = vadd.f32 %v3754_v31, %v3753_v60 }
 0x4ff   : > { %v3866_v37 = vsel %vm698_vm7, %v3794_v61, %v3865_v9  ;;  %v3869_v55 = vsel %vm690_vm3, %v3798_v8, %v3868_v51 }
 0x500   : > { %4376 = vmatprep.mubr.msk.f32.mxu1 %vm1568_vm8, %v3866_v37  ;;  %v3761_v7 = vrot.slane %v3760_v20, 1  ;;  %v3767_v18 = vadd.f32 %v3766_v22, %v3765_v1  ;;  %v3870_v53 = vsel %vm692_vm4, %v3799_v10, %v3869_v55  ;;  %v3800_v35 = vmul.f32 0.125, %v3755_v52 }
 0x502   : > { %v3762_v58 = vadd.f32 %v3761_v7, %v3760_v20  ;;  %v3768_v47 = vrot.slane %v3767_v18, 1  ;;  %v3871_v46 = vsel %vm694_vm5, %v3800_v35, %v3870_v53 }
 0x504   : > { %v3769_v49 = vadd.f32 %v3768_v47, %v3767_v18  ;;  %v3801_v13 = vmul.f32 0.125, %v3762_v58 }
 0x506   : > { %v3802_v39 = vmul.f32 0.125, %v3769_v49  ;;  %v3872_v38 = vsel %vm696_vm6, %v3801_v13, %v3871_v46 }
 0x508   : > { %v3873_v19 = vsel %vm698_vm7, %v3802_v39, %v3872_v38 }
 0x509   : > { %4377 = vmatmul.mubr.msk.f32.gmra.mxu1 %vm1568_vm8, %v3873_v19 }
 0x5ac   : > { %v4375_v24 = vpop.f32.mrf.mxu1 }
 0x5ad   : > { %v3954_v16 = vadd.f32 %v4375_v24, %v4130_v21 }
 0x5ae   : > { %v3948_v27 = vpop.f32.mrf.mxu1 }
 0x5af   : > { %3968 = vst [vmem:[%s380_s25 + $0x8] sm:$0xff] %v3954_v16  ;;  %v3949_v62 = vadd.f32 %v4130_v21, %v3948_v27 }
 0x5b1   : > { %3967 = vst [vmem:[%s380_s25] sm:$0xff] %v3949_v62 }
 0x5c9   : > { %v4378_v14 = vpop.f32.mrf.mxu1 }
 0x5ca   : > { %v3964_v54 = vadd.f32 %v4378_v14, %v4130_v21 }
 0x5cb   : > { %v3958_v50 = vpop.f32.mrf.mxu1 }
 0x5cc   : > { %3970 = vst [vmem:[%s380_s25 + $0x18] sm:$0xff] %v3964_v54  ;;  %v3959_v48 = vadd.f32 %v4130_v21, %v3958_v50 }
 0x5ce   : > { %3969 = vst [vmem:[%s380_s25 + $0x10] sm:$0xff] %v3959_v48 }
 0x5cf   : > { %4562 = shalt.err (!%p4559_p3)
}
 0x5d0   : > { %s4563_s15 = scalar_lea.hbm %s6602_s14, 512  ;;  %s4567_s12 = scalar_lea.hbm %s6655_s11, 1024 }
 0x5d1   : > { %p4564_p4 = scmp.ne.s32.totalorder %s6602_s14, %s4563_s15  ;;  %p4568_p9 = scmp.lt.s32.totalorder %s6602_s14, %s6655_s11 }
 0x5d2   : > { %p4569_p10 = scmp.lt.s32.totalorder %s4567_s12, %s4563_s15 }
 0x5d3   : > { %p4565_p7 = pnand %p4564_p4, %p4713_p5 }
 0x5d4   : > { %p4570_p11 = por %p4569_p10, %p4568_p9 }
 0x5d5   : > { %p4566_p8 = pneg %p4565_p7 }
 0x5d7   : > { %p4571_p12 = pnand %p4570_p11, %p4566_p8 }
 0x5d9   : > { %4574 = shalt.err (!%p4571_p12)
}
 0x5da   : > { %s4613_s0 = smov 128   ;;  %s4614_s22 = smov 8  }
 0x5db   : > { %4379 = dma.vmem_to_hbm [thread:$0]  (%p4713_p5), %s6597_s29, 512, %s6602_s14, %s6604_s16, %s4613_s0, %s4613_s0, %s4614_s22  }
 0x5dc PF: > { %p4385_p13 = scmp.ge.s32.totalorder %s4609_s20, 2  ;;  %s4000_s24 = sand.u32 1, %s4597_s17  }
 0x5dd   : > { %s4001_s15 = scalar_lea.sflag [#allocation3], %s4000_s24 }
 0x5de   : > { %p4382_p0 = pnand %p4385_p13, %p4717_p6 }
 0x5e0   : > { %p4383_p1 = pneg %p4382_p0 }
 0x5e2   : > { %4592 = dma.done.wait (%p4383_p1), %s4001_s15, 512  }
 0x5e3   : > { %4594 = vsyncadd (%p4383_p1), %s4001_s15, 4294966784  ;;  %p21_p2 = scmp.ge.s32.totalorder %s4700_s23, 4   ;;  %s6754_s17 = smov %s4601_s18 }
 0x5e4   : > { %s6755_s18 = smov %s4605_s19  ;;  %s6756_s19 = smov %s4711_s26 }
 0x5e5   : > { %s6757_s20 = smov %s4700_s23  ;;  %23 = sbr.rel (!%p21_p2) target bundleno = 5 (0x5), region = 99 }
 0x5ea   :  { %4006 = vsyncpa [#allocation3], 1 }
 0x5eb   :  { %4008 = vsyncpa [#allocation3 + $0x1], 1 }

</bundles_post_ra>
